<compile_context>
chip_gen: v6e
topology: v6e:2x2x1
jax: 0.10.0
libtpu: 0.0.40
codegen_flags: <defaults>
</compile_context>

<pallas_src>
import functools

import jax
import jax.numpy as jnp
from jax.experimental import pallas as pl
from jax.experimental.pallas import tpu as pltpu


def _round_up(x, m):
    return ((x + m - 1) // m) * m


def _pick_tile(total, want, step):
    """Largest multiple of `step` that is <= want and divides `total`."""
    t = min(want, total)
    t = max(step, (t // step) * step)
    while total % t:
        t -= step
    return t


# --------------------------------------------------------------------------- #
# Kernel
# --------------------------------------------------------------------------- #
def lstm_fused_kernel(x_ref, wih_ref, whh_ref, b_ref, wfc_ref, bfc_ref,
                      out_ref, xp_scr, h_scr, c_scr,
                      *, seq_len, n_sub, need_mask):
    """One (batch_tile, time_chunk) grid step of the LSTM + final FC.

    x_ref   : (Tt, Bt, D)     operand dtype (f32 or bf16)
    wih_ref : (D,  4*Hp)      operand dtype   gate order (i, f, g, o), each gate
    whh_ref : (Hp, 4*Hp)      operand dtype   padded to a lane-aligned Hp slot
    b_ref   : (1,  4*Hp)      f32             (b_ih + b_hh, gate-padded)
    wfc_ref : (Hp, Cp)        operand dtype
    bfc_ref : (1,  Cp)        f32
    out_ref : (Bt, Cp)        f32  (written only at the last time chunk)
    xp_scr  : (Tt*Bt, 4*Hp)   f32 scratch  (hoisted input projection)
    h_scr   : (Bt, Hp)        f32 scratch, persists across time chunks
    c_scr   : (Bt, Hp)        f32 scratch, persists across time chunks
    """
    t_idx = pl.program_id(1)                    # time-chunk index (inner axis)
    tt, bt, d = x_ref.shape
    hp = h_scr.shape[1]
    op_dtype = x_ref.dtype
    bs = bt // n_sub                            # rows per independent sub-chain

    # Zero initial hidden/cell state at the first time chunk of each batch tile.
    @pl.when(t_idx == 0)
    def _init():
        h_scr[...] = jnp.zeros_like(h_scr)
        c_scr[...] = jnp.zeros_like(c_scr)

    # ---- Hoisted input projection: one tall GEMM for the whole chunk --------
    # Written to explicit VMEM scratch: it cannot fit in vregs, and making it a
    # named buffer keeps the VMEM budget predictable (critical on v7x, 64 MiB).
    x2d = x_ref[...].reshape(tt * bt, d)
    xp_scr[...] = jnp.dot(x2d, wih_ref[...],
                          preferred_element_type=jnp.float32) + b_ref[...]

    # Recurrent state per independent batch sub-tile (interleaved serial chains).
    h = [h_scr[s * bs:(s + 1) * bs, :] for s in range(n_sub)]
    c = [c_scr[s * bs:(s + 1) * bs, :] for s in range(n_sub)]

    # ---- Serial recurrence (fully unrolled; static slice indices) -----------
    for t in range(tt):
        for s in range(n_sub):
            r0 = t * bt + s * bs
            # NOTE: bf16 recast of h compounds rounding over long sequences;
            # keep operand dtype f32 on v5e (bf16 buys nothing on VPU/EUP there).
            h_op = h[s].astype(op_dtype)

            # Per-gate matmul + immediate activation keeps the live f32 tensor
            # at most (bs, Hp) (~16 vregs) instead of a 4x wider "gates" slab.
            def gate(k, act, r0=r0, h_op=h_op):
                pre = xp_scr[r0:r0 + bs, k * hp:(k + 1) * hp] + jnp.dot(
                    h_op, whh_ref[:, k * hp:(k + 1) * hp],
                    preferred_element_type=jnp.float32)
                return act(pre)

            i_g = gate(0, jax.nn.sigmoid)
            f_g = gate(1, jax.nn.sigmoid)
            g_g = gate(2, jnp.tanh)
            o_g = gate(3, jax.nn.sigmoid)

            c_new = f_g * c[s] + i_g * g_g
            h_new = o_g * jnp.tanh(c_new)

            if need_mask:
                # Padded trailing timesteps must NOT update state (zero input
                # is not an identity step for an LSTM). Arithmetic 0/1 mask.
                m = ((t_idx * tt + t) < seq_len).astype(jnp.float32)
                c_new = m * c_new + (1.0 - m) * c[s]
                h_new = m * h_new + (1.0 - m) * h[s]

            c[s] = c_new
            h[s] = h_new

    for s in range(n_sub):
        h_scr[s * bs:(s + 1) * bs, :] = h[s]
        c_scr[s * bs:(s + 1) * bs, :] = c[s]

    # ---- Final FC on h_T (== lstm_out[:, -1, :]) at the last time chunk -----
    @pl.when(t_idx == pl.num_programs(1) - 1)
    def _final():
        logits = jnp.dot(h_scr[...].astype(op_dtype), wfc_ref[...],
                         preferred_element_type=jnp.float32) + bfc_ref[...]
        out_ref[...] = logits.astype(out_ref.dtype)     # (Bt, Cp) lane-dense


# --------------------------------------------------------------------------- #
# Parameter packing (hoisted: do this ONCE per parameter set)
# --------------------------------------------------------------------------- #
def pack_lstm_params(params, operand_dtype=jnp.bfloat16):
    """Transpose / gate-pad / cast the PyTorch-shaped weights.

    CORRECTNESS INVARIANT: padded gate lanes have bias exactly 0 and c starts
    at exactly 0, so padded h/c lanes stay 0 forever (i=f=o=0.5, g=0, c=0).
    Any nonzero padding of the bias or a nonzero c0 would silently corrupt
    the padded lanes.
    """
    w_ih, w_hh, b_ih, b_hh, w_fc, b_fc = params
    H = w_hh.shape[1]
    D = w_ih.shape[1]
    C = w_fc.shape[0]
    Hp = _round_up(H, 128)
    Cp = _round_up(C, 128)

    wih_t = jnp.transpose(w_ih).astype(jnp.float32)      # (D, 4H)
    whh_t = jnp.transpose(w_hh).astype(jnp.float32)      # (H, 4H)
    bias = (b_ih + b_hh).astype(jnp.float32)             # (4H,)

    wih_p = jnp.zeros((D, 4 * Hp), jnp.float32)
    whh_p = jnp.zeros((Hp, 4 * Hp), jnp.float32)
    b_p = jnp.zeros((1, 4 * Hp), jnp.float32)
    for k in range(4):                                    # gates i, f, g, o
        wih_p = wih_p.at[:, k * Hp:k * Hp + H].set(wih_t[:, k * H:(k + 1) * H])
        whh_p = whh_p.at[:H, k * Hp:k * Hp + H].set(whh_t[:, k * H:(k + 1) * H])
        b_p = b_p.at[0, k * Hp:k * Hp + H].set(bias[k * H:(k + 1) * H])

    wfc_p = jnp.zeros((Hp, Cp), jnp.float32).at[:H, :C].set(
        jnp.transpose(w_fc).astype(jnp.float32))
    bfc_p = jnp.zeros((1, Cp), jnp.float32).at[0, :C].set(b_fc.astype(jnp.float32))

    return dict(
        wih=wih_p.astype(operand_dtype),
        whh=whh_p.astype(operand_dtype),
        b=b_p,                                            # biases stay f32
        wfc=wfc_p.astype(operand_dtype),
        bfc=bfc_p,
        D=D, H=H, C=C, Hp=Hp, Cp=Cp, operand_dtype=operand_dtype)


# --------------------------------------------------------------------------- #
# Forward wrapper
# --------------------------------------------------------------------------- #
def _lstm_forward_impl(x_btd, packed, *, time_tile, batch_tile,
                       single_buffer_weights, min_batch_tiles):
    wih_p, whh_p, b_p = packed["wih"], packed["whh"], packed["b"]
    wfc_p, bfc_p = packed["wfc"], packed["bfc"]
    D, Hp, Cp, C = packed["D"], packed["Hp"], packed["Cp"], packed["C"]
    operand_dtype = packed["operand_dtype"]

    B, T, _ = x_btd.shape
    op_bytes = jnp.dtype(operand_dtype).itemsize
    bmul = 16 if op_bytes == 2 else 8        # bf16 sublane tile is (16, 128)

    # ---- Batch tiling ("parallel" axis). Default 256 feeds the full 256-row
    # MXU on v6e/v7x; use batch_tile=128 on v5e (4x 128x128 MXUs).
    Bp = _round_up(B, bmul)
    Bt = _pick_tile(Bp, max(batch_tile, bmul), bmul)
    # v7x megacore: prefer >= min_batch_tiles blocks along the parallel axis so
    # both TensorCores get work (set min_batch_tiles=2 on v7x for large B).
    while Bp // Bt < min_batch_tiles and Bt > bmul:
        Bt = _pick_tile(Bp, Bt - bmul, bmul)

    # ---- Time chunking ("arbitrary" axis). Awkward T is padded + masked
    # instead of silently degrading to one grid step per timestep.
    Tt = max(1, min(time_tile, T))
    Tp = _round_up(T, Tt)
    need_mask = (Tp != T)

    # Two independent recurrence chains when the tile is big enough (and the
    # sub-tiles stay sublane-aligned for the operand dtype).
    n_sub = 2 if (Bt >= 2 * bmul and Bt % (2 * bmul) == 0) else 1

    # Time-major, padded, cast. For repeated calls, jit this wrapper so the
    # transpose + pad + cast fuse into a single HBM copy (half-width for bf16).
    x_tbd = jnp.transpose(x_btd, (1, 0, 2)).astype(operand_dtype)  # (T, B, D)
    if Bp != B or Tp != T:
        x_tbd = jnp.pad(x_tbd, ((0, Tp - T), (0, Bp - B), (0, 0)))

    grid = (Bp // Bt, Tp // Tt)

    # ---- Explicit VMEM budget (default scoped limit is far below physical) --
    w_buf = 1 if single_buffer_weights else 2
    vmem_need = (
        2 * Tt * Bt * D * op_bytes                                   # x, 2 bufs
        + w_buf * ((D * 4 * Hp + Hp * 4 * Hp + Hp * Cp) * op_bytes
                   + (4 * Hp + Cp) * 4)                              # weights
        + 2 * Bt * Cp * 4                                            # out block
        + Tt * Bt * 4 * Hp * 4                                       # xp scratch
        + 2 * Bt * Hp * 4)                                           # h, c
    vmem_limit = int(min(max(int(vmem_need * 1.5) + (4 << 20), 32 << 20),
                         96 << 20))

    cost = pl.CostEstimate(
        flops=2 * Bp * Tp * (D + Hp) * 4 * Hp + 2 * Bp * Hp * Cp,
        transcendentals=5 * Bp * Tp * Hp,
        bytes_accessed=int(x_tbd.size * op_bytes
                           + (wih_p.size + whh_p.size + wfc_p.size) * op_bytes
                           + (b_p.size + bfc_p.size) * 4 + Bp * Cp * 4))

    # Resident weights (constant index_map) only need a single VMEM buffer.
    wmode = {"pipeline_mode": pl.Buffered(1)} if single_buffer_weights else {}

    kernel = functools.partial(lstm_fused_kernel, seq_len=T, n_sub=n_sub,
                               need_mask=need_mask)

    out = pl.pallas_call(
        kernel,
        out_shape=jax.ShapeDtypeStruct((Bp, Cp), jnp.float32),
        grid=grid,
        in_specs=[
            pl.BlockSpec((Tt, Bt, D), lambda b, t: (t, b, 0)),          # x
            pl.BlockSpec((D, 4 * Hp), lambda b, t: (0, 0), **wmode),    # W_ih
            pl.BlockSpec((Hp, 4 * Hp), lambda b, t: (0, 0), **wmode),   # W_hh
            pl.BlockSpec((1, 4 * Hp), lambda b, t: (0, 0), **wmode),    # bias
            pl.BlockSpec((Hp, Cp), lambda b, t: (0, 0), **wmode),       # W_fc
            pl.BlockSpec((1, Cp), lambda b, t: (0, 0), **wmode),        # b_fc
        ],
        out_specs=pl.BlockSpec((Bt, Cp), lambda b, t: (b, 0)),
        scratch_shapes=[
            pltpu.VMEM((Tt * Bt, 4 * Hp), jnp.float32),   # xp (input projection)
            pltpu.VMEM((Bt, Hp), jnp.float32),            # h state
            pltpu.VMEM((Bt, Hp), jnp.float32),            # c state
        ],
        compiler_params=pltpu.CompilerParams(
            dimension_semantics=("parallel", "arbitrary"),
            vmem_limit_bytes=vmem_limit),
        cost_estimate=cost,
    )(x_tbd, wih_p, whh_p, b_p, wfc_p, bfc_p)

    return out[:B, :C]


def my_lstm_forward(x_btd, packed, *, time_tile=16, batch_tile=256,
                    min_batch_tiles=1):
    """MyLSTM forward. x_btd: (B, T, D) float32, batch_first like PyTorch.

    Tries single-buffered resident weights first (pure VMEM savings, biggest
    win on v7x's 64 MiB); falls back to default double-buffering if this JAX
    build does not accept pipeline_mode=pl.Buffered(1).
    """
    last_err = None
    for sbw in (True, False):
        try:
            out = _lstm_forward_impl(
                x_btd, packed, time_tile=time_tile, batch_tile=batch_tile,
                single_buffer_weights=sbw, min_batch_tiles=min_batch_tiles)
            return jax.block_until_ready(out)
        except Exception as e:   # noqa: BLE001 - fall back to double buffering
            last_err = e
    raise last_err


# --------------------------------------------------------------------------- #
# Reference + init (pure JAX, f32)
# --------------------------------------------------------------------------- #
def init_params(key, input_size, hidden_dim, num_classes):
    """PyTorch parameter shapes: weight_ih_l0 (4H, D), weight_hh_l0 (4H, H),
    bias_ih (4H), bias_hh (4H), fc.weight (C, H), fc.bias (C)."""
    ks = jax.random.split(key, 6)
    s = 1.0 / jnp.sqrt(hidden_dim)
    w_ih = jax.random.uniform(ks[0], (4 * hidden_dim, input_size),
                              jnp.float32, -s, s)
    w_hh = jax.random.uniform(ks[1], (4 * hidden_dim, hidden_dim),
                              jnp.float32, -s, s)
    b_ih = jax.random.uniform(ks[2], (4 * hidden_dim,), jnp.float32, -s, s)
    b_hh = jax.random.uniform(ks[3], (4 * hidden_dim,), jnp.float32, -s, s)
    w_fc = jax.random.uniform(ks[4], (num_classes, hidden_dim),
                              jnp.float32, -s, s)
    b_fc = jax.random.uniform(ks[5], (num_classes,), jnp.float32, -s, s)
    return (w_ih, w_hh, b_ih, b_hh, w_fc, b_fc)


def reference_forward(x_btd, params):
    w_ih, w_hh, b_ih, b_hh, w_fc, b_fc = params
    B, T, _ = x_btd.shape
    H = w_hh.shape[1]
    h = jnp.zeros((B, H), jnp.float32)
    c = jnp.zeros((B, H), jnp.float32)
    for t in range(T):
        x_t = x_btd[:, t, :]
        gates = x_t @ w_ih.T + b_ih + h @ w_hh.T + b_hh
        i = jax.nn.sigmoid(gates[:, 0 * H:1 * H])
        f = jax.nn.sigmoid(gates[:, 1 * H:2 * H])
        g = jnp.tanh(gates[:, 2 * H:3 * H])
        o = jax.nn.sigmoid(gates[:, 3 * H:4 * H])
        c = f * c + i * g
        h = o * jnp.tanh(c)
    return h @ w_fc.T + b_fc


# --------------------------------------------------------------------------- #
if __name__ == "__main__":
    D, H, C = 16, 32, 2
    key = jax.random.PRNGKey(0)
    k_x1, k_x3, k_p = jax.random.split(key, 3)
    params = init_params(k_p, input_size=D, hidden_dim=H, num_classes=C)

    # Case 1: tiny batch, f32 MXU operands, T divisible by the time chunk.
    x1 = jax.random.normal(k_x1, (2, 8, D), jnp.float32)
    ref1 = reference_forward(x1, params)
    packed_f32 = pack_lstm_params(params, operand_dtype=jnp.float32)
    out1 = my_lstm_forward(x1, packed_f32, time_tile=4)
    assert out1.shape == (2, C)
    assert jnp.allclose(out1, ref1, atol=1e-4, rtol=1e-4), (out1, ref1)

    # Case 2: T not divisible by the time chunk -> padded + masked tail steps.
    out2 = my_lstm_forward(x1, packed_f32, time_tile=3)
    assert jnp.allclose(out2, ref1, atol=1e-4, rtol=1e-4), (out2, ref1)

    # Case 3: bigger batch -> exercises the two interleaved recurrence chains.
    x3 = jax.random.normal(k_x3, (16, 8, D), jnp.float32)
    ref3 = reference_forward(x3, params)
    out3 = my_lstm_forward(x3, packed_f32, time_tile=4)
    assert jnp.allclose(out3, ref3, atol=1e-4, rtol=1e-4), (out3, ref3)

    # Case 4: bf16 MXU operands (v6e/v7x fast path), f32 gate/cell math.
    packed_bf16 = pack_lstm_params(params, operand_dtype=jnp.bfloat16)
    out4 = my_lstm_forward(x1, packed_bf16, time_tile=4)
    assert jnp.allclose(out4, ref1, atol=5e-2, rtol=5e-2), (out4, ref1)

    print("KERNEL_OK")
</pallas_src>

<mosaic_0001>
module attributes {stable_mosaic.version = 11 : i64} {
  func.func @lstm_fused_kernel(%arg0: i32, %arg1: i32, %arg2: memref<4x8x16xf32, #tpu.memory_space<vmem>>, %arg3: memref<16x512xf32, #tpu.memory_space<vmem>>, %arg4: memref<128x512xf32, #tpu.memory_space<vmem>>, %arg5: memref<1x512xf32, #tpu.memory_space<vmem>>, %arg6: memref<128x128xf32, #tpu.memory_space<vmem>>, %arg7: memref<1x128xf32, #tpu.memory_space<vmem>>, %arg8: memref<8x128xf32, #tpu.memory_space<vmem>>, %arg9: memref<32x512xf32, #tpu.memory_space<vmem>>, %arg10: memref<8x128xf32, #tpu.memory_space<vmem>>, %arg11: memref<8x128xf32, #tpu.memory_space<vmem>>) attributes {dimension_semantics = [#tpu.dimension_semantics<parallel>, #tpu.dimension_semantics<arbitrary>], iteration_bounds = array<i64: 1, 2>, scalar_prefetch = 0 : i64, scratch_operands = 3 : i64, tpu.core_type = #tpu.core_type<tc>, window_params = [{transform_indices = @transform_0, window_bounds = array<i64: 4, 8, 16>}, {pipeline_mode = #tpu.pipeline_mode<synchronous>, transform_indices = @transform_1, window_bounds = array<i64: 16, 512>}, {pipeline_mode = #tpu.pipeline_mode<synchronous>, transform_indices = @transform_2, window_bounds = array<i64: 128, 512>}, {pipeline_mode = #tpu.pipeline_mode<synchronous>, transform_indices = @transform_3, window_bounds = array<i64: 1, 512>}, {pipeline_mode = #tpu.pipeline_mode<synchronous>, transform_indices = @transform_4, window_bounds = array<i64: 128, 128>}, {pipeline_mode = #tpu.pipeline_mode<synchronous>, transform_indices = @transform_5, window_bounds = array<i64: 1, 128>}, {transform_indices = @transform_6, window_bounds = array<i64: 8, 128>}]} {
    %c0_i32 = arith.constant 0 : i32
    %0 = arith.cmpi eq, %arg1, %c0_i32 : i32
    %1 = arith.extui %0 : i1 to i32
    %c0_i32_0 = arith.constant 0 : i32
    %2 = arith.cmpi ne, %1, %c0_i32_0 : i32
    scf.if %2 {
      %cst_104 = arith.constant 0.000000e+00 : f32
      %166 = vector.broadcast %cst_104 : f32 to vector<8x128xf32>
      %c0_105 = arith.constant 0 : index
      %c0_106 = arith.constant 0 : index
      %167 = vector.load %arg10[%c0_105, %c0_106] : memref<8x128xf32, #tpu.memory_space<vmem>>, vector<8x128xf32>
      tpu.vector_store %arg10[%c0_105, %c0_106], %166 {strides = array<i32>} : memref<8x128xf32, #tpu.memory_space<vmem>>, vector<8x128xf32>,
      %cst_107 = arith.constant 0.000000e+00 : f32
      %168 = vector.broadcast %cst_107 : f32 to vector<8x128xf32>
      %c0_108 = arith.constant 0 : index
      %c0_109 = arith.constant 0 : index
      %169 = vector.load %arg11[%c0_108, %c0_109] : memref<8x128xf32, #tpu.memory_space<vmem>>, vector<8x128xf32>
      tpu.vector_store %arg11[%c0_108, %c0_109], %168 {strides = array<i32>} : memref<8x128xf32, #tpu.memory_space<vmem>>, vector<8x128xf32>,
    } else {
    }
    %c0 = arith.constant 0 : index
    %c0_1 = arith.constant 0 : index
    %c0_2 = arith.constant 0 : index
    %3 = vector.load %arg2[%c0, %c0_1, %c0_2] : memref<4x8x16xf32, #tpu.memory_space<vmem>>, vector<4x8x16xf32>
    %4 = vector.shape_cast %3 : vector<4x8x16xf32> to vector<32x16xf32>
    %c0_3 = arith.constant 0 : index
    %c0_4 = arith.constant 0 : index
    %5 = vector.load %arg3[%c0_3, %c0_4] : memref<16x512xf32, #tpu.memory_space<vmem>>, vector<16x512xf32>
    %cst = arith.constant dense<0.000000e+00> : vector<32x512xf32>
    %6 = tpu.matmul %4, %5, %cst {dimension_numbers = #tpu.dot_dimension_numbers<[1], [0], [0], [1], [0, 0, 1, 1], [], []>} : vector<32x16xf32>, vector<16x512xf32>, vector<32x512xf32> -> vector<32x512xf32>
    %c0_5 = arith.constant 0 : index
    %c0_6 = arith.constant 0 : index
    %7 = vector.load %arg5[%c0_5, %c0_6] : memref<1x512xf32, #tpu.memory_space<vmem>>, vector<1x512xf32>
    %8 = vector.broadcast %7 : vector<1x512xf32> to vector<32x512xf32>
    %9 = arith.addf %6, %8 : vector<32x512xf32>
    %c0_7 = arith.constant 0 : index
    %c0_8 = arith.constant 0 : index
    %10 = vector.load %arg9[%c0_7, %c0_8] : memref<32x512xf32, #tpu.memory_space<vmem>>, vector<32x512xf32>
    tpu.vector_store %arg9[%c0_7, %c0_8], %9 {strides = array<i32>} : memref<32x512xf32, #tpu.memory_space<vmem>>, vector<32x512xf32>,
    %c0_9 = arith.constant 0 : index
    %c0_10 = arith.constant 0 : index
    %11 = vector.load %arg10[%c0_9, %c0_10] : memref<8x128xf32, #tpu.memory_space<vmem>>, vector<8x128xf32>
    %c0_11 = arith.constant 0 : index
    %c0_12 = arith.constant 0 : index
    %12 = vector.load %arg11[%c0_11, %c0_12] : memref<8x128xf32, #tpu.memory_space<vmem>>, vector<8x128xf32>
    %c0_13 = arith.constant 0 : index
    %c0_14 = arith.constant 0 : index
    %13 = vector.load %arg9[%c0_13, %c0_14] : memref<32x512xf32, #tpu.memory_space<vmem>>, vector<8x128xf32>
    %c0_15 = arith.constant 0 : index
    %c0_16 = arith.constant 0 : index
    %14 = vector.load %arg4[%c0_15, %c0_16] : memref<128x512xf32, #tpu.memory_space<vmem>>, vector<128x128xf32>
    %cst_17 = arith.constant dense<0.000000e+00> : vector<8x128xf32>
    %15 = tpu.matmul %11, %14, %cst_17 {dimension_numbers = #tpu.dot_dimension_numbers<[1], [0], [0], [1], [0, 0, 1, 1], [], []>} : vector<8x128xf32>, vector<128x128xf32>, vector<8x128xf32> -> vector<8x128xf32>
    %16 = arith.addf %13, %15 : vector<8x128xf32>
    %17 = arith.negf %16 : vector<8x128xf32>
    %18 = math.exp %17 : vector<8x128xf32>
    %cst_18 = arith.constant 1.000000e+00 : f32
    %19 = vector.broadcast %cst_18 : f32 to vector<8x128xf32>
    %20 = arith.addf %19, %18 : vector<8x128xf32>
    %21 = arith.divf %19, %20 : vector<8x128xf32>
    %c0_19 = arith.constant 0 : index
    %c128 = arith.constant 128 : index
    %22 = vector.load %arg9[%c0_19, %c128] : memref<32x512xf32, #tpu.memory_space<vmem>>, vector<8x128xf32>
    %c0_20 = arith.constant 0 : index
    %c128_21 = arith.constant 128 : index
    %23 = vector.load %arg4[%c0_20, %c128_21] : memref<128x512xf32, #tpu.memory_space<vmem>>, vector<128x128xf32>
    %cst_22 = arith.constant dense<0.000000e+00> : vector<8x128xf32>
    %24 = tpu.matmul %11, %23, %cst_22 {dimension_numbers = #tpu.dot_dimension_numbers<[1], [0], [0], [1], [0, 0, 1, 1], [], []>} : vector<8x128xf32>, vector<128x128xf32>, vector<8x128xf32> -> vector<8x128xf32>
    %25 = arith.addf %22, %24 : vector<8x128xf32>
    %26 = arith.negf %25 : vector<8x128xf32>
    %27 = math.exp %26 : vector<8x128xf32>
    %cst_23 = arith.constant 1.000000e+00 : f32
    %28 = vector.broadcast %cst_23 : f32 to vector<8x128xf32>
    %29 = arith.addf %28, %27 : vector<8x128xf32>
    %30 = arith.divf %28, %29 : vector<8x128xf32>
    %c0_24 = arith.constant 0 : index
    %c256 = arith.constant 256 : index
    %31 = vector.load %arg9[%c0_24, %c256] : memref<32x512xf32, #tpu.memory_space<vmem>>, vector<8x128xf32>
    %c0_25 = arith.constant 0 : index
    %c256_26 = arith.constant 256 : index
    %32 = vector.load %arg4[%c0_25, %c256_26] : memref<128x512xf32, #tpu.memory_space<vmem>>, vector<128x128xf32>
    %cst_27 = arith.constant dense<0.000000e+00> : vector<8x128xf32>
    %33 = tpu.matmul %11, %32, %cst_27 {dimension_numbers = #tpu.dot_dimension_numbers<[1], [0], [0], [1], [0, 0, 1, 1], [], []>} : vector<8x128xf32>, vector<128x128xf32>, vector<8x128xf32> -> vector<8x128xf32>
    %34 = arith.addf %31, %33 : vector<8x128xf32>
    %35 = math.tanh %34 : vector<8x128xf32>
    %c0_28 = arith.constant 0 : index
    %c384 = arith.constant 384 : index
    %36 = vector.load %arg9[%c0_28, %c384] : memref<32x512xf32, #tpu.memory_space<vmem>>, vector<8x128xf32>
    %c0_29 = arith.constant 0 : index
    %c384_30 = arith.constant 384 : index
    %37 = vector.load %arg4[%c0_29, %c384_30] : memref<128x512xf32, #tpu.memory_space<vmem>>, vector<128x128xf32>
    %cst_31 = arith.constant dense<0.000000e+00> : vector<8x128xf32>
    %38 = tpu.matmul %11, %37, %cst_31 {dimension_numbers = #tpu.dot_dimension_numbers<[1], [0], [0], [1], [0, 0, 1, 1], [], []>} : vector<8x128xf32>, vector<128x128xf32>, vector<8x128xf32> -> vector<8x128xf32>
    %39 = arith.addf %36, %38 : vector<8x128xf32>
    %40 = arith.negf %39 : vector<8x128xf32>
    %41 = math.exp %40 : vector<8x128xf32>
    %cst_32 = arith.constant 1.000000e+00 : f32
    %42 = vector.broadcast %cst_32 : f32 to vector<8x128xf32>
    %43 = arith.addf %42, %41 : vector<8x128xf32>
    %44 = arith.divf %42, %43 : vector<8x128xf32>
    %45 = arith.mulf %30, %12 : vector<8x128xf32>
    %46 = arith.mulf %21, %35 : vector<8x128xf32>
    %47 = arith.addf %45, %46 : vector<8x128xf32>
    %48 = math.tanh %47 : vector<8x128xf32>
    %49 = arith.mulf %44, %48 : vector<8x128xf32>
    %c8 = arith.constant 8 : index
    %c0_33 = arith.constant 0 : index
    %50 = vector.load %arg9[%c8, %c0_33] : memref<32x512xf32, #tpu.memory_space<vmem>>, vector<8x128xf32>
    %c0_34 = arith.constant 0 : index
    %c0_35 = arith.constant 0 : index
    %51 = vector.load %arg4[%c0_34, %c0_35] : memref<128x512xf32, #tpu.memory_space<vmem>>, vector<128x128xf32>
    %cst_36 = arith.constant dense<0.000000e+00> : vector<8x128xf32>
    %52 = tpu.matmul %49, %51, %cst_36 {dimension_numbers = #tpu.dot_dimension_numbers<[1], [0], [0], [1], [0, 0, 1, 1], [], []>} : vector<8x128xf32>, vector<128x128xf32>, vector<8x128xf32> -> vector<8x128xf32>
    %53 = arith.addf %50, %52 : vector<8x128xf32>
    %54 = arith.negf %53 : vector<8x128xf32>
    %55 = math.exp %54 : vector<8x128xf32>
    %cst_37 = arith.constant 1.000000e+00 : f32
    %56 = vector.broadcast %cst_37 : f32 to vector<8x128xf32>
    %57 = arith.addf %56, %55 : vector<8x128xf32>
    %58 = arith.divf %56, %57 : vector<8x128xf32>
    %c8_38 = arith.constant 8 : index
    %c128_39 = arith.constant 128 : index
    %59 = vector.load %arg9[%c8_38, %c128_39] : memref<32x512xf32, #tpu.memory_space<vmem>>, vector<8x128xf32>
    %c0_40 = arith.constant 0 : index
    %c128_41 = arith.constant 128 : index
    %60 = vector.load %arg4[%c0_40, %c128_41] : memref<128x512xf32, #tpu.memory_space<vmem>>, vector<128x128xf32>
    %cst_42 = arith.constant dense<0.000000e+00> : vector<8x128xf32>
    %61 = tpu.matmul %49, %60, %cst_42 {dimension_numbers = #tpu.dot_dimension_numbers<[1], [0], [0], [1], [0, 0, 1, 1], [], []>} : vector<8x128xf32>, vector<128x128xf32>, vector<8x128xf32> -> vector<8x128xf32>
    %62 = arith.addf %59, %61 : vector<8x128xf32>
    %63 = arith.negf %62 : vector<8x128xf32>
    %64 = math.exp %63 : vector<8x128xf32>
    %cst_43 = arith.constant 1.000000e+00 : f32
    %65 = vector.broadcast %cst_43 : f32 to vector<8x128xf32>
    %66 = arith.addf %65, %64 : vector<8x128xf32>
    %67 = arith.divf %65, %66 : vector<8x128xf32>
    %c8_44 = arith.constant 8 : index
    %c256_45 = arith.constant 256 : index
    %68 = vector.load %arg9[%c8_44, %c256_45] : memref<32x512xf32, #tpu.memory_space<vmem>>, vector<8x128xf32>
    %c0_46 = arith.constant 0 : index
    %c256_47 = arith.constant 256 : index
    %69 = vector.load %arg4[%c0_46, %c256_47] : memref<128x512xf32, #tpu.memory_space<vmem>>, vector<128x128xf32>
    %cst_48 = arith.constant dense<0.000000e+00> : vector<8x128xf32>
    %70 = tpu.matmul %49, %69, %cst_48 {dimension_numbers = #tpu.dot_dimension_numbers<[1], [0], [0], [1], [0, 0, 1, 1], [], []>} : vector<8x128xf32>, vector<128x128xf32>, vector<8x128xf32> -> vector<8x128xf32>
    %71 = arith.addf %68, %70 : vector<8x128xf32>
    %72 = math.tanh %71 : vector<8x128xf32>
    %c8_49 = arith.constant 8 : index
    %c384_50 = arith.constant 384 : index
    %73 = vector.load %arg9[%c8_49, %c384_50] : memref<32x512xf32, #tpu.memory_space<vmem>>, vector<8x128xf32>
    %c0_51 = arith.constant 0 : index
    %c384_52 = arith.constant 384 : index
    %74 = vector.load %arg4[%c0_51, %c384_52] : memref<128x512xf32, #tpu.memory_space<vmem>>, vector<128x128xf32>
    %cst_53 = arith.constant dense<0.000000e+00> : vector<8x128xf32>
    %75 = tpu.matmul %49, %74, %cst_53 {dimension_numbers = #tpu.dot_dimension_numbers<[1], [0], [0], [1], [0, 0, 1, 1], [], []>} : vector<8x128xf32>, vector<128x128xf32>, vector<8x128xf32> -> vector<8x128xf32>
    %76 = arith.addf %73, %75 : vector<8x128xf32>
    %77 = arith.negf %76 : vector<8x128xf32>
    %78 = math.exp %77 : vector<8x128xf32>
    %cst_54 = arith.constant 1.000000e+00 : f32
    %79 = vector.broadcast %cst_54 : f32 to vector<8x128xf32>
    %80 = arith.addf %79, %78 : vector<8x128xf32>
    %81 = arith.divf %79, %80 : vector<8x128xf32>
    %82 = arith.mulf %67, %47 : vector<8x128xf32>
    %83 = arith.mulf %58, %72 : vector<8x128xf32>
    %84 = arith.addf %82, %83 : vector<8x128xf32>
    %85 = math.tanh %84 : vector<8x128xf32>
    %86 = arith.mulf %81, %85 : vector<8x128xf32>
    %c16 = arith.constant 16 : index
    %c0_55 = arith.constant 0 : index
    %87 = vector.load %arg9[%c16, %c0_55] : memref<32x512xf32, #tpu.memory_space<vmem>>, vector<8x128xf32>
    %c0_56 = arith.constant 0 : index
    %c0_57 = arith.constant 0 : index
    %88 = vector.load %arg4[%c0_56, %c0_57] : memref<128x512xf32, #tpu.memory_space<vmem>>, vector<128x128xf32>
    %cst_58 = arith.constant dense<0.000000e+00> : vector<8x128xf32>
    %89 = tpu.matmul %86, %88, %cst_58 {dimension_numbers = #tpu.dot_dimension_numbers<[1], [0], [0], [1], [0, 0, 1, 1], [], []>} : vector<8x128xf32>, vector<128x128xf32>, vector<8x128xf32> -> vector<8x128xf32>
    %90 = arith.addf %87, %89 : vector<8x128xf32>
    %91 = arith.negf %90 : vector<8x128xf32>
    %92 = math.exp %91 : vector<8x128xf32>
    %cst_59 = arith.constant 1.000000e+00 : f32
    %93 = vector.broadcast %cst_59 : f32 to vector<8x128xf32>
    %94 = arith.addf %93, %92 : vector<8x128xf32>
    %95 = arith.divf %93, %94 : vector<8x128xf32>
    %c16_60 = arith.constant 16 : index
    %c128_61 = arith.constant 128 : index
    %96 = vector.load %arg9[%c16_60, %c128_61] : memref<32x512xf32, #tpu.memory_space<vmem>>, vector<8x128xf32>
    %c0_62 = arith.constant 0 : index
    %c128_63 = arith.constant 128 : index
    %97 = vector.load %arg4[%c0_62, %c128_63] : memref<128x512xf32, #tpu.memory_space<vmem>>, vector<128x128xf32>
    %cst_64 = arith.constant dense<0.000000e+00> : vector<8x128xf32>
    %98 = tpu.matmul %86, %97, %cst_64 {dimension_numbers = #tpu.dot_dimension_numbers<[1], [0], [0], [1], [0, 0, 1, 1], [], []>} : vector<8x128xf32>, vector<128x128xf32>, vector<8x128xf32> -> vector<8x128xf32>
    %99 = arith.addf %96, %98 : vector<8x128xf32>
    %100 = arith.negf %99 : vector<8x128xf32>
    %101 = math.exp %100 : vector<8x128xf32>
    %cst_65 = arith.constant 1.000000e+00 : f32
    %102 = vector.broadcast %cst_65 : f32 to vector<8x128xf32>
    %103 = arith.addf %102, %101 : vector<8x128xf32>
    %104 = arith.divf %102, %103 : vector<8x128xf32>
    %c16_66 = arith.constant 16 : index
    %c256_67 = arith.constant 256 : index
    %105 = vector.load %arg9[%c16_66, %c256_67] : memref<32x512xf32, #tpu.memory_space<vmem>>, vector<8x128xf32>
    %c0_68 = arith.constant 0 : index
    %c256_69 = arith.constant 256 : index
    %106 = vector.load %arg4[%c0_68, %c256_69] : memref<128x512xf32, #tpu.memory_space<vmem>>, vector<128x128xf32>
    %cst_70 = arith.constant dense<0.000000e+00> : vector<8x128xf32>
    %107 = tpu.matmul %86, %106, %cst_70 {dimension_numbers = #tpu.dot_dimension_numbers<[1], [0], [0], [1], [0, 0, 1, 1], [], []>} : vector<8x128xf32>, vector<128x128xf32>, vector<8x128xf32> -> vector<8x128xf32>
    %108 = arith.addf %105, %107 : vector<8x128xf32>
    %109 = math.tanh %108 : vector<8x128xf32>
    %c16_71 = arith.constant 16 : index
    %c384_72 = arith.constant 384 : index
    %110 = vector.load %arg9[%c16_71, %c384_72] : memref<32x512xf32, #tpu.memory_space<vmem>>, vector<8x128xf32>
    %c0_73 = arith.constant 0 : index
    %c384_74 = arith.constant 384 : index
    %111 = vector.load %arg4[%c0_73, %c384_74] : memref<128x512xf32, #tpu.memory_space<vmem>>, vector<128x128xf32>
    %cst_75 = arith.constant dense<0.000000e+00> : vector<8x128xf32>
    %112 = tpu.matmul %86, %111, %cst_75 {dimension_numbers = #tpu.dot_dimension_numbers<[1], [0], [0], [1], [0, 0, 1, 1], [], []>} : vector<8x128xf32>, vector<128x128xf32>, vector<8x128xf32> -> vector<8x128xf32>
    %113 = arith.addf %110, %112 : vector<8x128xf32>
    %114 = arith.negf %113 : vector<8x128xf32>
    %115 = math.exp %114 : vector<8x128xf32>
    %cst_76 = arith.constant 1.000000e+00 : f32
    %116 = vector.broadcast %cst_76 : f32 to vector<8x128xf32>
    %117 = arith.addf %116, %115 : vector<8x128xf32>
    %118 = arith.divf %116, %117 : vector<8x128xf32>
    %119 = arith.mulf %104, %84 : vector<8x128xf32>
    %120 = arith.mulf %95, %109 : vector<8x128xf32>
    %121 = arith.addf %119, %120 : vector<8x128xf32>
    %122 = math.tanh %121 : vector<8x128xf32>
    %123 = arith.mulf %118, %122 : vector<8x128xf32>
    %c24 = arith.constant 24 : index
    %c0_77 = arith.constant 0 : index
    %124 = vector.load %arg9[%c24, %c0_77] : memref<32x512xf32, #tpu.memory_space<vmem>>, vector<8x128xf32>
    %c0_78 = arith.constant 0 : index
    %c0_79 = arith.constant 0 : index
    %125 = vector.load %arg4[%c0_78, %c0_79] : memref<128x512xf32, #tpu.memory_space<vmem>>, vector<128x128xf32>
    %cst_80 = arith.constant dense<0.000000e+00> : vector<8x128xf32>
    %126 = tpu.matmul %123, %125, %cst_80 {dimension_numbers = #tpu.dot_dimension_numbers<[1], [0], [0], [1], [0, 0, 1, 1], [], []>} : vector<8x128xf32>, vector<128x128xf32>, vector<8x128xf32> -> vector<8x128xf32>
    %127 = arith.addf %124, %126 : vector<8x128xf32>
    %128 = arith.negf %127 : vector<8x128xf32>
    %129 = math.exp %128 : vector<8x128xf32>
    %cst_81 = arith.constant 1.000000e+00 : f32
    %130 = vector.broadcast %cst_81 : f32 to vector<8x128xf32>
    %131 = arith.addf %130, %129 : vector<8x128xf32>
    %132 = arith.divf %130, %131 : vector<8x128xf32>
    %c24_82 = arith.constant 24 : index
    %c128_83 = arith.constant 128 : index
    %133 = vector.load %arg9[%c24_82, %c128_83] : memref<32x512xf32, #tpu.memory_space<vmem>>, vector<8x128xf32>
    %c0_84 = arith.constant 0 : index
    %c128_85 = arith.constant 128 : index
    %134 = vector.load %arg4[%c0_84, %c128_85] : memref<128x512xf32, #tpu.memory_space<vmem>>, vector<128x128xf32>
    %cst_86 = arith.constant dense<0.000000e+00> : vector<8x128xf32>
    %135 = tpu.matmul %123, %134, %cst_86 {dimension_numbers = #tpu.dot_dimension_numbers<[1], [0], [0], [1], [0, 0, 1, 1], [], []>} : vector<8x128xf32>, vector<128x128xf32>, vector<8x128xf32> -> vector<8x128xf32>
    %136 = arith.addf %133, %135 : vector<8x128xf32>
    %137 = arith.negf %136 : vector<8x128xf32>
    %138 = math.exp %137 : vector<8x128xf32>
    %cst_87 = arith.constant 1.000000e+00 : f32
    %139 = vector.broadcast %cst_87 : f32 to vector<8x128xf32>
    %140 = arith.addf %139, %138 : vector<8x128xf32>
    %141 = arith.divf %139, %140 : vector<8x128xf32>
    %c24_88 = arith.constant 24 : index
    %c256_89 = arith.constant 256 : index
    %142 = vector.load %arg9[%c24_88, %c256_89] : memref<32x512xf32, #tpu.memory_space<vmem>>, vector<8x128xf32>
    %c0_90 = arith.constant 0 : index
    %c256_91 = arith.constant 256 : index
    %143 = vector.load %arg4[%c0_90, %c256_91] : memref<128x512xf32, #tpu.memory_space<vmem>>, vector<128x128xf32>
    %cst_92 = arith.constant dense<0.000000e+00> : vector<8x128xf32>
    %144 = tpu.matmul %123, %143, %cst_92 {dimension_numbers = #tpu.dot_dimension_numbers<[1], [0], [0], [1], [0, 0, 1, 1], [], []>} : vector<8x128xf32>, vector<128x128xf32>, vector<8x128xf32> -> vector<8x128xf32>
    %145 = arith.addf %142, %144 : vector<8x128xf32>
    %146 = math.tanh %145 : vector<8x128xf32>
    %c24_93 = arith.constant 24 : index
    %c384_94 = arith.constant 384 : index
    %147 = vector.load %arg9[%c24_93, %c384_94] : memref<32x512xf32, #tpu.memory_space<vmem>>, vector<8x128xf32>
    %c0_95 = arith.constant 0 : index
    %c384_96 = arith.constant 384 : index
    %148 = vector.load %arg4[%c0_95, %c384_96] : memref<128x512xf32, #tpu.memory_space<vmem>>, vector<128x128xf32>
    %cst_97 = arith.constant dense<0.000000e+00> : vector<8x128xf32>
    %149 = tpu.matmul %123, %148, %cst_97 {dimension_numbers = #tpu.dot_dimension_numbers<[1], [0], [0], [1], [0, 0, 1, 1], [], []>} : vector<8x128xf32>, vector<128x128xf32>, vector<8x128xf32> -> vector<8x128xf32>
    %150 = arith.addf %147, %149 : vector<8x128xf32>
    %151 = arith.negf %150 : vector<8x128xf32>
    %152 = math.exp %151 : vector<8x128xf32>
    %cst_98 = arith.constant 1.000000e+00 : f32
    %153 = vector.broadcast %cst_98 : f32 to vector<8x128xf32>
    %154 = arith.addf %153, %152 : vector<8x128xf32>
    %155 = arith.divf %153, %154 : vector<8x128xf32>
    %156 = arith.mulf %141, %121 : vector<8x128xf32>
    %157 = arith.mulf %132, %146 : vector<8x128xf32>
    %158 = arith.addf %156, %157 : vector<8x128xf32>
    %159 = math.tanh %158 : vector<8x128xf32>
    %160 = arith.mulf %155, %159 : vector<8x128xf32>
    %c0_99 = arith.constant 0 : index
    %c0_100 = arith.constant 0 : index
    %161 = vector.load %arg10[%c0_99, %c0_100] : memref<8x128xf32, #tpu.memory_space<vmem>>, vector<8x128xf32>
    tpu.vector_store %arg10[%c0_99, %c0_100], %160 {strides = array<i32>} : memref<8x128xf32, #tpu.memory_space<vmem>>, vector<8x128xf32>,
    %c0_101 = arith.constant 0 : index
    %c0_102 = arith.constant 0 : index
    %162 = vector.load %arg11[%c0_101, %c0_102] : memref<8x128xf32, #tpu.memory_space<vmem>>, vector<8x128xf32>
    tpu.vector_store %arg11[%c0_101, %c0_102], %158 {strides = array<i32>} : memref<8x128xf32, #tpu.memory_space<vmem>>, vector<8x128xf32>,
    %c1_i32 = arith.constant 1 : i32
    %163 = arith.cmpi eq, %arg1, %c1_i32 : i32
    %164 = arith.extui %163 : i1 to i32
    %c0_i32_103 = arith.constant 0 : i32
    %165 = arith.cmpi ne, %164, %c0_i32_103 : i32
    scf.if %165 {
      %c0_104 = arith.constant 0 : index
      %c0_105 = arith.constant 0 : index
      %166 = vector.load %arg10[%c0_104, %c0_105] : memref<8x128xf32, #tpu.memory_space<vmem>>, vector<8x128xf32>
      %c0_106 = arith.constant 0 : index
      %c0_107 = arith.constant 0 : index
      %167 = vector.load %arg6[%c0_106, %c0_107] : memref<128x128xf32, #tpu.memory_space<vmem>>, vector<128x128xf32>
      %cst_108 = arith.constant dense<0.000000e+00> : vector<8x128xf32>
      %168 = tpu.matmul %166, %167, %cst_108 {dimension_numbers = #tpu.dot_dimension_numbers<[1], [0], [0], [1], [0, 0, 1, 1], [], []>} : vector<8x128xf32>, vector<128x128xf32>, vector<8x128xf32> -> vector<8x128xf32>
      %c0_109 = arith.constant 0 : index
      %c0_110 = arith.constant 0 : index
      %169 = vector.load %arg7[%c0_109, %c0_110] : memref<1x128xf32, #tpu.memory_space<vmem>>, vector<1x128xf32>
      %170 = vector.broadcast %169 : vector<1x128xf32> to vector<8x128xf32>
      %171 = arith.addf %168, %170 : vector<8x128xf32>
      %c0_111 = arith.constant 0 : index
      %c0_112 = arith.constant 0 : index
      %172 = vector.load %arg8[%c0_111, %c0_112] : memref<8x128xf32, #tpu.memory_space<vmem>>, vector<8x128xf32>
      tpu.vector_store %arg8[%c0_111, %c0_112], %171 {strides = array<i32>} : memref<8x128xf32, #tpu.memory_space<vmem>>, vector<8x128xf32>,
    } else {
    }
    return
  }
  func.func @transform_0(%arg0: i32, %arg1: i32) -> (i32, i32, i32) {
    %c0_i32 = arith.constant 0 : i32
    %c0_i32_0 = arith.constant 0 : i32
    return %arg1, %arg0, %c0_i32 : i32, i32, i32
  }
  func.func @transform_1(%arg0: i32, %arg1: i32) -> (i32, i32) {
    %c0_i32 = arith.constant 0 : i32
    %c0_i32_0 = arith.constant 0 : i32
    %c0_i32_1 = arith.constant 0 : i32
    return %c0_i32, %c0_i32_0 : i32, i32
  }
  func.func @transform_2(%arg0: i32, %arg1: i32) -> (i32, i32) {
    %c0_i32 = arith.constant 0 : i32
    %c0_i32_0 = arith.constant 0 : i32
    %c0_i32_1 = arith.constant 0 : i32
    return %c0_i32, %c0_i32_0 : i32, i32
  }
  func.func @transform_3(%arg0: i32, %arg1: i32) -> (i32, i32) {
    %c0_i32 = arith.constant 0 : i32
    %c0_i32_0 = arith.constant 0 : i32
    %c0_i32_1 = arith.constant 0 : i32
    return %c0_i32, %c0_i32_0 : i32, i32
  }
  func.func @transform_4(%arg0: i32, %arg1: i32) -> (i32, i32) {
    %c0_i32 = arith.constant 0 : i32
    %c0_i32_0 = arith.constant 0 : i32
    %c0_i32_1 = arith.constant 0 : i32
    return %c0_i32, %c0_i32_0 : i32, i32
  }
  func.func @transform_5(%arg0: i32, %arg1: i32) -> (i32, i32) {
    %c0_i32 = arith.constant 0 : i32
    %c0_i32_0 = arith.constant 0 : i32
    %c0_i32_1 = arith.constant 0 : i32
    return %c0_i32, %c0_i32_0 : i32, i32
  }
  func.func @transform_6(%arg0: i32, %arg1: i32) -> (i32, i32) {
    %c0_i32 = arith.constant 0 : i32
    %c0_i32_0 = arith.constant 0 : i32
    return %arg0, %c0_i32 : i32, i32
  }
}

module attributes {stable_mosaic.version = 11 : i64} {
  func.func @lstm_fused_kernel(%arg0: i32, %arg1: i32, %arg2: memref<4x8x16xf32, #tpu.memory_space<vmem>>, %arg3: memref<16x512xf32, #tpu.memory_space<vmem>>, %arg4: memref<128x512xf32, #tpu.memory_space<vmem>>, %arg5: memref<1x512xf32, #tpu.memory_space<vmem>>, %arg6: memref<128x128xf32, #tpu.memory_space<vmem>>, %arg7: memref<1x128xf32, #tpu.memory_space<vmem>>, %arg8: memref<8x128xf32, #tpu.memory_space<vmem>>, %arg9: memref<32x512xf32, #tpu.memory_space<vmem>>, %arg10: memref<8x128xf32, #tpu.memory_space<vmem>>, %arg11: memref<8x128xf32, #tpu.memory_space<vmem>>) attributes {dimension_semantics = [#tpu.dimension_semantics<parallel>, #tpu.dimension_semantics<arbitrary>], iteration_bounds = array<i64: 1, 2>, scalar_prefetch = 0 : i64, scratch_operands = 3 : i64, tpu.core_type = #tpu.core_type<tc>, window_params = [{transform_indices = @transform_0, window_bounds = array<i64: 4, 8, 16>}, {pipeline_mode = #tpu.pipeline_mode<synchronous>, transform_indices = @transform_1, window_bounds = array<i64: 16, 512>}, {pipeline_mode = #tpu.pipeline_mode<synchronous>, transform_indices = @transform_2, window_bounds = array<i64: 128, 512>}, {pipeline_mode = #tpu.pipeline_mode<synchronous>, transform_indices = @transform_3, window_bounds = array<i64: 1, 512>}, {pipeline_mode = #tpu.pipeline_mode<synchronous>, transform_indices = @transform_4, window_bounds = array<i64: 128, 128>}, {pipeline_mode = #tpu.pipeline_mode<synchronous>, transform_indices = @transform_5, window_bounds = array<i64: 1, 128>}, {transform_indices = @transform_6, window_bounds = array<i64: 8, 128>}]} {
    %c0_i32 = arith.constant 0 : i32
    %0 = arith.cmpi eq, %arg1, %c0_i32 : i32
    %1 = arith.extui %0 : i1 to i32
    %c0_i32_0 = arith.constant 0 : i32
    %2 = arith.cmpi ne, %1, %c0_i32_0 : i32
    scf.if %2 {
      %cst_104 = arith.constant 0.000000e+00 : f32
      %166 = vector.broadcast %cst_104 : f32 to vector<8x128xf32>
      %c0_105 = arith.constant 0 : index
      %c0_106 = arith.constant 0 : index
      %167 = vector.load %arg10[%c0_105, %c0_106] : memref<8x128xf32, #tpu.memory_space<vmem>>, vector<8x128xf32>
      tpu.vector_store %arg10[%c0_105, %c0_106], %166 {strides = array<i32>} : memref<8x128xf32, #tpu.memory_space<vmem>>, vector<8x128xf32>,
      %cst_107 = arith.constant 0.000000e+00 : f32
      %168 = vector.broadcast %cst_107 : f32 to vector<8x128xf32>
      %c0_108 = arith.constant 0 : index
      %c0_109 = arith.constant 0 : index
      %169 = vector.load %arg11[%c0_108, %c0_109] : memref<8x128xf32, #tpu.memory_space<vmem>>, vector<8x128xf32>
      tpu.vector_store %arg11[%c0_108, %c0_109], %168 {strides = array<i32>} : memref<8x128xf32, #tpu.memory_space<vmem>>, vector<8x128xf32>,
    } else {
    }
    %c0 = arith.constant 0 : index
    %c0_1 = arith.constant 0 : index
    %c0_2 = arith.constant 0 : index
    %3 = vector.load %arg2[%c0, %c0_1, %c0_2] : memref<4x8x16xf32, #tpu.memory_space<vmem>>, vector<4x8x16xf32>
    %4 = vector.shape_cast %3 : vector<4x8x16xf32> to vector<32x16xf32>
    %c0_3 = arith.constant 0 : index
    %c0_4 = arith.constant 0 : index
    %5 = vector.load %arg3[%c0_3, %c0_4] : memref<16x512xf32, #tpu.memory_space<vmem>>, vector<16x512xf32>
    %cst = arith.constant dense<0.000000e+00> : vector<32x512xf32>
    %6 = tpu.matmul %4, %5, %cst {dimension_numbers = #tpu.dot_dimension_numbers<[1], [0], [0], [1], [0, 0, 1, 1], [], []>} : vector<32x16xf32>, vector<16x512xf32>, vector<32x512xf32> -> vector<32x512xf32>
    %c0_5 = arith.constant 0 : index
    %c0_6 = arith.constant 0 : index
    %7 = vector.load %arg5[%c0_5, %c0_6] : memref<1x512xf32, #tpu.memory_space<vmem>>, vector<1x512xf32>
    %8 = vector.broadcast %7 : vector<1x512xf32> to vector<32x512xf32>
    %9 = arith.addf %6, %8 : vector<32x512xf32>
    %c0_7 = arith.constant 0 : index
    %c0_8 = arith.constant 0 : index
    %10 = vector.load %arg9[%c0_7, %c0_8] : memref<32x512xf32, #tpu.memory_space<vmem>>, vector<32x512xf32>
    tpu.vector_store %arg9[%c0_7, %c0_8], %9 {strides = array<i32>} : memref<32x512xf32, #tpu.memory_space<vmem>>, vector<32x512xf32>,
    %c0_9 = arith.constant 0 : index
    %c0_10 = arith.constant 0 : index
    %11 = vector.load %arg10[%c0_9, %c0_10] : memref<8x128xf32, #tpu.memory_space<vmem>>, vector<8x128xf32>
    %c0_11 = arith.constant 0 : index
    %c0_12 = arith.constant 0 : index
    %12 = vector.load %arg11[%c0_11, %c0_12] : memref<8x128xf32, #tpu.memory_space<vmem>>, vector<8x128xf32>
    %c0_13 = arith.constant 0 : index
    %c0_14 = arith.constant 0 : index
    %13 = vector.load %arg9[%c0_13, %c0_14] : memref<32x512xf32, #tpu.memory_space<vmem>>, vector<8x128xf32>
    %c0_15 = arith.constant 0 : index
    %c0_16 = arith.constant 0 : index
    %14 = vector.load %arg4[%c0_15, %c0_16] : memref<128x512xf32, #tpu.memory_space<vmem>>, vector<128x128xf32>
    %cst_17 = arith.constant dense<0.000000e+00> : vector<8x128xf32>
    %15 = tpu.matmul %11, %14, %cst_17 {dimension_numbers = #tpu.dot_dimension_numbers<[1], [0], [0], [1], [0, 0, 1, 1], [], []>} : vector<8x128xf32>, vector<128x128xf32>, vector<8x128xf32> -> vector<8x128xf32>
    %16 = arith.addf %13, %15 : vector<8x128xf32>
    %17 = arith.negf %16 : vector<8x128xf32>
    %18 = math.exp %17 : vector<8x128xf32>
    %cst_18 = arith.constant 1.000000e+00 : f32
    %19 = vector.broadcast %cst_18 : f32 to vector<8x128xf32>
    %20 = arith.addf %19, %18 : vector<8x128xf32>
    %21 = arith.divf %19, %20 : vector<8x128xf32>
    %c0_19 = arith.constant 0 : index
    %c128 = arith.constant 128 : index
    %22 = vector.load %arg9[%c0_19, %c128] : memref<32x512xf32, #tpu.memory_space<vmem>>, vector<8x128xf32>
    %c0_20 = arith.constant 0 : index
    %c128_21 = arith.constant 128 : index
    %23 = vector.load %arg4[%c0_20, %c128_21] : memref<128x512xf32, #tpu.memory_space<vmem>>, vector<128x128xf32>
    %cst_22 = arith.constant dense<0.000000e+00> : vector<8x128xf32>
    %24 = tpu.matmul %11, %23, %cst_22 {dimension_numbers = #tpu.dot_dimension_numbers<[1], [0], [0], [1], [0, 0, 1, 1], [], []>} : vector<8x128xf32>, vector<128x128xf32>, vector<8x128xf32> -> vector<8x128xf32>
    %25 = arith.addf %22, %24 : vector<8x128xf32>
    %26 = arith.negf %25 : vector<8x128xf32>
    %27 = math.exp %26 : vector<8x128xf32>
    %cst_23 = arith.constant 1.000000e+00 : f32
    %28 = vector.broadcast %cst_23 : f32 to vector<8x128xf32>
    %29 = arith.addf %28, %27 : vector<8x128xf32>
    %30 = arith.divf %28, %29 : vector<8x128xf32>
    %c0_24 = arith.constant 0 : index
    %c256 = arith.constant 256 : index
    %31 = vector.load %arg9[%c0_24, %c256] : memref<32x512xf32, #tpu.memory_space<vmem>>, vector<8x128xf32>
    %c0_25 = arith.constant 0 : index
    %c256_26 = arith.constant 256 : index
    %32 = vector.load %arg4[%c0_25, %c256_26] : memref<128x512xf32, #tpu.memory_space<vmem>>, vector<128x128xf32>
    %cst_27 = arith.constant dense<0.000000e+00> : vector<8x128xf32>
    %33 = tpu.matmul %11, %32, %cst_27 {dimension_numbers = #tpu.dot_dimension_numbers<[1], [0], [0], [1], [0, 0, 1, 1], [], []>} : vector<8x128xf32>, vector<128x128xf32>, vector<8x128xf32> -> vector<8x128xf32>
    %34 = arith.addf %31, %33 : vector<8x128xf32>
    %35 = math.tanh %34 : vector<8x128xf32>
    %c0_28 = arith.constant 0 : index
    %c384 = arith.constant 384 : index
    %36 = vector.load %arg9[%c0_28, %c384] : memref<32x512xf32, #tpu.memory_space<vmem>>, vector<8x128xf32>
    %c0_29 = arith.constant 0 : index
    %c384_30 = arith.constant 384 : index
    %37 = vector.load %arg4[%c0_29, %c384_30] : memref<128x512xf32, #tpu.memory_space<vmem>>, vector<128x128xf32>
    %cst_31 = arith.constant dense<0.000000e+00> : vector<8x128xf32>
    %38 = tpu.matmul %11, %37, %cst_31 {dimension_numbers = #tpu.dot_dimension_numbers<[1], [0], [0], [1], [0, 0, 1, 1], [], []>} : vector<8x128xf32>, vector<128x128xf32>, vector<8x128xf32> -> vector<8x128xf32>
    %39 = arith.addf %36, %38 : vector<8x128xf32>
    %40 = arith.negf %39 : vector<8x128xf32>
    %41 = math.exp %40 : vector<8x128xf32>
    %cst_32 = arith.constant 1.000000e+00 : f32
    %42 = vector.broadcast %cst_32 : f32 to vector<8x128xf32>
    %43 = arith.addf %42, %41 : vector<8x128xf32>
    %44 = arith.divf %42, %43 : vector<8x128xf32>
    %45 = arith.mulf %30, %12 : vector<8x128xf32>
    %46 = arith.mulf %21, %35 : vector<8x128xf32>
    %47 = arith.addf %45, %46 : vector<8x128xf32>
    %48 = math.tanh %47 : vector<8x128xf32>
    %49 = arith.mulf %44, %48 : vector<8x128xf32>
    %c8 = arith.constant 8 : index
    %c0_33 = arith.constant 0 : index
    %50 = vector.load %arg9[%c8, %c0_33] : memref<32x512xf32, #tpu.memory_space<vmem>>, vector<8x128xf32>
    %c0_34 = arith.constant 0 : index
    %c0_35 = arith.constant 0 : index
    %51 = vector.load %arg4[%c0_34, %c0_35] : memref<128x512xf32, #tpu.memory_space<vmem>>, vector<128x128xf32>
    %cst_36 = arith.constant dense<0.000000e+00> : vector<8x128xf32>
    %52 = tpu.matmul %49, %51, %cst_36 {dimension_numbers = #tpu.dot_dimension_numbers<[1], [0], [0], [1], [0, 0, 1, 1], [], []>} : vector<8x128xf32>, vector<128x128xf32>, vector<8x128xf32> -> vector<8x128xf32>
    %53 = arith.addf %50, %52 : vector<8x128xf32>
    %54 = arith.negf %53 : vector<8x128xf32>
    %55 = math.exp %54 : vector<8x128xf32>
    %cst_37 = arith.constant 1.000000e+00 : f32
    %56 = vector.broadcast %cst_37 : f32 to vector<8x128xf32>
    %57 = arith.addf %56, %55 : vector<8x128xf32>
    %58 = arith.divf %56, %57 : vector<8x128xf32>
    %c8_38 = arith.constant 8 : index
    %c128_39 = arith.constant 128 : index
    %59 = vector.load %arg9[%c8_38, %c128_39] : memref<32x512xf32, #tpu.memory_space<vmem>>, vector<8x128xf32>
    %c0_40 = arith.constant 0 : index
    %c128_41 = arith.constant 128 : index
    %60 = vector.load %arg4[%c0_40, %c128_41] : memref<128x512xf32, #tpu.memory_space<vmem>>, vector<128x128xf32>
    %cst_42 = arith.constant dense<0.000000e+00> : vector<8x128xf32>
    %61 = tpu.matmul %49, %60, %cst_42 {dimension_numbers = #tpu.dot_dimension_numbers<[1], [0], [0], [1], [0, 0, 1, 1], [], []>} : vector<8x128xf32>, vector<128x128xf32>, vector<8x128xf32> -> vector<8x128xf32>
    %62 = arith.addf %59, %61 : vector<8x128xf32>
    %63 = arith.negf %62 : vector<8x128xf32>
    %64 = math.exp %63 : vector<8x128xf32>
    %cst_43 = arith.constant 1.000000e+00 : f32
    %65 = vector.broadcast %cst_43 : f32 to vector<8x128xf32>
    %66 = arith.addf %65, %64 : vector<8x128xf32>
    %67 = arith.divf %65, %66 : vector<8x128xf32>
    %c8_44 = arith.constant 8 : index
    %c256_45 = arith.constant 256 : index
    %68 = vector.load %arg9[%c8_44, %c256_45] : memref<32x512xf32, #tpu.memory_space<vmem>>, vector<8x128xf32>
    %c0_46 = arith.constant 0 : index
    %c256_47 = arith.constant 256 : index
    %69 = vector.load %arg4[%c0_46, %c256_47] : memref<128x512xf32, #tpu.memory_space<vmem>>, vector<128x128xf32>
    %cst_48 = arith.constant dense<0.000000e+00> : vector<8x128xf32>
    %70 = tpu.matmul %49, %69, %cst_48 {dimension_numbers = #tpu.dot_dimension_numbers<[1], [0], [0], [1], [0, 0, 1, 1], [], []>} : vector<8x128xf32>, vector<128x128xf32>, vector<8x128xf32> -> vector<8x128xf32>
    %71 = arith.addf %68, %70 : vector<8x128xf32>
    %72 = math.tanh %71 : vector<8x128xf32>
    %c8_49 = arith.constant 8 : index
    %c384_50 = arith.constant 384 : index
    %73 = vector.load %arg9[%c8_49, %c384_50] : memref<32x512xf32, #tpu.memory_space<vmem>>, vector<8x128xf32>
    %c0_51 = arith.constant 0 : index
    %c384_52 = arith.constant 384 : index
    %74 = vector.load %arg4[%c0_51, %c384_52] : memref<128x512xf32, #tpu.memory_space<vmem>>, vector<128x128xf32>
    %cst_53 = arith.constant dense<0.000000e+00> : vector<8x128xf32>
    %75 = tpu.matmul %49, %74, %cst_53 {dimension_numbers = #tpu.dot_dimension_numbers<[1], [0], [0], [1], [0, 0, 1, 1], [], []>} : vector<8x128xf32>, vector<128x128xf32>, vector<8x128xf32> -> vector<8x128xf32>
    %76 = arith.addf %73, %75 : vector<8x128xf32>
    %77 = arith.negf %76 : vector<8x128xf32>
    %78 = math.exp %77 : vector<8x128xf32>
    %cst_54 = arith.constant 1.000000e+00 : f32
    %79 = vector.broadcast %cst_54 : f32 to vector<8x128xf32>
    %80 = arith.addf %79, %78 : vector<8x128xf32>
    %81 = arith.divf %79, %80 : vector<8x128xf32>
    %82 = arith.mulf %67, %47 : vector<8x128xf32>
    %83 = arith.mulf %58, %72 : vector<8x128xf32>
    %84 = arith.addf %82, %83 : vector<8x128xf32>
    %85 = math.tanh %84 : vector<8x128xf32>
    %86 = arith.mulf %81, %85 : vector<8x128xf32>
    %c16 = arith.constant 16 : index
    %c0_55 = arith.constant 0 : index
    %87 = vector.load %arg9[%c16, %c0_55] : memref<32x512xf32, #tpu.memory_space<vmem>>, vector<8x128xf32>
    %c0_56 = arith.constant 0 : index
    %c0_57 = arith.constant 0 : index
    %88 = vector.load %arg4[%c0_56, %c0_57] : memref<128x512xf32, #tpu.memory_space<vmem>>, vector<128x128xf32>
    %cst_58 = arith.constant dense<0.000000e+00> : vector<8x128xf32>
    %89 = tpu.matmul %86, %88, %cst_58 {dimension_numbers = #tpu.dot_dimension_numbers<[1], [0], [0], [1], [0, 0, 1, 1], [], []>} : vector<8x128xf32>, vector<128x128xf32>, vector<8x128xf32> -> vector<8x128xf32>
    %90 = arith.addf %87, %89 : vector<8x128xf32>
    %91 = arith.negf %90 : vector<8x128xf32>
    %92 = math.exp %91 : vector<8x128xf32>
    %cst_59 = arith.constant 1.000000e+00 : f32
    %93 = vector.broadcast %cst_59 : f32 to vector<8x128xf32>
    %94 = arith.addf %93, %92 : vector<8x128xf32>
    %95 = arith.divf %93, %94 : vector<8x128xf32>
    %c16_60 = arith.constant 16 : index
    %c128_61 = arith.constant 128 : index
    %96 = vector.load %arg9[%c16_60, %c128_61] : memref<32x512xf32, #tpu.memory_space<vmem>>, vector<8x128xf32>
    %c0_62 = arith.constant 0 : index
    %c128_63 = arith.constant 128 : index
    %97 = vector.load %arg4[%c0_62, %c128_63] : memref<128x512xf32, #tpu.memory_space<vmem>>, vector<128x128xf32>
    %cst_64 = arith.constant dense<0.000000e+00> : vector<8x128xf32>
    %98 = tpu.matmul %86, %97, %cst_64 {dimension_numbers = #tpu.dot_dimension_numbers<[1], [0], [0], [1], [0, 0, 1, 1], [], []>} : vector<8x128xf32>, vector<128x128xf32>, vector<8x128xf32> -> vector<8x128xf32>
    %99 = arith.addf %96, %98 : vector<8x128xf32>
    %100 = arith.negf %99 : vector<8x128xf32>
    %101 = math.exp %100 : vector<8x128xf32>
    %cst_65 = arith.constant 1.000000e+00 : f32
    %102 = vector.broadcast %cst_65 : f32 to vector<8x128xf32>
    %103 = arith.addf %102, %101 : vector<8x128xf32>
    %104 = arith.divf %102, %103 : vector<8x128xf32>
    %c16_66 = arith.constant 16 : index
    %c256_67 = arith.constant 256 : index
    %105 = vector.load %arg9[%c16_66, %c256_67] : memref<32x512xf32, #tpu.memory_space<vmem>>, vector<8x128xf32>
    %c0_68 = arith.constant 0 : index
    %c256_69 = arith.constant 256 : index
    %106 = vector.load %arg4[%c0_68, %c256_69] : memref<128x512xf32, #tpu.memory_space<vmem>>, vector<128x128xf32>
    %cst_70 = arith.constant dense<0.000000e+00> : vector<8x128xf32>
    %107 = tpu.matmul %86, %106, %cst_70 {dimension_numbers = #tpu.dot_dimension_numbers<[1], [0], [0], [1], [0, 0, 1, 1], [], []>} : vector<8x128xf32>, vector<128x128xf32>, vector<8x128xf32> -> vector<8x128xf32>
    %108 = arith.addf %105, %107 : vector<8x128xf32>
    %109 = math.tanh %108 : vector<8x128xf32>
    %c16_71 = arith.constant 16 : index
    %c384_72 = arith.constant 384 : index
    %110 = vector.load %arg9[%c16_71, %c384_72] : memref<32x512xf32, #tpu.memory_space<vmem>>, vector<8x128xf32>
    %c0_73 = arith.constant 0 : index
    %c384_74 = arith.constant 384 : index
    %111 = vector.load %arg4[%c0_73, %c384_74] : memref<128x512xf32, #tpu.memory_space<vmem>>, vector<128x128xf32>
    %cst_75 = arith.constant dense<0.000000e+00> : vector<8x128xf32>
    %112 = tpu.matmul %86, %111, %cst_75 {dimension_numbers = #tpu.dot_dimension_numbers<[1], [0], [0], [1], [0, 0, 1, 1], [], []>} : vector<8x128xf32>, vector<128x128xf32>, vector<8x128xf32> -> vector<8x128xf32>
    %113 = arith.addf %110, %112 : vector<8x128xf32>
    %114 = arith.negf %113 : vector<8x128xf32>
    %115 = math.exp %114 : vector<8x128xf32>
    %cst_76 = arith.constant 1.000000e+00 : f32
    %116 = vector.broadcast %cst_76 : f32 to vector<8x128xf32>
    %117 = arith.addf %116, %115 : vector<8x128xf32>
    %118 = arith.divf %116, %117 : vector<8x128xf32>
    %119 = arith.mulf %104, %84 : vector<8x128xf32>
    %120 = arith.mulf %95, %109 : vector<8x128xf32>
    %121 = arith.addf %119, %120 : vector<8x128xf32>
    %122 = math.tanh %121 : vector<8x128xf32>
    %123 = arith.mulf %118, %122 : vector<8x128xf32>
    %c24 = arith.constant 24 : index
    %c0_77 = arith.constant 0 : index
    %124 = vector.load %arg9[%c24, %c0_77] : memref<32x512xf32, #tpu.memory_space<vmem>>, vector<8x128xf32>
    %c0_78 = arith.constant 0 : index
    %c0_79 = arith.constant 0 : index
    %125 = vector.load %arg4[%c0_78, %c0_79] : memref<128x512xf32, #tpu.memory_space<vmem>>, vector<128x128xf32>
    %cst_80 = arith.constant dense<0.000000e+00> : vector<8x128xf32>
    %126 = tpu.matmul %123, %125, %cst_80 {dimension_numbers = #tpu.dot_dimension_numbers<[1], [0], [0], [1], [0, 0, 1, 1], [], []>} : vector<8x128xf32>, vector<128x128xf32>, vector<8x128xf32> -> vector<8x128xf32>
    %127 = arith.addf %124, %126 : vector<8x128xf32>
    %128 = arith.negf %127 : vector<8x128xf32>
    %129 = math.exp %128 : vector<8x128xf32>
    %cst_81 = arith.constant 1.000000e+00 : f32
    %130 = vector.broadcast %cst_81 : f32 to vector<8x128xf32>
    %131 = arith.addf %130, %129 : vector<8x128xf32>
    %132 = arith.divf %130, %131 : vector<8x128xf32>
    %c24_82 = arith.constant 24 : index
    %c128_83 = arith.constant 128 : index
    %133 = vector.load %arg9[%c24_82, %c128_83] : memref<32x512xf32, #tpu.memory_space<vmem>>, vector<8x128xf32>
    %c0_84 = arith.constant 0 : index
    %c128_85 = arith.constant 128 : index
    %134 = vector.load %arg4[%c0_84, %c128_85] : memref<128x512xf32, #tpu.memory_space<vmem>>, vector<128x128xf32>
    %cst_86 = arith.constant dense<0.000000e+00> : vector<8x128xf32>
    %135 = tpu.matmul %123, %134, %cst_86 {dimension_numbers = #tpu.dot_dimension_numbers<[1], [0], [0], [1], [0, 0, 1, 1], [], []>} : vector<8x128xf32>, vector<128x128xf32>, vector<8x128xf32> -> vector<8x128xf32>
    %136 = arith.addf %133, %135 : vector<8x128xf32>
    %137 = arith.negf %136 : vector<8x128xf32>
    %138 = math.exp %137 : vector<8x128xf32>
    %cst_87 = arith.constant 1.000000e+00 : f32
    %139 = vector.broadcast %cst_87 : f32 to vector<8x128xf32>
    %140 = arith.addf %139, %138 : vector<8x128xf32>
    %141 = arith.divf %139, %140 : vector<8x128xf32>
    %c24_88 = arith.constant 24 : index
    %c256_89 = arith.constant 256 : index
    %142 = vector.load %arg9[%c24_88, %c256_89] : memref<32x512xf32, #tpu.memory_space<vmem>>, vector<8x128xf32>
    %c0_90 = arith.constant 0 : index
    %c256_91 = arith.constant 256 : index
    %143 = vector.load %arg4[%c0_90, %c256_91] : memref<128x512xf32, #tpu.memory_space<vmem>>, vector<128x128xf32>
    %cst_92 = arith.constant dense<0.000000e+00> : vector<8x128xf32>
    %144 = tpu.matmul %123, %143, %cst_92 {dimension_numbers = #tpu.dot_dimension_numbers<[1], [0], [0], [1], [0, 0, 1, 1], [], []>} : vector<8x128xf32>, vector<128x128xf32>, vector<8x128xf32> -> vector<8x128xf32>
    %145 = arith.addf %142, %144 : vector<8x128xf32>
    %146 = math.tanh %145 : vector<8x128xf32>
    %c24_93 = arith.constant 24 : index
    %c384_94 = arith.constant 384 : index
    %147 = vector.load %arg9[%c24_93, %c384_94] : memref<32x512xf32, #tpu.memory_space<vmem>>, vector<8x128xf32>
    %c0_95 = arith.constant 0 : index
    %c384_96 = arith.constant 384 : index
    %148 = vector.load %arg4[%c0_95, %c384_96] : memref<128x512xf32, #tpu.memory_space<vmem>>, vector<128x128xf32>
    %cst_97 = arith.constant dense<0.000000e+00> : vector<8x128xf32>
    %149 = tpu.matmul %123, %148, %cst_97 {dimension_numbers = #tpu.dot_dimension_numbers<[1], [0], [0], [1], [0, 0, 1, 1], [], []>} : vector<8x128xf32>, vector<128x128xf32>, vector<8x128xf32> -> vector<8x128xf32>
    %150 = arith.addf %147, %149 : vector<8x128xf32>
    %151 = arith.negf %150 : vector<8x128xf32>
    %152 = math.exp %151 : vector<8x128xf32>
    %cst_98 = arith.constant 1.000000e+00 : f32
    %153 = vector.broadcast %cst_98 : f32 to vector<8x128xf32>
    %154 = arith.addf %153, %152 : vector<8x128xf32>
    %155 = arith.divf %153, %154 : vector<8x128xf32>
    %156 = arith.mulf %141, %121 : vector<8x128xf32>
    %157 = arith.mulf %132, %146 : vector<8x128xf32>
    %158 = arith.addf %156, %157 : vector<8x128xf32>
    %159 = math.tanh %158 : vector<8x128xf32>
    %160 = arith.mulf %155, %159 : vector<8x128xf32>
    %c0_99 = arith.constant 0 : index
    %c0_100 = arith.constant 0 : index
    %161 = vector.load %arg10[%c0_99, %c0_100] : memref<8x128xf32, #tpu.memory_space<vmem>>, vector<8x128xf32>
    tpu.vector_store %arg10[%c0_99, %c0_100], %160 {strides = array<i32>} : memref<8x128xf32, #tpu.memory_space<vmem>>, vector<8x128xf32>,
    %c0_101 = arith.constant 0 : index
    %c0_102 = arith.constant 0 : index
    %162 = vector.load %arg11[%c0_101, %c0_102] : memref<8x128xf32, #tpu.memory_space<vmem>>, vector<8x128xf32>
    tpu.vector_store %arg11[%c0_101, %c0_102], %158 {strides = array<i32>} : memref<8x128xf32, #tpu.memory_space<vmem>>, vector<8x128xf32>,
    %c1_i32 = arith.constant 1 : i32
    %163 = arith.cmpi eq, %arg1, %c1_i32 : i32
    %164 = arith.extui %163 : i1 to i32
    %c0_i32_103 = arith.constant 0 : i32
    %165 = arith.cmpi ne, %164, %c0_i32_103 : i32
    scf.if %165 {
      %c0_104 = arith.constant 0 : index
      %c0_105 = arith.constant 0 : index
      %166 = vector.load %arg10[%c0_104, %c0_105] : memref<8x128xf32, #tpu.memory_space<vmem>>, vector<8x128xf32>
      %c0_106 = arith.constant 0 : index
      %c0_107 = arith.constant 0 : index
      %167 = vector.load %arg6[%c0_106, %c0_107] : memref<128x128xf32, #tpu.memory_space<vmem>>, vector<128x128xf32>
      %cst_108 = arith.constant dense<0.000000e+00> : vector<8x128xf32>
      %168 = tpu.matmul %166, %167, %cst_108 {dimension_numbers = #tpu.dot_dimension_numbers<[1], [0], [0], [1], [0, 0, 1, 1], [], []>} : vector<8x128xf32>, vector<128x128xf32>, vector<8x128xf32> -> vector<8x128xf32>
      %c0_109 = arith.constant 0 : index
      %c0_110 = arith.constant 0 : index
      %169 = vector.load %arg7[%c0_109, %c0_110] : memref<1x128xf32, #tpu.memory_space<vmem>>, vector<1x128xf32>
      %170 = vector.broadcast %169 : vector<1x128xf32> to vector<8x128xf32>
      %171 = arith.addf %168, %170 : vector<8x128xf32>
      %c0_111 = arith.constant 0 : index
      %c0_112 = arith.constant 0 : index
      %172 = vector.load %arg8[%c0_111, %c0_112] : memref<8x128xf32, #tpu.memory_space<vmem>>, vector<8x128xf32>
      tpu.vector_store %arg8[%c0_111, %c0_112], %171 {strides = array<i32>} : memref<8x128xf32, #tpu.memory_space<vmem>>, vector<8x128xf32>,
    } else {
    }
    return
  }
  func.func @transform_0(%arg0: i32, %arg1: i32) -> (i32, i32, i32) {
    %c0_i32 = arith.constant 0 : i32
    %c0_i32_0 = arith.constant 0 : i32
    return %arg1, %arg0, %c0_i32 : i32, i32, i32
  }
  func.func @transform_1(%arg0: i32, %arg1: i32) -> (i32, i32) {
    %c0_i32 = arith.constant 0 : i32
    %c0_i32_0 = arith.constant 0 : i32
    %c0_i32_1 = arith.constant 0 : i32
    return %c0_i32, %c0_i32_0 : i32, i32
  }
  func.func @transform_2(%arg0: i32, %arg1: i32) -> (i32, i32) {
    %c0_i32 = arith.constant 0 : i32
    %c0_i32_0 = arith.constant 0 : i32
    %c0_i32_1 = arith.constant 0 : i32
    return %c0_i32, %c0_i32_0 : i32, i32
  }
  func.func @transform_3(%arg0: i32, %arg1: i32) -> (i32, i32) {
    %c0_i32 = arith.constant 0 : i32
    %c0_i32_0 = arith.constant 0 : i32
    %c0_i32_1 = arith.constant 0 : i32
    return %c0_i32, %c0_i32_0 : i32, i32
  }
  func.func @transform_4(%arg0: i32, %arg1: i32) -> (i32, i32) {
    %c0_i32 = arith.constant 0 : i32
    %c0_i32_0 = arith.constant 0 : i32
    %c0_i32_1 = arith.constant 0 : i32
    return %c0_i32, %c0_i32_0 : i32, i32
  }
  func.func @transform_5(%arg0: i32, %arg1: i32) -> (i32, i32) {
    %c0_i32 = arith.constant 0 : i32
    %c0_i32_0 = arith.constant 0 : i32
    %c0_i32_1 = arith.constant 0 : i32
    return %c0_i32, %c0_i32_0 : i32, i32
  }
  func.func @transform_6(%arg0: i32, %arg1: i32) -> (i32, i32) {
    %c0_i32 = arith.constant 0 : i32
    %c0_i32_0 = arith.constant 0 : i32
    return %arg0, %c0_i32 : i32, i32
  }
}

</mosaic_0001>

<bundles_post_ra>
// kernel: tpu_custom_call.1
= control target key start
LH: loop header
LB: loop body
LE: loop exit
PB: predicated region body
PF: predicated region fallthrough
CT: control target
= control target key end

     0   :  { %11 = vsyncpa [#allocation6], 0  ;;  %s4359_s0 = inlined_call_operand.hbm [shape: f32[8,8,16], index: 0, kind: input, shape index: {}]   ;;  %s4360_s1 = inlined_call_operand.hbm [shape: f32[16,512], index: 1, kind: input, shape index: {}]   ;;  %s4361_s2 = inlined_call_operand.hbm [shape: f32[128,512], index: 2, kind: input, shape index: {}]   ;;  %s4362_s3 = inlined_call_operand.vmem [shape: f32[1,512], index: 3, kind: input, shape index: {}]   ;;  %s4363_s4 = inlined_call_operand.hbm [shape: f32[128,128], index: 4, kind: input, shape index: {}]   ;;  %s4364_s5 = inlined_call_operand.vmem [shape: f32[1,128], index: 5, kind: input, shape index: {}]   ;;  %s4365_s6 = inlined_call_operand.hbm [shape: f32[8,128], index: 6, kind: output, shape index: {}]  }
   0x1   :  { %13 = vsyncpa [#allocation6 + $0x1], 0 }
   0x2   :  { %14 = vsyncpa [#allocation9], 0 }
   0x3   :  { %15 = vsyncpa [#allocation12], 0 }
   0x4   :  { %16 = vsyncpa [#allocation7], 0  ;;  %s3485_s21 = smov 0   ;;  %s3487_s22 = smov 0  }
   0x5   :  { %s3489_s23 = smov 0   ;;  %s3491_s24 = smov 0  }
   0x6   :  { %s3493_s25 = smov 0   ;;  %s3495_s26 = smov 0  }
   0x7 LB: > { %s4369_s27 = sadd.s32 4294967295, %s3434_s26   ;;  %p56_p0 = scmp.ne.s32.totalorder %s3418_s22, %s3414_s21  ;;  %s3434_s26 = sphi %s3495_s26, %s22_s26   ;;  %s3430_s25 = sphi %s3493_s25, %s4496_s25   ;;  %s3426_s24 = sphi %s3491_s24, %s4495_s24   ;;  %s3422_s23 = sphi %s3489_s23, %s4494_s23   ;;  %s3418_s22 = sphi %s3487_s22, %s4493_s22   ;;  %s3414_s21 = sphi %s3485_s21, %s4492_s21  }
   0x8   : > { %p3517_p1 = scmp.eq.s32.totalorder %s4369_s27, 0  ;;  %p2087_p2 = scmp.ge.s32.totalorder %s3434_s26, 1 }
   0x9   : > { %p198_p3 = scmp.lt.s32.totalorder %s3434_s26, 3  ;;  %s3436_s7 = smov [#allocation8]  }
   0xa   : > { %s4402_s28 = scalar_select %p3517_p1, 1, 0 }
   0xb   : > { %p3525_p4 = por %p3517_p1, %p56_p0  ;;  %p3529_p5 = pnand %p2087_p2, %p198_p3 }
   0xc   : > { %s210_s8 = sshll.u32 %s3436_s7, 4  ;;  %s3437_s10 = smov [#allocation10]   ;;  %s211_s8 = int_to_ptr.vmem [resolvable:$true] %s210_s8 }
   0xd   : > { %s4403_s29 = scalar_select %p3525_p4, 1, 0 }
   0xe   : > { %p3030_p6 = pneg %p3529_p5  ;;  %s223_s11 = sshll.u32 %s3437_s10, 4  ;;  %s224_s11 = int_to_ptr.vmem [resolvable:$true] %s223_s11 }
   0xf   : > { %s3438_s12 = smov [#allocation11]   ;;  %s3253_s14 = scalar_lea.vmem %s211_s8, 1024 }
  0x10   : > { %p3537_p7 = pnand %p3030_p6, %p3517_p1  ;;  %s239_s13 = sshll.u32 %s3438_s12, 4  ;;  %s240_s13 = int_to_ptr.vmem [resolvable:$true] %s239_s13 }
  0x11   : > { %p3254_p9 = scmp.ne.s32.totalorder %s211_s8, %s3253_s14  ;;  %p3261_p12 = scmp.lt.s32.totalorder %s211_s8, %s211_s8 }
  0x12   : > { %p3244_p8 = pneg %p3537_p7  ;;  %p3262_p13 = scmp.lt.s32.totalorder %s3253_s14, %s3253_s14 }
  0x14   : > { %p3256_p10 = pnand %p3254_p9, %p3244_p8  ;;  %p3263_p0 = por %p3262_p13, %p3261_p12 }
  0x16   : > { %p3257_p11 = pneg %p3256_p10 }
  0x18   : > { %p3264_p2 = pnand %p3263_p0, %p3257_p11 }
  0x1a   : > { %3267 = shalt.err (!%p3264_p2)
}
  0x1b   : > { %s3439_s15 = smov 512   ;;  %s3440_s16 = smov 32  }
  0x1c   : > { %3033 = dma.hbm_to_vmem [thread:$0]  (!%p3537_p7), %s4360_s1, 1024, %s211_s8, [#allocation9], %s3439_s15, %s3439_s15, %s3440_s16  }
  0x1d   : > { %s3279_s19 = scalar_lea.vmem %s224_s11, 8192  ;;  %p3287_p10 = scmp.lt.s32.totalorder %s224_s11, %s224_s11 }
  0x1e   : > { %p3280_p3 = scmp.ne.s32.totalorder %s224_s11, %s3279_s19  ;;  %p3288_p1 = scmp.lt.s32.totalorder %s3279_s19, %s3279_s19 }
  0x20   : > { %p3282_p6 = pnand %p3280_p3, %p3244_p8  ;;  %p3289_p12 = por %p3288_p1, %p3287_p10 }
  0x22   : > { %p3283_p9 = pneg %p3282_p6 }
  0x24   : > { %p3290_p11 = pnand %p3289_p12, %p3283_p9 }
  0x26   : > { %3293 = shalt.err (!%p3290_p11)
}
  0x27   : > { %3036 = dma.hbm_to_vmem [thread:$0]  (!%p3537_p7), %s4361_s2, 8192, %s224_s11, [#allocation9], %s3439_s15, %s3439_s15, %s3440_s16  }
  0x28   : > { %s3305_s7 = scalar_lea.vmem %s240_s13, 2048  ;;  %p3313_p3 = scmp.lt.s32.totalorder %s240_s13, %s240_s13 }
  0x29   : > { %p3306_p13 = scmp.ne.s32.totalorder %s240_s13, %s3305_s7  ;;  %p3314_p6 = scmp.lt.s32.totalorder %s3305_s7, %s3305_s7 }
  0x2b   : > { %p3308_p0 = pnand %p3306_p13, %p3244_p8  ;;  %p3315_p4 = por %p3314_p6, %p3313_p3 }
  0x2d   : > { %p3309_p2 = pneg %p3308_p0 }
  0x2f   : > { %p3316_p1 = pnand %p3315_p4, %p3309_p2 }
  0x31   : > { %3319 = shalt.err (!%p3316_p1)
}
  0x32   : > { %s4370_s8 = smov 128   ;;  %s3442_s10 = smov 8  }
  0x33   : > { %3039 = dma.hbm_to_vmem [thread:$0]  (!%p3537_p7), %s4363_s4, 2048, %s240_s13, [#allocation12], %s4370_s8, %s4370_s8, %s3442_s10  }
  0x34   : > { %s31_s14 = sadd.s32 1, %s3430_s25  ;;  %p50_p4 = scmp.ne.s32.totalorder %s3422_s23, %s3418_s22 }
  0x35   : > { %p32_p8 = scmp.ge.s32.totalorder %s31_s14, 2  ;;  %p51_p9 = scmp.eq.s32.totalorder %s3434_s26, 0 }
  0x36   : > { %s43_s15 = sadd.s32 1, %s3422_s23  ;;  %s256_s16 = sand.u32 1, %s3422_s23  }
  0x37   : > { %s4498_s14 = smov (%p32_p8, %s31_s14), 0  ;;  %p52_p10 = por %p51_p9, %p50_p4 }
  0x38   : > { %p3047_p12 = scmp.lt.s32.totalorder %s3434_s26, 2  ;;  %s38_s9 = ssub.s32 %s3430_s25, %s4498_s14 }
  0x39   : > { %s2092_s17 = sshll.u32 %s256_s16, 5  ;;  %p41_p11 = scmp.eq.s32.totalorder %s38_s9, 0 }
  0x3a   : > { %s2127_s18 = sshll.u32 %s3430_s25, 9  ;;  %s260_s19 = scalar_lea.vmem [#allocation5], %s2092_s17 }
  0x3b   : > { %s268_s20 = sshll.u32 %s260_s19, 4  ;;  %s267_s11 = scalar_lea.hbm %s4359_s0, %s2127_s18  ;;  %s269_s20 = int_to_ptr.vmem [resolvable:$true] %s268_s20 }
  0x3c   : > { %s3583_s21 = scalar_select %p41_p11, %s3422_s23, %s43_s15  }
  0x3d   : > { %p3588_p7 = pnand %p3047_p12, %p52_p10  ;;  %s257_s27 = scalar_lea.sflag [#allocation6], %s256_s16 }
  0x3e   : > { %s3333_s8 = scalar_lea.vmem %s269_s20, 512  ;;  %s3443_s9 = smov [#allocation5]  }
  0x3f   : > { %p3322_p13 = pneg %p3588_p7  ;;  %p3334_p0 = scmp.ne.s32.totalorder %s269_s20, %s3333_s8 }
  0x40   : > { %s3338_s15 = sshll.u32 %s3443_s9, 4  ;;  %s3339_s15 = int_to_ptr.vmem [resolvable:$false] %s3338_s15 }
  0x41   : > { %p3336_p2 = pnand %p3334_p0, %p3322_p13  ;;  %s3340_s17 = scalar_lea.vmem %s3339_s15, 1024 }
  0x42   : > { %p3341_p6 = scmp.lt.s32.totalorder %s269_s20, %s3339_s15  ;;  %p3342_p1 = scmp.lt.s32.totalorder %s3340_s17, %s3333_s8 }
  0x43   : > { %p3337_p3 = pneg %p3336_p2 }
  0x44   : > { %p3343_p4 = por %p3342_p1, %p3341_p6 }
  0x46   : > { %p3344_p8 = pnand %p3343_p4, %p3337_p3 }
  0x48   : > { %3347 = shalt.err (!%p3344_p8)
}
  0x49   : > { %s4407_s18 = smov 128   ;;  %280 = sbr.rel (%p3529_p5) target bundleno = 1440 (0x5a0), region = 44 }
  0x4a   : > { %3043 = dma.hbm_to_vmem [thread:$0]  (!%p3588_p7), %s267_s11, 512, %s269_s20, %s257_s27, %s4407_s18, %s4407_s18, %s3442_s10  }
  0x4e   : > { %s282_s16 = sand.u32 1, %s3418_s22   ;;  %p4408_p9 = scmp.ne.s32.totalorder %s4403_s29, 0 }
  0x4f   : > { %s2096_s19 = sshll.u32 %s282_s16, 5  ;;  %s283_s13 = scalar_lea.sflag [#allocation6], %s282_s16 }
  0x50   : > { %s3602_s7 = scalar_lea.vmem [#allocation5], %s2096_s19 }
  0x51   : > { %3397 = dma.done.wait (%p4408_p9), %s283_s13, 512  }
  0x52   : > { %3399 = vsyncadd (%p4408_p9), %s283_s13, 4294966784  ;;  %p4409_p10 = scmp.ne.s32.totalorder %s4402_s28, 0 }
  0x54   : > { %3401 = dma.done.wait (%p4409_p10), [#allocation9], 9216  }
  0x55   : > { %3403 = vsyncadd (%p4409_p10), [#allocation9], 4294958080 }
  0x56   : > { %3405 = dma.done.wait (%p4409_p10), [#allocation12], 2048  }
  0x57   : > { %3407 = vsyncadd (%p4409_p10), [#allocation12], 4294965248  ;;  %p2100_p5 = scmp.ne.s32.totalorder %s3426_s24, 0 }
  0x59   : > { %326 = sbr.rel (%p2100_p5) target bundleno = 96 (0x60), region = 64 }
  0x5e   : > { %v3444_v0 = vmov 0.0  }
  0x5f   : > { %327 = vst [vmem:[#allocation3] sm:$0xff] %v3444_v0  ;;  %328 = vst [vmem:[#allocation4] sm:$0xff] %v3444_v0 }
  0x60 PF: > { %v338_v1 = vld [vmem:[#allocation8 + $0x28] sm:$0xff]  ;;  %v340_v2 = vld [vmem:[#allocation8 + $0x38] sm:$0xff]  ;;  %v337_v3 = vld [vmem:[#allocation8 + $0x20] sm:$0xff]  ;;  %vm363_vm0 = vcmask 130048   ;;  %v4390_v10 = vmov 0.0   ;;  %vm3446_vm1 = vmmov 0  }
  0x61   : > { %404 = vmatprep.subr.mxu0 %v338_v1  ;;  %493 = vmatprep.subr.mxu1 %v340_v2  ;;  %v339_v4 = vld [vmem:[#allocation8 + $0x30] sm:$0xff]  ;;  %v334_v5 = vld [vmem:[#allocation8 + $0x8] sm:$0xff]  ;;  %v336_v6 = vld [vmem:[#allocation8 + $0x18] sm:$0xff]  ;;  %p2121_p12 = scmp.ne.s32.totalorder %s3426_s24, 1 }
  0x62   : > { %405 = vmatpush1.msra.mxu0 %v337_v3  ;;  %494 = vmatpush1.msra.mxu1 %v339_v4  ;;  %v333_v7 = vld [vmem:[#allocation8] sm:$0xff]  ;;  %v335_v8 = vld [vmem:[#allocation8 + $0x10] sm:$0xff]  ;;  %v3622_v12 = vld [vmem:[#allocation10 + $0x1e8] sm:$0xff] }
  0x63   : > { %406 = vmatprep.subr.mxu0 %v334_v5  ;;  %495 = vmatprep.subr.mxu1 %v336_v6  ;;  %v329_v9 = vld [vmem:[%s3602_s7] sm:$0xff]  ;;  %v3630_v14 = vld [vmem:[#allocation10 + $0x1c8] sm:$0xff]  ;;  %v331_v34 = vld [vmem:[%s3602_s7 + $0x10] sm:$0xff] }
  0x64   : > { %407 = vmatpush1.msra.mxu0 %v333_v7  ;;  %440 = vmatprep.mubr.f32.mxu0 %v4390_v10  ;;  %v3620_v11 = vld [vmem:[#allocation10 + $0x1e0] sm:$0xff]  ;;  %v3638_v16 = vld [vmem:[#allocation10 + $0x1a8] sm:$0xff]  ;;  %v332_v39 = vld [vmem:[%s3602_s7 + $0x18] sm:$0xff] }
  0x65   : > { %496 = vmatpush1.msra.mxu1 %v335_v8  ;;  %529 = vmatprep.mubr.f32.mxu1 %v4390_v10  ;;  %v3628_v13 = vld [vmem:[#allocation10 + $0x1c0] sm:$0xff]  ;;  %v3646_v18 = vld [vmem:[#allocation10 + $0x188] sm:$0xff]  ;;  %v3771_v47 = vld [vmem:[#allocation10 + $0x1f0] sm:$0xff] }
  0x66   : > { %2101 = vmatmul.mubr.msk.f32.vlgmr.msra.gmra.mxu0 %vm363_vm0, %v329_v9  ;;  %2105 = vmatmul.mubr.msk.f32.vlgmr.msra.gmra.mxu1 %vm363_vm0, %v329_v9  ;;  %v3636_v15 = vld [vmem:[#allocation10 + $0x1a0] sm:$0xff]  ;;  %4410 = vst [vmem:[#allocation18_spill] sm:$0xff] %v3646_v18  ;;  %v3654_v20 = vld [vmem:[#allocation10 + $0x168] sm:$0xff]  ;;  %v3763_v46 = vld [vmem:[#allocation3] sm:$0xff] }
  0x67   : > { %2417 = vmatprep.subr.mxu0 %v4390_v10  ;;  %2452 = vmatprep.subr.mxu1 %v4390_v10  ;;  %v3644_v17 = vld [vmem:[#allocation10 + $0x180] sm:$0xff]  ;;  %4412 = vst [vmem:[#allocation20_spill] sm:$0xff] %v3654_v20  ;;  %v3662_v22 = vld [vmem:[#allocation10 + $0x148] sm:$0xff]  ;;  %v3773_v48 = vld [vmem:[#allocation10 + $0x1f8] sm:$0xff] }
  0x68   : > { %2418 = vmatpush3.msra.mxu0 %v3620_v11  ;;  %2453 = vmatpush3.msra.mxu1 %v3622_v12  ;;  %v3652_v19 = vld [vmem:[#allocation10 + $0x160] sm:$0xff]  ;;  %4414 = vst [vmem:[#allocation22_spill] sm:$0xff] %v3662_v22  ;;  %v3670_v24 = vld [vmem:[#allocation10 + $0x128] sm:$0xff]  ;;  %v3779_v49 = vld [vmem:[#allocation10 + $0x1d0] sm:$0xff] }
  0x69   : > { %2419 = vmatprep.subr.mxu0 %v4390_v10  ;;  %2454 = vmatprep.subr.mxu1 %v4390_v10  ;;  %4411 = vst [vmem:[#allocation19_spill] sm:$0xff] %v3652_v19  ;;  %v3660_v21 = vld [vmem:[#allocation10 + $0x140] sm:$0xff]  ;;  %4416 = vst [vmem:[#allocation24_spill] sm:$0xff] %v3670_v24  ;;  %v3678_v26 = vld [vmem:[#allocation10 + $0x108] sm:$0xff] }
  0x6a   : > { %2420 = vmatpush3.msra.mxu0 %v3628_v13  ;;  %2455 = vmatpush3.msra.mxu1 %v3630_v14  ;;  %4413 = vst [vmem:[#allocation21_spill] sm:$0xff] %v3660_v21  ;;  %v3668_v23 = vld [vmem:[#allocation10 + $0x120] sm:$0xff]  ;;  %4418 = vst [vmem:[#allocation26_spill] sm:$0xff] %v3678_v26  ;;  %v3686_v28 = vld [vmem:[#allocation10 + $0xe8] sm:$0xff] }
  0x6b   : > { %2421 = vmatprep.subr.mxu0 %v4390_v10  ;;  %2456 = vmatprep.subr.mxu1 %v4390_v10  ;;  %4415 = vst [vmem:[#allocation23_spill] sm:$0xff] %v3668_v23  ;;  %v3676_v25 = vld [vmem:[#allocation10 + $0x100] sm:$0xff]  ;;  %4420 = vst [vmem:[#allocation28_spill] sm:$0xff] %v3686_v28  ;;  %v330_v29 = vld [vmem:[%s3602_s7 + $0x8] sm:$0xff] }
  0x6c   : > { %2422 = vmatpush3.msra.mxu0 %v3636_v15  ;;  %2457 = vmatpush3.msra.mxu1 %v3638_v16  ;;  %4417 = vst [vmem:[#allocation25_spill] sm:$0xff] %v3676_v25  ;;  %v3684_v27 = vld [vmem:[#allocation10 + $0xe0] sm:$0xff]  ;;  %v3699_v31 = vld [vmem:[#allocation10 + $0xc8] sm:$0xff]  ;;  %v3781_v50 = vld [vmem:[#allocation10 + $0x1d8] sm:$0xff] }
  0x6d   : > { %2423 = vmatprep.subr.mxu0 %v4390_v10  ;;  %2458 = vmatprep.subr.mxu1 %v4390_v10  ;;  %4419 = vst [vmem:[#allocation27_spill] sm:$0xff] %v3684_v27  ;;  %v3697_v30 = vld [vmem:[#allocation10 + $0xc0] sm:$0xff]  ;;  %4422 = vst [vmem:[#allocation30_spill] sm:$0xff] %v3699_v31  ;;  %v3707_v33 = vld [vmem:[#allocation10 + $0xa8] sm:$0xff] }
  0x6e   : > { %2424 = vmatpush3.msra.mxu0 %v3644_v17  ;;  %2459 = vmatpush3.msra.mxu1 %v3646_v18  ;;  %4421 = vst [vmem:[#allocation29_spill] sm:$0xff] %v3697_v30  ;;  %v3705_v32 = vld [vmem:[#allocation10 + $0xa0] sm:$0xff]  ;;  %4424 = vst [vmem:[#allocation32_spill] sm:$0xff] %v3707_v33  ;;  %v3720_v36 = vld [vmem:[#allocation10 + $0x88] sm:$0xff] }
  0x6f   : > { %2425 = vmatprep.subr.mxu0 %v4390_v10  ;;  %2460 = vmatprep.subr.mxu1 %v4390_v10  ;;  %4423 = vst [vmem:[#allocation31_spill] sm:$0xff] %v3705_v32  ;;  %v3718_v35 = vld [vmem:[#allocation10 + $0x80] sm:$0xff]  ;;  %4426 = vst [vmem:[#allocation34_spill] sm:$0xff] %v3720_v36  ;;  %v3728_v38 = vld [vmem:[#allocation10 + $0x68] sm:$0xff] }
  0x70   : > { %2426 = vmatpush3.msra.mxu0 %v3652_v19  ;;  %2461 = vmatpush3.msra.mxu1 %v3654_v20  ;;  %4425 = vst [vmem:[#allocation33_spill] sm:$0xff] %v3718_v35  ;;  %v3726_v37 = vld [vmem:[#allocation10 + $0x60] sm:$0xff]  ;;  %4428 = vst [vmem:[#allocation36_spill] sm:$0xff] %v3728_v38  ;;  %v3741_v41 = vld [vmem:[#allocation10 + $0x48] sm:$0xff] }
  0x71   : > { %2427 = vmatprep.subr.mxu0 %v4390_v10  ;;  %2462 = vmatprep.subr.mxu1 %v4390_v10  ;;  %4427 = vst [vmem:[#allocation35_spill] sm:$0xff] %v3726_v37  ;;  %v3739_v40 = vld [vmem:[#allocation10 + $0x40] sm:$0xff]  ;;  %4430 = vst [vmem:[#allocation38_spill] sm:$0xff] %v3741_v41  ;;  %v3749_v43 = vld [vmem:[#allocation10 + $0x28] sm:$0xff] }
  0x72   : > { %2428 = vmatpush3.msra.mxu0 %v3660_v21  ;;  %2463 = vmatpush3.msra.mxu1 %v3662_v22  ;;  %4429 = vst [vmem:[#allocation37_spill] sm:$0xff] %v3739_v40  ;;  %v3747_v42 = vld [vmem:[#allocation10 + $0x20] sm:$0xff]  ;;  %4432 = vst [vmem:[#allocation40_spill] sm:$0xff] %v3749_v43  ;;  %v3759_v45 = vld [vmem:[#allocation10 + $0x8] sm:$0xff] }
  0x73   : > { %2429 = vmatprep.subr.mxu0 %v4390_v10  ;;  %2464 = vmatprep.subr.mxu1 %v4390_v10  ;;  %4431 = vst [vmem:[#allocation39_spill] sm:$0xff] %v3747_v42  ;;  %v3755_v44 = vld [vmem:[#allocation10] sm:$0xff]  ;;  %4434 = vst [vmem:[#allocation42_spill] sm:$0xff] %v3759_v45  ;;  %v3787_v51 = vld [vmem:[#allocation10 + $0x1b0] sm:$0xff] }
  0x74   : > { %2430 = vmatpush3.msra.mxu0 %v3668_v23  ;;  %2465 = vmatpush3.msra.mxu1 %v3670_v24  ;;  %4433 = vst [vmem:[#allocation41_spill] sm:$0xff] %v3755_v44  ;;  %v3789_v52 = vld [vmem:[#allocation10 + $0x1b8] sm:$0xff]  ;;  %v3795_v53 = vld [vmem:[#allocation10 + $0x190] sm:$0xff] }
  0x75   : > { %2431 = vmatprep.subr.mxu0 %v4390_v10  ;;  %2466 = vmatprep.subr.mxu1 %v4390_v10  ;;  %v3797_v54 = vld [vmem:[#allocation10 + $0x198] sm:$0xff]  ;;  %v3803_v55 = vld [vmem:[#allocation10 + $0x170] sm:$0xff] }
  0x76   : > { %2432 = vmatpush3.msra.mxu0 %v3676_v25  ;;  %2467 = vmatpush3.msra.mxu1 %v3678_v26  ;;  %v3805_v56 = vld [vmem:[#allocation10 + $0x178] sm:$0xff]  ;;  %v3811_v57 = vld [vmem:[#allocation10 + $0x150] sm:$0xff] }
  0x77   : > { %2433 = vmatprep.subr.mxu0 %v4390_v10  ;;  %2468 = vmatprep.subr.mxu1 %v4390_v10  ;;  %v3813_v58 = vld [vmem:[#allocation10 + $0x158] sm:$0xff]  ;;  %v3819_v59 = vld [vmem:[#allocation10 + $0x130] sm:$0xff] }
  0x78   : > { %2434 = vmatpush3.msra.mxu0 %v3684_v27  ;;  %2469 = vmatpush3.msra.mxu1 %v3686_v28  ;;  %v3821_v60 = vld [vmem:[#allocation10 + $0x138] sm:$0xff]  ;;  %v3827_v61 = vld [vmem:[#allocation10 + $0x110] sm:$0xff] }
  0x79   : > { %446 = vmatprep.mubr.f32.mxu0 %v4390_v10  ;;  %535 = vmatprep.mubr.f32.mxu1 %v4390_v10  ;;  %v3829_v62 = vld [vmem:[#allocation10 + $0x118] sm:$0xff]  ;;  %v3835_v63 = vld [vmem:[#allocation10 + $0xf0] sm:$0xff] }
  0x7a   : > { %2435 = vmatprep.subr.mxu0 %v4390_v10  ;;  %2470 = vmatprep.subr.mxu1 %v4390_v10  ;;  %v3837_v0 = vld [vmem:[#allocation10 + $0xf8] sm:$0xff]  ;;  %v3843_v1 = vld [vmem:[#allocation10 + $0xd0] sm:$0xff] }
  0x7b   : > { %2102 = vmatmul.mubr.msk.f32.gmra.mxu0 %vm363_vm0, %v330_v29  ;;  %2106 = vmatmul.mubr.msk.f32.gmra.mxu1 %vm363_vm0, %v330_v29  ;;  %v3845_v2 = vld [vmem:[#allocation10 + $0xd8] sm:$0xff]  ;;  %v3851_v3 = vld [vmem:[#allocation10 + $0xb0] sm:$0xff] }
  0x7c   : > { %2436 = vmatpush3.msra.mxu0 %v3697_v30  ;;  %2471 = vmatpush3.msra.mxu1 %v3699_v31  ;;  %v3853_v4 = vld [vmem:[#allocation10 + $0xb8] sm:$0xff]  ;;  %v3859_v5 = vld [vmem:[#allocation10 + $0x90] sm:$0xff] }
  0x7d   : > { %2437 = vmatprep.subr.mxu0 %v4390_v10  ;;  %2472 = vmatprep.subr.mxu1 %v4390_v10  ;;  %v3861_v6 = vld [vmem:[#allocation10 + $0x98] sm:$0xff]  ;;  %v3867_v7 = vld [vmem:[#allocation10 + $0x70] sm:$0xff] }
  0x7e   : > { %2438 = vmatpush3.msra.mxu0 %v3705_v32  ;;  %2473 = vmatpush3.msra.mxu1 %v3707_v33  ;;  %4435 = vst [vmem:[#allocation43_spill] sm:$0xff] %v3861_v6  ;;  %v3869_v8 = vld [vmem:[#allocation10 + $0x78] sm:$0xff]  ;;  %v3875_v9 = vld [vmem:[#allocation10 + $0x50] sm:$0xff] }
  0x7f   : > { %452 = vmatprep.mubr.f32.mxu0 %v4390_v10  ;;  %541 = vmatprep.mubr.f32.mxu1 %v4390_v10  ;;  %4436 = vst [vmem:[#allocation44_spill] sm:$0xff] %v3869_v8  ;;  %v3877_v29 = vld [vmem:[#allocation10 + $0x58] sm:$0xff] }
  0x80   : > { %2439 = vmatprep.subr.mxu0 %v4390_v10  ;;  %2474 = vmatprep.subr.mxu1 %v4390_v10 }
  0x81   : > { %2103 = vmatmul.mubr.msk.f32.gmra.mxu0 %vm363_vm0, %v331_v34  ;;  %2107 = vmatmul.mubr.msk.f32.gmra.mxu1 %vm363_vm0, %v331_v34  ;;  %v3883_v34 = vld [vmem:[#allocation10 + $0x30] sm:$0xff] }
  0x82   : > { %2440 = vmatpush3.msra.mxu0 %v3718_v35  ;;  %2475 = vmatpush3.msra.mxu1 %v3720_v36 }
  0x83   : > { %2441 = vmatprep.subr.mxu0 %v4390_v10  ;;  %2476 = vmatprep.subr.mxu1 %v4390_v10 }
  0x84   : > { %2442 = vmatpush3.msra.mxu0 %v3726_v37  ;;  %2477 = vmatpush3.msra.mxu1 %v3728_v38 }
  0x85   : > { %458 = vmatprep.mubr.f32.mxu0 %v4390_v10  ;;  %547 = vmatprep.mubr.f32.mxu1 %v4390_v10 }
  0x86   : > { %2443 = vmatprep.subr.mxu0 %v4390_v10  ;;  %2478 = vmatprep.subr.mxu1 %v4390_v10 }
  0x87   : > { %2104 = vmatmul.mubr.msk.f32.gmra.mxu0 %vm363_vm0, %v332_v39  ;;  %2108 = vmatmul.mubr.msk.f32.gmra.mxu1 %vm363_vm0, %v332_v39  ;;  %v3885_v39 = vld [vmem:[#allocation10 + $0x38] sm:$0xff] }
  0x88   : > { %2444 = vmatpush3.msra.mxu0 %v3739_v40  ;;  %2479 = vmatpush3.msra.mxu1 %v3741_v41 }
  0x89   : > { %2445 = vmatprep.subr.mxu0 %v4390_v10  ;;  %2480 = vmatprep.subr.mxu1 %v4390_v10 }
  0x8a   : > { %2446 = vmatpush3.msra.mxu0 %v3747_v42  ;;  %2481 = vmatpush3.msra.mxu1 %v3749_v43 }
  0x8b   : > { %2447 = vmatprep.subr.mxu0 %v4390_v10  ;;  %2482 = vmatprep.subr.mxu1 %v4390_v10 }
  0x8c   : > { %2448 = vmatpush3.msra.mxu0 %v3755_v44  ;;  %2449 = vmatprep.mubr.msk.f32.mxu0 %vm3446_vm1, %v4390_v10 }
  0x8d   : > { %2483 = vmatpush3.msra.mxu1 %v3759_v45  ;;  %2484 = vmatprep.mubr.msk.f32.mxu1 %vm3446_vm1, %v4390_v10 }
  0x8e   : > { %2450 = vmatmul.mubr.f32.vlgmr.msra.gmra.mxu0 %v3763_v46  ;;  %2485 = vmatmul.mubr.f32.vlgmr.msra.gmra.mxu1 %v3763_v46 }
  0x8f   : > { %2487 = vmatprep.subr.mxu0 %v4390_v10  ;;  %2522 = vmatprep.subr.mxu1 %v4390_v10 }
  0x90   : > { %2488 = vmatpush3.msra.mxu0 %v3771_v47  ;;  %2523 = vmatpush3.msra.mxu1 %v3773_v48 }
  0x91   : > { %2489 = vmatprep.subr.mxu0 %v4390_v10  ;;  %2524 = vmatprep.subr.mxu1 %v4390_v10 }
  0x92   : > { %2490 = vmatpush3.msra.mxu0 %v3779_v49  ;;  %2525 = vmatpush3.msra.mxu1 %v3781_v50 }
  0x93   : > { %2491 = vmatprep.subr.mxu0 %v4390_v10  ;;  %2526 = vmatprep.subr.mxu1 %v4390_v10 }
  0x94   : > { %2492 = vmatpush3.msra.mxu0 %v3787_v51  ;;  %2527 = vmatpush3.msra.mxu1 %v3789_v52 }
  0x95   : > { %2493 = vmatprep.subr.mxu0 %v4390_v10  ;;  %2528 = vmatprep.subr.mxu1 %v4390_v10 }
  0x96   : > { %2494 = vmatpush3.msra.mxu0 %v3795_v53  ;;  %2529 = vmatpush3.msra.mxu1 %v3797_v54 }
  0x97   : > { %2495 = vmatprep.subr.mxu0 %v4390_v10  ;;  %2530 = vmatprep.subr.mxu1 %v4390_v10 }
  0x98   : > { %2496 = vmatpush3.msra.mxu0 %v3803_v55  ;;  %2531 = vmatpush3.msra.mxu1 %v3805_v56 }
  0x99   : > { %2497 = vmatprep.subr.mxu0 %v4390_v10  ;;  %2532 = vmatprep.subr.mxu1 %v4390_v10 }
  0x9a   : > { %2498 = vmatpush3.msra.mxu0 %v3811_v57  ;;  %2533 = vmatpush3.msra.mxu1 %v3813_v58 }
  0x9b   : > { %2499 = vmatprep.subr.mxu0 %v4390_v10  ;;  %2534 = vmatprep.subr.mxu1 %v4390_v10 }
  0x9c   : > { %2500 = vmatpush3.msra.mxu0 %v3819_v59  ;;  %2535 = vmatpush3.msra.mxu1 %v3821_v60 }
  0x9d   : > { %2501 = vmatprep.subr.mxu0 %v4390_v10  ;;  %2536 = vmatprep.subr.mxu1 %v4390_v10 }
  0x9e   : > { %2502 = vmatpush3.msra.mxu0 %v3827_v61  ;;  %2537 = vmatpush3.msra.mxu1 %v3829_v62 }
  0x9f   : > { %2503 = vmatprep.subr.mxu0 %v4390_v10  ;;  %2538 = vmatprep.subr.mxu1 %v4390_v10 }
  0xa0   : > { %2504 = vmatpush3.msra.mxu0 %v3835_v63  ;;  %2539 = vmatpush3.msra.mxu1 %v3837_v0 }
  0xa1   : > { %2505 = vmatprep.subr.mxu0 %v4390_v10  ;;  %2540 = vmatprep.subr.mxu1 %v4390_v10 }
  0xa2   : > { %2506 = vmatpush3.msra.mxu0 %v3843_v1  ;;  %2541 = vmatpush3.msra.mxu1 %v3845_v2 }
  0xa3   : > { %2507 = vmatprep.subr.mxu0 %v4390_v10  ;;  %2542 = vmatprep.subr.mxu1 %v4390_v10 }
  0xa4   : > { %2508 = vmatpush3.msra.mxu0 %v3851_v3  ;;  %2543 = vmatpush3.msra.mxu1 %v3853_v4 }
  0xa5   : > { %2509 = vmatprep.subr.mxu0 %v4390_v10  ;;  %2544 = vmatprep.subr.mxu1 %v4390_v10 }
  0xa6   : > { %2510 = vmatpush3.msra.mxu0 %v3859_v5  ;;  %2545 = vmatpush3.msra.mxu1 %v3861_v6  ;;  %v3891_v6 = vld [vmem:[#allocation10 + $0x10] sm:$0xff] }
  0xa7   : > { %2511 = vmatprep.subr.mxu0 %v4390_v10  ;;  %2546 = vmatprep.subr.mxu1 %v4390_v10 }
  0xa8   : > { %2512 = vmatpush3.msra.mxu0 %v3867_v7  ;;  %2547 = vmatpush3.msra.mxu1 %v3869_v8  ;;  %v3895_v8 = vld [vmem:[#allocation10 + $0x18] sm:$0xff] }
  0xa9   : > { %2513 = vmatprep.subr.mxu0 %v4390_v10  ;;  %2548 = vmatprep.subr.mxu1 %v4390_v10 }
  0xaa   : > { %2514 = vmatpush3.msra.mxu0 %v3875_v9  ;;  %2549 = vmatpush3.msra.mxu1 %v3877_v29 }
  0xab   : > { %2515 = vmatprep.subr.mxu0 %v4390_v10  ;;  %2550 = vmatprep.subr.mxu1 %v4390_v10 }
  0xac   : > { %2516 = vmatpush3.msra.mxu0 %v3883_v34  ;;  %2551 = vmatpush3.msra.mxu1 %v3885_v39 }
  0xad   : > { %2517 = vmatprep.subr.mxu0 %v4390_v10  ;;  %2552 = vmatprep.subr.mxu1 %v4390_v10 }
  0xae   : > { %2518 = vmatpush3.msra.mxu0 %v3891_v6  ;;  %2519 = vmatprep.mubr.msk.f32.mxu0 %vm3446_vm1, %v4390_v10 }
  0xaf   : > { %2553 = vmatpush3.msra.mxu1 %v3895_v8  ;;  %2554 = vmatprep.mubr.msk.f32.mxu1 %vm3446_vm1, %v4390_v10 }
  0xb0   : > { %2520 = vmatmul.mubr.f32.vlgmr.msra.gmra.mxu0 %v3763_v46  ;;  %2555 = vmatmul.mubr.f32.vlgmr.msra.gmra.mxu1 %v3763_v46  ;;  %v343_v46 = vlaneseq }
  0xb1   : > { %2557 = vmatprep.subr.mxu0 %v4390_v10  ;;  %2592 = vmatprep.subr.mxu1 %v4390_v10 }
  0xb2   : > { %2558 = vmatpush3.msra.mxu0 %v3620_v11  ;;  %2593 = vmatpush3.msra.mxu1 %v3622_v12 }
  0xb3   : > { %2559 = vmatprep.subr.mxu0 %v4390_v10  ;;  %2594 = vmatprep.subr.mxu1 %v4390_v10 }
  0xb4   : > { %2560 = vmatpush3.msra.mxu0 %v3628_v13  ;;  %2595 = vmatpush3.msra.mxu1 %v3630_v14 }
  0xb5   : > { %2561 = vmatprep.subr.mxu0 %v4390_v10  ;;  %2596 = vmatprep.subr.mxu1 %v4390_v10 }
  0xb6   : > { %2562 = vmatpush3.msra.mxu0 %v3636_v15  ;;  %2597 = vmatpush3.msra.mxu1 %v3638_v16 }
  0xb7   : > { %2563 = vmatprep.subr.mxu0 %v4390_v10  ;;  %2598 = vmatprep.subr.mxu1 %v4390_v10 }
  0xb8   : > { %2564 = vmatpush3.msra.mxu0 %v3644_v17  ;;  %2599 = vmatpush3.msra.mxu1 %v3646_v18 }
  0xb9   : > { %2565 = vmatprep.subr.mxu0 %v4390_v10  ;;  %2600 = vmatprep.subr.mxu1 %v4390_v10 }
  0xba   : > { %2566 = vmatpush3.msra.mxu0 %v3652_v19  ;;  %2601 = vmatpush3.msra.mxu1 %v3654_v20 }
  0xbb   : > { %2567 = vmatprep.subr.mxu0 %v4390_v10  ;;  %2602 = vmatprep.subr.mxu1 %v4390_v10 }
  0xbc   : > { %2568 = vmatpush3.msra.mxu0 %v3660_v21  ;;  %2603 = vmatpush3.msra.mxu1 %v3662_v22 }
  0xbd   : > { %2569 = vmatprep.subr.mxu0 %v4390_v10  ;;  %2604 = vmatprep.subr.mxu1 %v4390_v10 }
  0xbe   : > { %2570 = vmatpush3.msra.mxu0 %v3668_v23  ;;  %2605 = vmatpush3.msra.mxu1 %v3670_v24 }
  0xbf   : > { %2571 = vmatprep.subr.mxu0 %v4390_v10  ;;  %2606 = vmatprep.subr.mxu1 %v4390_v10 }
  0xc0   : > { %2572 = vmatpush3.msra.mxu0 %v3676_v25  ;;  %2607 = vmatpush3.msra.mxu1 %v3678_v26 }
  0xc1   : > { %2573 = vmatprep.subr.mxu0 %v4390_v10  ;;  %2608 = vmatprep.subr.mxu1 %v4390_v10 }
  0xc2   : > { %2574 = vmatpush3.msra.mxu0 %v3684_v27  ;;  %2609 = vmatpush3.msra.mxu1 %v3686_v28 }
  0xc3   : > { %2575 = vmatprep.subr.mxu0 %v4390_v10  ;;  %2610 = vmatprep.subr.mxu1 %v4390_v10 }
  0xc4   : > { %2576 = vmatpush3.msra.mxu0 %v3697_v30  ;;  %2611 = vmatpush3.msra.mxu1 %v3699_v31 }
  0xc5   : > { %2577 = vmatprep.subr.mxu0 %v4390_v10  ;;  %2612 = vmatprep.subr.mxu1 %v4390_v10 }
  0xc6   : > { %2578 = vmatpush3.msra.mxu0 %v3705_v32  ;;  %2613 = vmatpush3.msra.mxu1 %v3707_v33 }
  0xc7   : > { %2579 = vmatprep.subr.mxu0 %v4390_v10  ;;  %2614 = vmatprep.subr.mxu1 %v4390_v10 }
  0xc8   : > { %2580 = vmatpush3.msra.mxu0 %v3718_v35  ;;  %2615 = vmatpush3.msra.mxu1 %v3720_v36 }
  0xc9   : > { %2581 = vmatprep.subr.mxu0 %v4390_v10  ;;  %2616 = vmatprep.subr.mxu1 %v4390_v10 }
  0xca   : > { %2582 = vmatpush3.msra.mxu0 %v3726_v37  ;;  %2617 = vmatpush3.msra.mxu1 %v3728_v38 }
  0xcb   : > { %2583 = vmatprep.subr.mxu0 %v4390_v10  ;;  %2618 = vmatprep.subr.mxu1 %v4390_v10 }
  0xcc   : > { %2584 = vmatpush3.msra.mxu0 %v3739_v40  ;;  %2619 = vmatpush3.msra.mxu1 %v3741_v41 }
  0xcd   : > { %2585 = vmatprep.subr.mxu0 %v4390_v10  ;;  %2620 = vmatprep.subr.mxu1 %v4390_v10 }
  0xce   : > { %2586 = vmatpush3.msra.mxu0 %v3747_v42  ;;  %2621 = vmatpush3.msra.mxu1 %v3749_v43  ;;  %v344_v43 = vshrl.u32 %v343_v46, 7 }
  0xcf   : > { %2587 = vmatprep.subr.mxu0 %v4390_v10  ;;  %2622 = vmatprep.subr.mxu1 %v4390_v10 }
  0xd0   : > { %2588 = vmatpush3.msra.mxu0 %v3755_v44  ;;  %2623 = vmatpush3.msra.mxu1 %v3759_v45  ;;  %v345_v40 = vsub.s32 0, %v344_v43  ;;  %v353_v38 = vsub.s32 2, %v344_v43  ;;  %v341_v45 = vld [vmem:[%s4362_s3] sm:$0xf]  ;;  %v349_v44 = vsub.s32 1, %v344_v43  ;;  %v357_v37 = vsub.s32 3, %v344_v43 }
  0xd1   : > { %2589 = vmatprep.mubr.msk.f32.mxu0 %vm3446_vm1, %v4390_v10  ;;  %2624 = vmatprep.mubr.msk.f32.mxu1 %vm3446_vm1, %v4390_v10 }
  0xd2   : > { %2627 = vmatprep.subr.mxu0 %v4390_v10  ;;  %2662 = vmatprep.subr.mxu1 %v4390_v10  ;;  %v346_v33 = vrot.slane %v341_v45, %v345_v40  ;;  %v354_v32 = vrot.slane %v341_v45, %v353_v38  ;;  %v350_v28 = vrot.slane %v341_v45, %v349_v44 }
  0xd3   : > { %v358_v10 = vrot.slane %v341_v45, %v357_v37 }
 0x126   : > { %v442_v42 = vpop.f32.mrf.mxu0  ;;  %v531_v41 = vpop.f32.mrf.mxu1 }
 0x128   : > { %v444_v36 = vpop.f32.mrf.mxu0  ;;  %v533_v35 = vpop.f32.mrf.mxu1 }
 0x13b   : > { %v448_v31 = vpop.f32.mrf.mxu0  ;;  %v537_v30 = vpop.f32.mrf.mxu1 }
 0x13c   : > { %v3980_v27 = vadd.f32 %v448_v31, %v346_v33  ;;  %v3982_v46 = vadd.f32 %v537_v30, %v354_v32 }
 0x13d   : > { %v450_v26 = vpop.f32.mrf.mxu0  ;;  %v539_v25 = vpop.f32.mrf.mxu1 }
 0x13e   : > { %4437 = vst [vmem:[#allocation45_spill] sm:$0xff] %v3980_v27  ;;  %4438 = vst [vmem:[#allocation46_spill] sm:$0xff] %v3982_v46  ;;  %v3984_v24 = vadd.f32 %v450_v26, %v350_v28  ;;  %v3986_v23 = vadd.f32 %v539_v25, %v358_v10 }
 0x140   : > { %4439 = vst [vmem:[#allocation47_spill] sm:$0xff] %v3984_v24  ;;  %4440 = vst [vmem:[#allocation48_spill] sm:$0xff] %v3986_v23 }
 0x141   : > { %v454_v22 = vpop.f32.mrf.mxu0  ;;  %v543_v43 = vpop.f32.mrf.mxu1 }
 0x142   : > { %v3988_v21 = vadd.f32 %v454_v22, %v346_v33  ;;  %v3990_v40 = vadd.f32 %v543_v43, %v354_v32 }
 0x143   : > { %v456_v38 = vpop.f32.mrf.mxu0  ;;  %v545_v20 = vpop.f32.mrf.mxu1 }
 0x144   : > { %4441 = vst [vmem:[#allocation49_spill] sm:$0xff] %v3988_v21  ;;  %4442 = vst [vmem:[#allocation50_spill] sm:$0xff] %v3990_v40  ;;  %v3992_v44 = vadd.f32 %v456_v38, %v350_v28  ;;  %v3994_v31 = vadd.f32 %v545_v20, %v358_v10  ;;  %v445_v38 = vadd.f32 %v444_v36, %v350_v28 }
 0x146   : > { %4443 = vst [vmem:[#allocation51_spill] sm:$0xff] %v3992_v44  ;;  %4444 = vst [vmem:[#allocation52_spill] sm:$0xff] %v3994_v31  ;;  %v443_v44 = vadd.f32 %v442_v42, %v346_v33 }
 0x147   : > { %v460_v30 = vpop.f32.mrf.mxu0  ;;  %v549_v37 = vpop.f32.mrf.mxu1 }
 0x148   : > { %v3996_v45 = vadd.f32 %v460_v30, %v346_v33  ;;  %v3998_v26 = vadd.f32 %v549_v37, %v354_v32 }
 0x149   : > { %v462_v25 = vpop.f32.mrf.mxu0  ;;  %v551_v23 = vpop.f32.mrf.mxu1 }
 0x14a   : > { %4445 = vst [vmem:[#allocation53_spill] sm:$0xff] %v3996_v45  ;;  %4446 = vst [vmem:[#allocation54_spill] sm:$0xff] %v3998_v26  ;;  %v4000_v46 = vadd.f32 %v462_v25, %v350_v28  ;;  %v4002_v22 = vadd.f32 %v551_v23, %v358_v10  ;;  %v532_v25 = vadd.f32 %v531_v41, %v354_v32 }
 0x14c   : > { %4447 = vst [vmem:[#allocation55_spill] sm:$0xff] %v4000_v46  ;;  %4448 = vst [vmem:[#allocation56_spill] sm:$0xff] %v4002_v22  ;;  %v534_v46 = vadd.f32 %v533_v35, %v358_v10 }
 0x14e   : > { %v655_v43 = vpop.f32.mrf.mxu0  ;;  %v749_v40 = vpop.f32.mrf.mxu1 }
 0x14f   : > { %v753_v20 = vadd.f32 %v749_v40, %v445_v38  ;;  %v659_v31 = vadd.f32 %v655_v43, %v443_v44  ;;  %v4460_v43 = vld [vmem:[#allocation26_spill] sm:$0xff]  ;;  %v4461_v38 = vld [vmem:[#allocation27_spill] sm:$0xff] }
 0x150   : > { %v2451_v21 = vpop.f32.mrf.mxu0  ;;  %v2486_v27 = vpop.f32.mrf.mxu1 }
 0x151   : > { %v2110_v24 = vmul.f32 -1.442695, %v753_v20  ;;  %v2109_v19 = vmul.f32 -1.442695, %v659_v31  ;;  %v4462_v20 = vld [vmem:[#allocation28_spill] sm:$0xff] }
 0x153   : > { %3114 = vpow2.f32 %v2110_v24  ;;  %v571_v24 = vld [vmem:[#allocation4] sm:$0xff] }
 0x154   : > { %3116 = vpow2.f32 %v2109_v19 }
 0x160   : > { %v3115_v30 = vpop.eup %3114 }
 0x161   : > { %v3117_v37 = vpop.eup %3116  ;;  %v757_v26 = vadd.f32 1.0, %v3115_v30  ;;  %v4463_v30 = vld [vmem:[#allocation29_spill] sm:$0xff] }
 0x162   : > { %v663_v45 = vadd.f32 1.0, %v3117_v37  ;;  %v4464_v37 = vld [vmem:[#allocation30_spill] sm:$0xff] }
 0x163   : > { %3118 = vrcp.f32 %v757_v26  ;;  %v4451_v26 = vld [vmem:[#allocation44_spill] sm:$0xff] }
 0x164   : > { %3120 = vrcp.f32 %v663_v45  ;;  %v4450_v45 = vld [vmem:[#allocation43_spill] sm:$0xff] }
 0x170   : > { %v843_v23 = vpop.f32.mrf.mxu0  ;;  %v932_v22 = vpop.f32.mrf.mxu1 }
 0x171   : > { %v847_v18 = vadd.f32 %v843_v23, %v532_v25  ;;  %v936_v21 = vadd.f32 %v932_v22, %v534_v46  ;;  %v3119_v36 = vpop.eup %3118  ;;  %v4459_v22 = vld [vmem:[#allocation25_spill] sm:$0xff]  ;;  %v4465_v25 = vld [vmem:[#allocation31_spill] sm:$0xff]  ;;  %v4466_v23 = vld [vmem:[#allocation32_spill] sm:$0xff] }
 0x172   : > { %v2521_v27 = vpop.f32.mrf.mxu0  ;;  %v2556_v28 = vpop.f32.mrf.mxu1  ;;  %v943_v40 = vmul.f32 %v3119_v36, %v571_v24  ;;  %v4471_v36 = vld [vmem:[#allocation37_spill] sm:$0xff]  ;;  %v4472_v24 = vld [vmem:[#allocation38_spill] sm:$0xff] }
 0x173   : > { %3122 = vtanh.f32 %v847_v18  ;;  %v2111_v33 = vmul.f32 -1.442695, %v936_v21  ;;  %v3121_v19 = vpop.eup %3120  ;;  %v4449_v18 = vmov 0.0   ;;  %v4467_v21 = vld [vmem:[#allocation33_spill] sm:$0xff]  ;;  %v4468_v27 = vld [vmem:[#allocation34_spill] sm:$0xff]  ;;  %v4469_v28 = vld [vmem:[#allocation35_spill] sm:$0xff] }
 0x175   : > { %3124 = vpow2.f32 %v2111_v33  ;;  %v4470_v33 = vld [vmem:[#allocation36_spill] sm:$0xff] }
 0x180   : > { %v3123_v42 = vpop.eup %3122 }
 0x181   : > { %v944_v44 = vmul.f32 %v3123_v42, %v3121_v19  ;;  %v4473_v19 = vld [vmem:[#allocation39_spill] sm:$0xff]  ;;  %v4474_v42 = vld [vmem:[#allocation40_spill] sm:$0xff] }
 0x182   : > { %v3125_v31 = vpop.eup %3124 }
 0x183   : > { %v4004_v32 = vadd.f32 %v944_v44, %v943_v40  ;;  %v940_v10 = vadd.f32 1.0, %v3125_v31  ;;  %v4475_v40 = vld [vmem:[#allocation41_spill] sm:$0xff]  ;;  %v4476_v44 = vld [vmem:[#allocation42_spill] sm:$0xff] }
 0x185   : > { %3126 = vtanh.f32 %v4004_v32 }
 0x186   : > { %3128 = vrcp.f32 %v940_v10 }
 0x192   : > { %v3127_v35 = vpop.eup %3126 }
 0x193   : > { %v3129_v41 = vpop.eup %3128 }
 0x194   : > { %v4007_v46 = vmul.f32 %v3129_v41, %v3127_v35 }
 0x196   : > { %2590 = vmatmul.mubr.f32.vlgmr.msra.gmra.mxu0 %v4007_v46  ;;  %2625 = vmatmul.mubr.f32.vlgmr.msra.gmra.mxu1 %v4007_v46 }
 0x197   : > { %2628 = vmatpush3.msra.mxu0 %v3771_v47  ;;  %2663 = vmatpush3.msra.mxu1 %v3773_v48 }
 0x198   : > { %2629 = vmatprep.subr.mxu0 %v4449_v18  ;;  %2664 = vmatprep.subr.mxu1 %v4449_v18 }
 0x199   : > { %2630 = vmatpush3.msra.mxu0 %v3779_v49  ;;  %2665 = vmatpush3.msra.mxu1 %v3781_v50 }
 0x19a   : > { %2631 = vmatprep.subr.mxu0 %v4449_v18  ;;  %2666 = vmatprep.subr.mxu1 %v4449_v18 }
 0x19b   : > { %2632 = vmatpush3.msra.mxu0 %v3787_v51  ;;  %2667 = vmatpush3.msra.mxu1 %v3789_v52 }
 0x19c   : > { %2633 = vmatprep.subr.mxu0 %v4449_v18  ;;  %2668 = vmatprep.subr.mxu1 %v4449_v18 }
 0x19d   : > { %2634 = vmatpush3.msra.mxu0 %v3795_v53  ;;  %2669 = vmatpush3.msra.mxu1 %v3797_v54 }
 0x19e   : > { %2635 = vmatprep.subr.mxu0 %v4449_v18  ;;  %2670 = vmatprep.subr.mxu1 %v4449_v18 }
 0x19f   : > { %2636 = vmatpush3.msra.mxu0 %v3803_v55  ;;  %2671 = vmatpush3.msra.mxu1 %v3805_v56 }
 0x1a0   : > { %2637 = vmatprep.subr.mxu0 %v4449_v18  ;;  %2672 = vmatprep.subr.mxu1 %v4449_v18 }
 0x1a1   : > { %2638 = vmatpush3.msra.mxu0 %v3811_v57  ;;  %2673 = vmatpush3.msra.mxu1 %v3813_v58 }
 0x1a2   : > { %2639 = vmatprep.subr.mxu0 %v4449_v18  ;;  %2674 = vmatprep.subr.mxu1 %v4449_v18 }
 0x1a3   : > { %2640 = vmatpush3.msra.mxu0 %v3819_v59  ;;  %2675 = vmatpush3.msra.mxu1 %v3821_v60 }
 0x1a4   : > { %2641 = vmatprep.subr.mxu0 %v4449_v18  ;;  %2676 = vmatprep.subr.mxu1 %v4449_v18 }
 0x1a5   : > { %2642 = vmatpush3.msra.mxu0 %v3827_v61  ;;  %2677 = vmatpush3.msra.mxu1 %v3829_v62 }
 0x1a6   : > { %2643 = vmatprep.subr.mxu0 %v4449_v18  ;;  %2678 = vmatprep.subr.mxu1 %v4449_v18 }
 0x1a7   : > { %2644 = vmatpush3.msra.mxu0 %v3835_v63  ;;  %2679 = vmatpush3.msra.mxu1 %v3837_v0 }
 0x1a8   : > { %2645 = vmatprep.subr.mxu0 %v4449_v18  ;;  %2680 = vmatprep.subr.mxu1 %v4449_v18 }
 0x1a9   : > { %2646 = vmatpush3.msra.mxu0 %v3843_v1  ;;  %2681 = vmatpush3.msra.mxu1 %v3845_v2 }
 0x1aa   : > { %2647 = vmatprep.subr.mxu0 %v4449_v18  ;;  %2682 = vmatprep.subr.mxu1 %v4449_v18 }
 0x1ab   : > { %2648 = vmatpush3.msra.mxu0 %v3851_v3  ;;  %2683 = vmatpush3.msra.mxu1 %v3853_v4 }
 0x1ac   : > { %2649 = vmatprep.subr.mxu0 %v4449_v18  ;;  %2684 = vmatprep.subr.mxu1 %v4449_v18 }
 0x1ad   : > { %2650 = vmatpush3.msra.mxu0 %v3859_v5  ;;  %2685 = vmatpush3.msra.mxu1 %v4450_v45 }
 0x1ae   : > { %2651 = vmatprep.subr.mxu0 %v4449_v18  ;;  %2686 = vmatprep.subr.mxu1 %v4449_v18 }
 0x1af   : > { %2652 = vmatpush3.msra.mxu0 %v3867_v7  ;;  %2687 = vmatpush3.msra.mxu1 %v4451_v26 }
 0x1b0   : > { %2653 = vmatprep.subr.mxu0 %v4449_v18  ;;  %2688 = vmatprep.subr.mxu1 %v4449_v18 }
 0x1b1   : > { %2654 = vmatpush3.msra.mxu0 %v3875_v9  ;;  %2689 = vmatpush3.msra.mxu1 %v3877_v29 }
 0x1b2   : > { %2655 = vmatprep.subr.mxu0 %v4449_v18  ;;  %2690 = vmatprep.subr.mxu1 %v4449_v18 }
 0x1b3   : > { %2656 = vmatpush3.msra.mxu0 %v3883_v34  ;;  %2691 = vmatpush3.msra.mxu1 %v3885_v39 }
 0x1b4   : > { %2657 = vmatprep.subr.mxu0 %v4449_v18  ;;  %2692 = vmatprep.subr.mxu1 %v4449_v18 }
 0x1b5   : > { %2658 = vmatpush3.msra.mxu0 %v3891_v6  ;;  %2659 = vmatprep.mubr.msk.f32.mxu0 %vm3446_vm1, %v4449_v18 }
 0x1b6   : > { %2693 = vmatpush3.msra.mxu1 %v3895_v8  ;;  %2694 = vmatprep.mubr.msk.f32.mxu1 %vm3446_vm1, %v4449_v18 }
 0x1b7   : > { %2660 = vmatmul.mubr.f32.vlgmr.msra.gmra.mxu0 %v4007_v46  ;;  %2695 = vmatmul.mubr.f32.vlgmr.msra.gmra.mxu1 %v4007_v46  ;;  %v4477_v46 = vld [vmem:[#allocation47_spill] sm:$0xff] }
 0x1b8   : > { %2697 = vmatprep.subr.mxu0 %v4449_v18  ;;  %2732 = vmatprep.subr.mxu1 %v4449_v18 }
 0x1b9   : > { %2698 = vmatpush3.msra.mxu0 %v3620_v11  ;;  %2733 = vmatpush3.msra.mxu1 %v3622_v12  ;;  %v4452_v11 = vld [vmem:[#allocation18_spill] sm:$0xff]  ;;  %v4453_v12 = vld [vmem:[#allocation19_spill] sm:$0xff] }
 0x1ba   : > { %2699 = vmatprep.subr.mxu0 %v4449_v18  ;;  %2734 = vmatprep.subr.mxu1 %v4449_v18 }
 0x1bb   : > { %2700 = vmatpush3.msra.mxu0 %v3628_v13  ;;  %2735 = vmatpush3.msra.mxu1 %v3630_v14  ;;  %v4454_v13 = vld [vmem:[#allocation20_spill] sm:$0xff]  ;;  %v4455_v14 = vld [vmem:[#allocation21_spill] sm:$0xff] }
 0x1bc   : > { %2701 = vmatprep.subr.mxu0 %v4449_v18  ;;  %2736 = vmatprep.subr.mxu1 %v4449_v18 }
 0x1bd   : > { %2702 = vmatpush3.msra.mxu0 %v3636_v15  ;;  %2737 = vmatpush3.msra.mxu1 %v3638_v16  ;;  %v4456_v15 = vld [vmem:[#allocation22_spill] sm:$0xff]  ;;  %v4457_v16 = vld [vmem:[#allocation23_spill] sm:$0xff] }
 0x1be   : > { %2703 = vmatprep.subr.mxu0 %v4449_v18  ;;  %2738 = vmatprep.subr.mxu1 %v4449_v18 }
 0x1bf   : > { %2704 = vmatpush3.msra.mxu0 %v3644_v17  ;;  %2739 = vmatpush3.msra.mxu1 %v4452_v11  ;;  %v4458_v17 = vld [vmem:[#allocation24_spill] sm:$0xff] }
 0x1c0   : > { %2705 = vmatprep.subr.mxu0 %v4449_v18  ;;  %2740 = vmatprep.subr.mxu1 %v4449_v18 }
 0x1c1   : > { %2706 = vmatpush3.msra.mxu0 %v4453_v12  ;;  %2741 = vmatpush3.msra.mxu1 %v4454_v13  ;;  %v4478_v12 = vld [vmem:[#allocation45_spill] sm:$0xff] }
 0x1c2   : > { %2707 = vmatprep.subr.mxu0 %v4449_v18  ;;  %2742 = vmatprep.subr.mxu1 %v4449_v18 }
 0x1c3   : > { %2708 = vmatpush3.msra.mxu0 %v4455_v14  ;;  %2743 = vmatpush3.msra.mxu1 %v4456_v15 }
 0x1c4   : > { %2709 = vmatprep.subr.mxu0 %v4449_v18  ;;  %2744 = vmatprep.subr.mxu1 %v4449_v18 }
 0x1c5   : > { %2710 = vmatpush3.msra.mxu0 %v4457_v16  ;;  %2745 = vmatpush3.msra.mxu1 %v4458_v17 }
 0x1c6   : > { %2711 = vmatprep.subr.mxu0 %v4449_v18  ;;  %2746 = vmatprep.subr.mxu1 %v4449_v18 }
 0x1c7   : > { %2712 = vmatpush3.msra.mxu0 %v4459_v22  ;;  %2747 = vmatpush3.msra.mxu1 %v4460_v43 }
 0x1c8   : > { %2713 = vmatprep.subr.mxu0 %v4449_v18  ;;  %2748 = vmatprep.subr.mxu1 %v4449_v18 }
 0x1c9   : > { %2714 = vmatpush3.msra.mxu0 %v4461_v38  ;;  %2749 = vmatpush3.msra.mxu1 %v4462_v20 }
 0x1ca   : > { %2715 = vmatprep.subr.mxu0 %v4449_v18  ;;  %2750 = vmatprep.subr.mxu1 %v4449_v18 }
 0x1cb   : > { %2716 = vmatpush3.msra.mxu0 %v4463_v30  ;;  %2751 = vmatpush3.msra.mxu1 %v4464_v37  ;;  %v4479_v30 = vld [vmem:[#allocation46_spill] sm:$0xff] }
 0x1cc   : > { %2717 = vmatprep.subr.mxu0 %v4449_v18  ;;  %2752 = vmatprep.subr.mxu1 %v4449_v18 }
 0x1cd   : > { %2718 = vmatpush3.msra.mxu0 %v4465_v25  ;;  %2753 = vmatpush3.msra.mxu1 %v4466_v23  ;;  %v4480_v25 = vld [vmem:[#allocation48_spill] sm:$0xff] }
 0x1ce   : > { %2719 = vmatprep.subr.mxu0 %v4449_v18  ;;  %2754 = vmatprep.subr.mxu1 %v4449_v18 }
 0x1cf   : > { %2720 = vmatpush3.msra.mxu0 %v4467_v21  ;;  %2755 = vmatpush3.msra.mxu1 %v4468_v27 }
 0x1d0   : > { %2721 = vmatprep.subr.mxu0 %v4449_v18  ;;  %2756 = vmatprep.subr.mxu1 %v4449_v18 }
 0x1d1   : > { %2722 = vmatpush3.msra.mxu0 %v4469_v28  ;;  %2757 = vmatpush3.msra.mxu1 %v4470_v33 }
 0x1d2   : > { %2723 = vmatprep.subr.mxu0 %v4449_v18  ;;  %2758 = vmatprep.subr.mxu1 %v4449_v18 }
 0x1d3   : > { %2724 = vmatpush3.msra.mxu0 %v4471_v36  ;;  %2759 = vmatpush3.msra.mxu1 %v4472_v24 }
 0x1d4   : > { %2725 = vmatprep.subr.mxu0 %v4449_v18  ;;  %2760 = vmatprep.subr.mxu1 %v4449_v18 }
 0x1d5   : > { %2726 = vmatpush3.msra.mxu0 %v4473_v19  ;;  %2761 = vmatpush3.msra.mxu1 %v4474_v42 }
 0x1d6   : > { %2727 = vmatprep.subr.mxu0 %v4449_v18  ;;  %2762 = vmatprep.subr.mxu1 %v4449_v18 }
 0x1d7   : > { %2728 = vmatpush3.msra.mxu0 %v4475_v40  ;;  %2763 = vmatpush3.msra.mxu1 %v4476_v44 }
 0x1d8   : > { %2729 = vmatprep.mubr.msk.f32.mxu0 %vm3446_vm1, %v4449_v18  ;;  %2764 = vmatprep.mubr.msk.f32.mxu1 %vm3446_vm1, %v4449_v18 }
 0x1d9   : > { %2767 = vmatprep.subr.mxu0 %v4449_v18  ;;  %2802 = vmatprep.subr.mxu1 %v4449_v18 }
 0x256   : > { %v1015_v31 = vpop.f32.mrf.mxu0  ;;  %v1093_v10 = vpop.f32.mrf.mxu1 }
 0x257   : > { %v1097_v11 = vadd.f32 %v1093_v10, %v4477_v46  ;;  %v1019_v13 = vadd.f32 %v1015_v31, %v4478_v12 }
 0x258   : > { %v2591_v35 = vpop.f32.mrf.mxu0  ;;  %v2626_v41 = vpop.f32.mrf.mxu1 }
 0x259   : > { %v2113_v14 = vmul.f32 -1.442695, %v1097_v11  ;;  %v2112_v15 = vmul.f32 -1.442695, %v1019_v13  ;;  %v4481_v13 = vld [vmem:[#allocation51_spill] sm:$0xff] }
 0x25b   : > { %3130 = vpow2.f32 %v2113_v14 }
 0x25c   : > { %3132 = vpow2.f32 %v2112_v15  ;;  %v4482_v15 = vld [vmem:[#allocation49_spill] sm:$0xff] }
 0x268   : > { %v3131_v16 = vpop.eup %3130 }
 0x269   : > { %v3133_v17 = vpop.eup %3132  ;;  %v1101_v22 = vadd.f32 1.0, %v3131_v16 }
 0x26a   : > { %v1023_v43 = vadd.f32 1.0, %v3133_v17 }
 0x26b   : > { %3134 = vrcp.f32 %v1101_v22 }
 0x26c   : > { %3136 = vrcp.f32 %v1023_v43 }
 0x277   : > { %v1171_v38 = vpop.f32.mrf.mxu0  ;;  %v1244_v20 = vpop.f32.mrf.mxu1 }
 0x278   : > { %v1175_v37 = vadd.f32 %v1171_v38, %v4479_v30  ;;  %v1248_v23 = vadd.f32 %v1244_v20, %v4480_v25  ;;  %v3135_v33 = vpop.eup %3134 }
 0x279   : > { %v2661_v21 = vpop.f32.mrf.mxu0  ;;  %v2696_v27 = vpop.f32.mrf.mxu1  ;;  %v1255_v19 = vmul.f32 %v3135_v33, %v4004_v32  ;;  %v3208_v32 = vld [vmem:[#allocation10] sm:$0xff] }
 0x27a   : > { %3138 = vtanh.f32 %v1175_v37  ;;  %v2114_v28 = vmul.f32 -1.442695, %v1248_v23  ;;  %v3137_v36 = vpop.eup %3136  ;;  %v4483_v23 = vld [vmem:[#allocation50_spill] sm:$0xff]  ;;  %v4484_v27 = vld [vmem:[#allocation52_spill] sm:$0xff] }
 0x27c   : > { %3140 = vpow2.f32 %v2114_v28 }
 0x287   : > { %v3139_v24 = vpop.eup %3138 }
 0x288   : > { %v1256_v42 = vmul.f32 %v3139_v24, %v3137_v36 }
 0x289   : > { %v3141_v40 = vpop.eup %3140 }
 0x28a   : > { %v4154_v44 = vadd.f32 %v1256_v42, %v1255_v19  ;;  %v1252_v31 = vadd.f32 1.0, %v3141_v40 }
 0x28c   : > { %3142 = vtanh.f32 %v4154_v44 }
 0x28d   : > { %3144 = vrcp.f32 %v1252_v31 }
 0x299   : > { %v3143_v10 = vpop.eup %3142 }
 0x29a   : > { %v3145_v35 = vpop.eup %3144 }
 0x29b   : > { %v4157_v41 = vmul.f32 %v3145_v35, %v3143_v10 }
 0x29d   : > { %2730 = vmatmul.mubr.f32.vlgmr.msra.gmra.mxu0 %v4157_v41  ;;  %2765 = vmatmul.mubr.f32.vlgmr.msra.gmra.mxu1 %v4157_v41 }
 0x29e   : > { %2768 = vmatpush3.msra.mxu0 %v3771_v47  ;;  %2803 = vmatpush3.msra.mxu1 %v3773_v48  ;;  %v3178_v47 = vld [vmem:[#allocation10 + $0x1e0] sm:$0xff]  ;;  %v3179_v48 = vld [vmem:[#allocation10 + $0x1e8] sm:$0xff] }
 0x29f   : > { %2769 = vmatprep.subr.mxu0 %v4449_v18  ;;  %2804 = vmatprep.subr.mxu1 %v4449_v18 }
 0x2a0   : > { %2770 = vmatpush3.msra.mxu0 %v3779_v49  ;;  %2805 = vmatpush3.msra.mxu1 %v3781_v50  ;;  %v3180_v49 = vld [vmem:[#allocation10 + $0x1c0] sm:$0xff]  ;;  %v3181_v50 = vld [vmem:[#allocation10 + $0x1c8] sm:$0xff] }
 0x2a1   : > { %2771 = vmatprep.subr.mxu0 %v4449_v18  ;;  %2806 = vmatprep.subr.mxu1 %v4449_v18 }
 0x2a2   : > { %2772 = vmatpush3.msra.mxu0 %v3787_v51  ;;  %2807 = vmatpush3.msra.mxu1 %v3789_v52  ;;  %v3182_v51 = vld [vmem:[#allocation10 + $0x1a0] sm:$0xff]  ;;  %v3183_v52 = vld [vmem:[#allocation10 + $0x1a8] sm:$0xff] }
 0x2a3   : > { %2773 = vmatprep.subr.mxu0 %v4449_v18  ;;  %2808 = vmatprep.subr.mxu1 %v4449_v18 }
 0x2a4   : > { %2774 = vmatpush3.msra.mxu0 %v3795_v53  ;;  %2809 = vmatpush3.msra.mxu1 %v3797_v54  ;;  %v3184_v53 = vld [vmem:[#allocation10 + $0x180] sm:$0xff]  ;;  %v3185_v54 = vld [vmem:[#allocation10 + $0x188] sm:$0xff] }
 0x2a5   : > { %2775 = vmatprep.subr.mxu0 %v4449_v18  ;;  %2810 = vmatprep.subr.mxu1 %v4449_v18 }
 0x2a6   : > { %2776 = vmatpush3.msra.mxu0 %v3803_v55  ;;  %2811 = vmatpush3.msra.mxu1 %v3805_v56  ;;  %v3186_v55 = vld [vmem:[#allocation10 + $0x160] sm:$0xff]  ;;  %v3187_v56 = vld [vmem:[#allocation10 + $0x168] sm:$0xff] }
 0x2a7   : > { %2777 = vmatprep.subr.mxu0 %v4449_v18  ;;  %2812 = vmatprep.subr.mxu1 %v4449_v18 }
 0x2a8   : > { %2778 = vmatpush3.msra.mxu0 %v3811_v57  ;;  %2813 = vmatpush3.msra.mxu1 %v3813_v58  ;;  %v3188_v57 = vld [vmem:[#allocation10 + $0x140] sm:$0xff]  ;;  %v3189_v58 = vld [vmem:[#allocation10 + $0x148] sm:$0xff] }
 0x2a9   : > { %2779 = vmatprep.subr.mxu0 %v4449_v18  ;;  %2814 = vmatprep.subr.mxu1 %v4449_v18 }
 0x2aa   : > { %2780 = vmatpush3.msra.mxu0 %v3819_v59  ;;  %2815 = vmatpush3.msra.mxu1 %v3821_v60  ;;  %v3190_v59 = vld [vmem:[#allocation10 + $0x120] sm:$0xff]  ;;  %v3191_v60 = vld [vmem:[#allocation10 + $0x128] sm:$0xff] }
 0x2ab   : > { %2781 = vmatprep.subr.mxu0 %v4449_v18  ;;  %2816 = vmatprep.subr.mxu1 %v4449_v18 }
 0x2ac   : > { %2782 = vmatpush3.msra.mxu0 %v3827_v61  ;;  %2817 = vmatpush3.msra.mxu1 %v3829_v62  ;;  %v3192_v61 = vld [vmem:[#allocation10 + $0x100] sm:$0xff]  ;;  %v3193_v62 = vld [vmem:[#allocation10 + $0x108] sm:$0xff] }
 0x2ad   : > { %2783 = vmatprep.subr.mxu0 %v4449_v18  ;;  %2818 = vmatprep.subr.mxu1 %v4449_v18 }
 0x2ae   : > { %2784 = vmatpush3.msra.mxu0 %v3835_v63  ;;  %2819 = vmatpush3.msra.mxu1 %v3837_v0  ;;  %v3194_v63 = vld [vmem:[#allocation10 + $0xe0] sm:$0xff]  ;;  %v3195_v0 = vld [vmem:[#allocation10 + $0xe8] sm:$0xff] }
 0x2af   : > { %2785 = vmatprep.subr.mxu0 %v4449_v18  ;;  %2820 = vmatprep.subr.mxu1 %v4449_v18 }
 0x2b0   : > { %2786 = vmatpush3.msra.mxu0 %v3843_v1  ;;  %2821 = vmatpush3.msra.mxu1 %v3845_v2  ;;  %v3196_v1 = vld [vmem:[#allocation10 + $0xc0] sm:$0xff]  ;;  %v3197_v2 = vld [vmem:[#allocation10 + $0xc8] sm:$0xff] }
 0x2b1   : > { %2787 = vmatprep.subr.mxu0 %v4449_v18  ;;  %2822 = vmatprep.subr.mxu1 %v4449_v18 }
 0x2b2   : > { %2788 = vmatpush3.msra.mxu0 %v3851_v3  ;;  %2823 = vmatpush3.msra.mxu1 %v3853_v4  ;;  %v3198_v3 = vld [vmem:[#allocation10 + $0xa0] sm:$0xff]  ;;  %v3199_v4 = vld [vmem:[#allocation10 + $0xa8] sm:$0xff] }
 0x2b3   : > { %2789 = vmatprep.subr.mxu0 %v4449_v18  ;;  %2824 = vmatprep.subr.mxu1 %v4449_v18 }
 0x2b4   : > { %2790 = vmatpush3.msra.mxu0 %v3859_v5  ;;  %2825 = vmatpush3.msra.mxu1 %v4450_v45  ;;  %v3200_v5 = vld [vmem:[#allocation10 + $0x80] sm:$0xff]  ;;  %v3209_v45 = vld [vmem:[#allocation10 + $0x8] sm:$0xff] }
 0x2b5   : > { %2791 = vmatprep.subr.mxu0 %v4449_v18  ;;  %2826 = vmatprep.subr.mxu1 %v4449_v18 }
 0x2b6   : > { %2792 = vmatpush3.msra.mxu0 %v3867_v7  ;;  %2827 = vmatpush3.msra.mxu1 %v4451_v26  ;;  %v3202_v7 = vld [vmem:[#allocation10 + $0x60] sm:$0xff] }
 0x2b7   : > { %2793 = vmatprep.subr.mxu0 %v4449_v18  ;;  %2828 = vmatprep.subr.mxu1 %v4449_v18 }
 0x2b8   : > { %2794 = vmatpush3.msra.mxu0 %v3875_v9  ;;  %2829 = vmatpush3.msra.mxu1 %v3877_v29  ;;  %v3204_v9 = vld [vmem:[#allocation10 + $0x40] sm:$0xff]  ;;  %v3205_v29 = vld [vmem:[#allocation10 + $0x48] sm:$0xff] }
 0x2b9   : > { %2795 = vmatprep.subr.mxu0 %v4449_v18  ;;  %2830 = vmatprep.subr.mxu1 %v4449_v18 }
 0x2ba   : > { %2796 = vmatpush3.msra.mxu0 %v3883_v34  ;;  %2831 = vmatpush3.msra.mxu1 %v3885_v39  ;;  %v3206_v34 = vld [vmem:[#allocation10 + $0x20] sm:$0xff]  ;;  %v3207_v39 = vld [vmem:[#allocation10 + $0x28] sm:$0xff] }
 0x2bb   : > { %2797 = vmatprep.subr.mxu0 %v4449_v18  ;;  %2832 = vmatprep.subr.mxu1 %v4449_v18 }
 0x2bc   : > { %2798 = vmatpush3.msra.mxu0 %v3891_v6  ;;  %2799 = vmatprep.mubr.msk.f32.mxu0 %vm3446_vm1, %v4449_v18  ;;  %v3201_v6 = vld [vmem:[#allocation10 + $0x88] sm:$0xff] }
 0x2bd   : > { %2833 = vmatpush3.msra.mxu1 %v3895_v8  ;;  %2834 = vmatprep.mubr.msk.f32.mxu1 %vm3446_vm1, %v4449_v18  ;;  %v3203_v8 = vld [vmem:[#allocation10 + $0x68] sm:$0xff] }
 0x2be   : > { %2800 = vmatmul.mubr.f32.vlgmr.msra.gmra.mxu0 %v4157_v41  ;;  %2835 = vmatmul.mubr.f32.vlgmr.msra.gmra.mxu1 %v4157_v41 }
 0x2bf   : > { %2837 = vmatprep.subr.mxu0 %v4449_v18  ;;  %2872 = vmatprep.subr.mxu1 %v4449_v18 }
 0x2c0   : > { %2838 = vmatpush3.msra.mxu0 %v3178_v47  ;;  %2873 = vmatpush3.msra.mxu1 %v3179_v48 }
 0x2c1   : > { %2839 = vmatprep.subr.mxu0 %v4449_v18  ;;  %2874 = vmatprep.subr.mxu1 %v4449_v18 }
 0x2c2   : > { %2840 = vmatpush3.msra.mxu0 %v3180_v49  ;;  %2875 = vmatpush3.msra.mxu1 %v3181_v50 }
 0x2c3   : > { %2841 = vmatprep.subr.mxu0 %v4449_v18  ;;  %2876 = vmatprep.subr.mxu1 %v4449_v18 }
 0x2c4   : > { %2842 = vmatpush3.msra.mxu0 %v3182_v51  ;;  %2877 = vmatpush3.msra.mxu1 %v3183_v52  ;;  %v3210_v51 = vld [vmem:[#allocation10 + $0x1f0] sm:$0xff]  ;;  %v3211_v52 = vld [vmem:[#allocation10 + $0x1f8] sm:$0xff] }
 0x2c5   : > { %2843 = vmatprep.subr.mxu0 %v4449_v18  ;;  %2878 = vmatprep.subr.mxu1 %v4449_v18 }
 0x2c6   : > { %2844 = vmatpush3.msra.mxu0 %v3184_v53  ;;  %2879 = vmatpush3.msra.mxu1 %v3185_v54  ;;  %v3213_v53 = vld [vmem:[#allocation10 + $0x1d8] sm:$0xff]  ;;  %v3214_v54 = vld [vmem:[#allocation10 + $0x1b0] sm:$0xff] }
 0x2c7   : > { %2845 = vmatprep.subr.mxu0 %v4449_v18  ;;  %2880 = vmatprep.subr.mxu1 %v4449_v18 }
 0x2c8   : > { %2846 = vmatpush3.msra.mxu0 %v3186_v55  ;;  %2881 = vmatpush3.msra.mxu1 %v3187_v56  ;;  %v3215_v55 = vld [vmem:[#allocation10 + $0x1b8] sm:$0xff]  ;;  %v3216_v56 = vld [vmem:[#allocation10 + $0x190] sm:$0xff] }
 0x2c9   : > { %2847 = vmatprep.subr.mxu0 %v4449_v18  ;;  %2882 = vmatprep.subr.mxu1 %v4449_v18 }
 0x2ca   : > { %2848 = vmatpush3.msra.mxu0 %v3188_v57  ;;  %2883 = vmatpush3.msra.mxu1 %v3189_v58  ;;  %v3217_v57 = vld [vmem:[#allocation10 + $0x198] sm:$0xff]  ;;  %v3218_v58 = vld [vmem:[#allocation10 + $0x170] sm:$0xff] }
 0x2cb   : > { %2849 = vmatprep.subr.mxu0 %v4449_v18  ;;  %2884 = vmatprep.subr.mxu1 %v4449_v18 }
 0x2cc   : > { %2850 = vmatpush3.msra.mxu0 %v3190_v59  ;;  %2885 = vmatpush3.msra.mxu1 %v3191_v60  ;;  %v3219_v59 = vld [vmem:[#allocation10 + $0x178] sm:$0xff]  ;;  %v3220_v60 = vld [vmem:[#allocation10 + $0x150] sm:$0xff] }
 0x2cd   : > { %2851 = vmatprep.subr.mxu0 %v4449_v18  ;;  %2886 = vmatprep.subr.mxu1 %v4449_v18 }
 0x2ce   : > { %2852 = vmatpush3.msra.mxu0 %v3192_v61  ;;  %2887 = vmatpush3.msra.mxu1 %v3193_v62  ;;  %v3221_v61 = vld [vmem:[#allocation10 + $0x158] sm:$0xff]  ;;  %v3222_v62 = vld [vmem:[#allocation10 + $0x130] sm:$0xff] }
 0x2cf   : > { %2853 = vmatprep.subr.mxu0 %v4449_v18  ;;  %2888 = vmatprep.subr.mxu1 %v4449_v18 }
 0x2d0   : > { %2854 = vmatpush3.msra.mxu0 %v3194_v63  ;;  %2889 = vmatpush3.msra.mxu1 %v3195_v0  ;;  %v3223_v63 = vld [vmem:[#allocation10 + $0x138] sm:$0xff]  ;;  %v3224_v0 = vld [vmem:[#allocation10 + $0x110] sm:$0xff] }
 0x2d1   : > { %2855 = vmatprep.subr.mxu0 %v4449_v18  ;;  %2890 = vmatprep.subr.mxu1 %v4449_v18 }
 0x2d2   : > { %2856 = vmatpush3.msra.mxu0 %v3196_v1  ;;  %2891 = vmatpush3.msra.mxu1 %v3197_v2  ;;  %v3225_v1 = vld [vmem:[#allocation10 + $0x118] sm:$0xff]  ;;  %v3226_v2 = vld [vmem:[#allocation10 + $0xf0] sm:$0xff] }
 0x2d3   : > { %2857 = vmatprep.subr.mxu0 %v4449_v18  ;;  %2892 = vmatprep.subr.mxu1 %v4449_v18 }
 0x2d4   : > { %2858 = vmatpush3.msra.mxu0 %v3198_v3  ;;  %2893 = vmatpush3.msra.mxu1 %v3199_v4  ;;  %v3227_v3 = vld [vmem:[#allocation10 + $0xf8] sm:$0xff]  ;;  %v3228_v4 = vld [vmem:[#allocation10 + $0xd0] sm:$0xff] }
 0x2d5   : > { %2859 = vmatprep.subr.mxu0 %v4449_v18  ;;  %2894 = vmatprep.subr.mxu1 %v4449_v18 }
 0x2d6   : > { %2860 = vmatpush3.msra.mxu0 %v3200_v5  ;;  %2895 = vmatpush3.msra.mxu1 %v3201_v6  ;;  %v3229_v5 = vld [vmem:[#allocation10 + $0xd8] sm:$0xff]  ;;  %v3230_v6 = vld [vmem:[#allocation10 + $0xb0] sm:$0xff] }
 0x2d7   : > { %2861 = vmatprep.subr.mxu0 %v4449_v18  ;;  %2896 = vmatprep.subr.mxu1 %v4449_v18 }
 0x2d8   : > { %2862 = vmatpush3.msra.mxu0 %v3202_v7  ;;  %2897 = vmatpush3.msra.mxu1 %v3203_v8  ;;  %v3231_v7 = vld [vmem:[#allocation10 + $0xb8] sm:$0xff]  ;;  %v3232_v8 = vld [vmem:[#allocation10 + $0x90] sm:$0xff] }
 0x2d9   : > { %2863 = vmatprep.subr.mxu0 %v4449_v18  ;;  %2898 = vmatprep.subr.mxu1 %v4449_v18 }
 0x2da   : > { %2864 = vmatpush3.msra.mxu0 %v3204_v9  ;;  %2899 = vmatpush3.msra.mxu1 %v3205_v29  ;;  %v3233_v9 = vld [vmem:[#allocation10 + $0x98] sm:$0xff]  ;;  %v3234_v29 = vld [vmem:[#allocation10 + $0x70] sm:$0xff] }
 0x2db   : > { %2865 = vmatprep.subr.mxu0 %v4449_v18  ;;  %2900 = vmatprep.subr.mxu1 %v4449_v18 }
 0x2dc   : > { %2866 = vmatpush3.msra.mxu0 %v3206_v34  ;;  %2901 = vmatpush3.msra.mxu1 %v3207_v39  ;;  %v3235_v34 = vld [vmem:[#allocation10 + $0x78] sm:$0xff]  ;;  %v3236_v39 = vld [vmem:[#allocation10 + $0x50] sm:$0xff] }
 0x2dd   : > { %2867 = vmatprep.subr.mxu0 %v4449_v18  ;;  %2902 = vmatprep.subr.mxu1 %v4449_v18 }
 0x2de   : > { %2868 = vmatpush3.msra.mxu0 %v3208_v32  ;;  %2903 = vmatpush3.msra.mxu1 %v3209_v45  ;;  %v3237_v32 = vld [vmem:[#allocation10 + $0x58] sm:$0xff]  ;;  %v3238_v45 = vld [vmem:[#allocation10 + $0x30] sm:$0xff] }
 0x2df   : > { %2869 = vmatprep.mubr.msk.f32.mxu0 %vm3446_vm1, %v4449_v18  ;;  %2904 = vmatprep.mubr.msk.f32.mxu1 %vm3446_vm1, %v4449_v18 }
 0x2e0   : > { %2907 = vmatprep.subr.mxu0 %v4449_v18  ;;  %2942 = vmatprep.subr.mxu1 %v4449_v18 }
 0x35d   : > { %v1327_v26 = vpop.f32.mrf.mxu0  ;;  %v1405_v46 = vpop.f32.mrf.mxu1 }
 0x35e   : > { %v1409_v14 = vadd.f32 %v1405_v46, %v4481_v13  ;;  %v1331_v16 = vadd.f32 %v1327_v26, %v4482_v15  ;;  %v3239_v26 = vld [vmem:[#allocation10 + $0x38] sm:$0xff]  ;;  %v3240_v46 = vld [vmem:[#allocation10 + $0x10] sm:$0xff] }
 0x35f   : > { %v2731_v11 = vpop.f32.mrf.mxu0  ;;  %v2766_v12 = vpop.f32.mrf.mxu1 }
 0x360   : > { %v2116_v17 = vmul.f32 -1.442695, %v1409_v14  ;;  %v2115_v22 = vmul.f32 -1.442695, %v1331_v16  ;;  %v3241_v11 = vld [vmem:[#allocation10 + $0x18] sm:$0xff]  ;;  %v4485_v16 = vld [vmem:[#allocation55_spill] sm:$0xff] }
 0x362   : > { %3146 = vpow2.f32 %v2116_v17 }
 0x363   : > { %3148 = vpow2.f32 %v2115_v22  ;;  %v4486_v22 = vld [vmem:[#allocation53_spill] sm:$0xff] }
 0x36f   : > { %v3147_v43 = vpop.eup %3146 }
 0x370   : > { %v3149_v38 = vpop.eup %3148  ;;  %v1413_v20 = vadd.f32 1.0, %v3147_v43 }
 0x371   : > { %v1335_v30 = vadd.f32 1.0, %v3149_v38 }
 0x372   : > { %3150 = vrcp.f32 %v1413_v20 }
 0x373   : > { %3152 = vrcp.f32 %v1335_v30 }
 0x37e   : > { %v1483_v37 = vpop.f32.mrf.mxu0  ;;  %v1556_v25 = vpop.f32.mrf.mxu1 }
 0x37f   : > { %v1487_v21 = vadd.f32 %v1483_v37, %v4483_v23  ;;  %v1560_v28 = vadd.f32 %v1556_v25, %v4484_v27  ;;  %v3151_v19 = vpop.eup %3150  ;;  %v4487_v27 = vld [vmem:[#allocation54_spill] sm:$0xff] }
 0x380   : > { %v2801_v33 = vpop.f32.mrf.mxu0  ;;  %v2836_v36 = vpop.f32.mrf.mxu1  ;;  %v1567_v31 = vmul.f32 %v3151_v19, %v4154_v44  ;;  %v3212_v44 = vld [vmem:[#allocation10 + $0x1d0] sm:$0xff] }
 0x381   : > { %3154 = vtanh.f32 %v1487_v21  ;;  %v2117_v24 = vmul.f32 -1.442695, %v1560_v28  ;;  %v3153_v42 = vpop.eup %3152  ;;  %v4488_v33 = vld [vmem:[#allocation56_spill] sm:$0xff] }
 0x383   : > { %3156 = vpow2.f32 %v2117_v24 }
 0x38e   : > { %v3155_v40 = vpop.eup %3154 }
 0x38f   : > { %v1568_v10 = vmul.f32 %v3155_v40, %v3153_v42 }
 0x390   : > { %v3157_v35 = vpop.eup %3156 }
 0x391   : > { %v4272_v41 = vadd.f32 %v1568_v10, %v1567_v31  ;;  %v1564_v47 = vadd.f32 1.0, %v3157_v35 }
 0x393   : > { %3158 = vtanh.f32 %v4272_v41 }
 0x394   : > { %3160 = vrcp.f32 %v1564_v47 }
 0x3a0   : > { %v3159_v48 = vpop.eup %3158 }
 0x3a1   : > { %v3161_v49 = vpop.eup %3160 }
 0x3a2   : > { %v4275_v50 = vmul.f32 %v3161_v49, %v3159_v48 }
 0x3a4   : > { %2870 = vmatmul.mubr.f32.vlgmr.msra.gmra.mxu0 %v4275_v50  ;;  %2905 = vmatmul.mubr.f32.vlgmr.msra.gmra.mxu1 %v4275_v50 }
 0x3a5   : > { %2908 = vmatpush3.msra.mxu0 %v3210_v51  ;;  %2943 = vmatpush3.msra.mxu1 %v3211_v52 }
 0x3a6   : > { %2909 = vmatprep.subr.mxu0 %v4449_v18  ;;  %2944 = vmatprep.subr.mxu1 %v4449_v18 }
 0x3a7   : > { %2910 = vmatpush3.msra.mxu0 %v3212_v44  ;;  %2945 = vmatpush3.msra.mxu1 %v3213_v53 }
 0x3a8   : > { %2911 = vmatprep.subr.mxu0 %v4449_v18  ;;  %2946 = vmatprep.subr.mxu1 %v4449_v18 }
 0x3a9   : > { %2912 = vmatpush3.msra.mxu0 %v3214_v54  ;;  %2947 = vmatpush3.msra.mxu1 %v3215_v55 }
 0x3aa   : > { %2913 = vmatprep.subr.mxu0 %v4449_v18  ;;  %2948 = vmatprep.subr.mxu1 %v4449_v18 }
 0x3ab   : > { %2914 = vmatpush3.msra.mxu0 %v3216_v56  ;;  %2949 = vmatpush3.msra.mxu1 %v3217_v57 }
 0x3ac   : > { %2915 = vmatprep.subr.mxu0 %v4449_v18  ;;  %2950 = vmatprep.subr.mxu1 %v4449_v18 }
 0x3ad   : > { %2916 = vmatpush3.msra.mxu0 %v3218_v58  ;;  %2951 = vmatpush3.msra.mxu1 %v3219_v59 }
 0x3ae   : > { %2917 = vmatprep.subr.mxu0 %v4449_v18  ;;  %2952 = vmatprep.subr.mxu1 %v4449_v18 }
 0x3af   : > { %2918 = vmatpush3.msra.mxu0 %v3220_v60  ;;  %2953 = vmatpush3.msra.mxu1 %v3221_v61 }
 0x3b0   : > { %2919 = vmatprep.subr.mxu0 %v4449_v18  ;;  %2954 = vmatprep.subr.mxu1 %v4449_v18 }
 0x3b1   : > { %2920 = vmatpush3.msra.mxu0 %v3222_v62  ;;  %2955 = vmatpush3.msra.mxu1 %v3223_v63 }
 0x3b2   : > { %2921 = vmatprep.subr.mxu0 %v4449_v18  ;;  %2956 = vmatprep.subr.mxu1 %v4449_v18 }
 0x3b3   : > { %2922 = vmatpush3.msra.mxu0 %v3224_v0  ;;  %2957 = vmatpush3.msra.mxu1 %v3225_v1 }
 0x3b4   : > { %2923 = vmatprep.subr.mxu0 %v4449_v18  ;;  %2958 = vmatprep.subr.mxu1 %v4449_v18 }
 0x3b5   : > { %2924 = vmatpush3.msra.mxu0 %v3226_v2  ;;  %2959 = vmatpush3.msra.mxu1 %v3227_v3 }
 0x3b6   : > { %2925 = vmatprep.subr.mxu0 %v4449_v18  ;;  %2960 = vmatprep.subr.mxu1 %v4449_v18 }
 0x3b7   : > { %2926 = vmatpush3.msra.mxu0 %v3228_v4  ;;  %2961 = vmatpush3.msra.mxu1 %v3229_v5 }
 0x3b8   : > { %2927 = vmatprep.subr.mxu0 %v4449_v18  ;;  %2962 = vmatprep.subr.mxu1 %v4449_v18 }
 0x3b9   : > { %2928 = vmatpush3.msra.mxu0 %v3230_v6  ;;  %2963 = vmatpush3.msra.mxu1 %v3231_v7 }
 0x3ba   : > { %2929 = vmatprep.subr.mxu0 %v4449_v18  ;;  %2964 = vmatprep.subr.mxu1 %v4449_v18 }
 0x3bb   : > { %2930 = vmatpush3.msra.mxu0 %v3232_v8  ;;  %2965 = vmatpush3.msra.mxu1 %v3233_v9 }
 0x3bc   : > { %2931 = vmatprep.subr.mxu0 %v4449_v18  ;;  %2966 = vmatprep.subr.mxu1 %v4449_v18 }
 0x3bd   : > { %2932 = vmatpush3.msra.mxu0 %v3234_v29  ;;  %2967 = vmatpush3.msra.mxu1 %v3235_v34 }
 0x3be   : > { %2933 = vmatprep.subr.mxu0 %v4449_v18  ;;  %2968 = vmatprep.subr.mxu1 %v4449_v18 }
 0x3bf   : > { %2934 = vmatpush3.msra.mxu0 %v3236_v39  ;;  %2969 = vmatpush3.msra.mxu1 %v3237_v32 }
 0x3c0   : > { %2935 = vmatprep.subr.mxu0 %v4449_v18  ;;  %2970 = vmatprep.subr.mxu1 %v4449_v18 }
 0x3c1   : > { %2936 = vmatpush3.msra.mxu0 %v3238_v45  ;;  %2971 = vmatpush3.msra.mxu1 %v3239_v26 }
 0x3c2   : > { %2937 = vmatprep.subr.mxu0 %v4449_v18  ;;  %2972 = vmatprep.subr.mxu1 %v4449_v18 }
 0x3c3   : > { %2938 = vmatpush3.msra.mxu0 %v3240_v46  ;;  %2939 = vmatprep.mubr.msk.f32.mxu0 %vm3446_vm1, %v4449_v18 }
 0x3c4   : > { %2973 = vmatpush3.msra.mxu1 %v3241_v11  ;;  %2974 = vmatprep.mubr.msk.f32.mxu1 %vm3446_vm1, %v4449_v18 }
 0x3c5   : > { %2940 = vmatmul.mubr.f32.vlgmr.msra.gmra.mxu0 %v4275_v50  ;;  %2975 = vmatmul.mubr.f32.vlgmr.msra.gmra.mxu1 %v4275_v50 }
 0x464   : > { %v1639_v12 = vpop.f32.mrf.mxu0  ;;  %v1717_v13 = vpop.f32.mrf.mxu1 }
 0x465   : > { %v1721_v17 = vadd.f32 %v1717_v13, %v4485_v16  ;;  %v1643_v43 = vadd.f32 %v1639_v12, %v4486_v22 }
 0x466   : > { %v2871_v14 = vpop.f32.mrf.mxu0  ;;  %v2906_v15 = vpop.f32.mrf.mxu1 }
 0x467   : > { %v2119_v38 = vmul.f32 -1.442695, %v1721_v17  ;;  %v2118_v20 = vmul.f32 -1.442695, %v1643_v43 }
 0x469   : > { %3162 = vpow2.f32 %v2119_v38 }
 0x46a   : > { %3164 = vpow2.f32 %v2118_v20 }
 0x476   : > { %v3163_v30 = vpop.eup %3162 }
 0x477   : > { %v3165_v37 = vpop.eup %3164  ;;  %v1725_v25 = vadd.f32 1.0, %v3163_v30 }
 0x478   : > { %v1647_v18 = vadd.f32 1.0, %v3165_v37 }
 0x479   : > { %3166 = vrcp.f32 %v1725_v25 }
 0x47a   : > { %3168 = vrcp.f32 %v1647_v18 }
 0x485   : > { %v1795_v23 = vpop.f32.mrf.mxu0  ;;  %v1868_v21 = vpop.f32.mrf.mxu1 }
 0x486   : > { %v1799_v28 = vadd.f32 %v1795_v23, %v4487_v27  ;;  %v1872_v36 = vadd.f32 %v1868_v21, %v4488_v33  ;;  %v3167_v40 = vpop.eup %3166 }
 0x487   : > { %v2941_v24 = vpop.f32.mrf.mxu0  ;;  %v2976_v19 = vpop.f32.mrf.mxu1  ;;  %v1879_v35 = vmul.f32 %v3167_v40, %v4272_v41 }
 0x488   : > { %3170 = vtanh.f32 %v1799_v28  ;;  %v2120_v42 = vmul.f32 -1.442695, %v1872_v36  ;;  %v3169_v31 = vpop.eup %3168 }
 0x48a   : > { %3172 = vpow2.f32 %v2120_v42 }
 0x495   : > { %v3171_v10 = vpop.eup %3170 }
 0x496   : > { %v1880_v47 = vmul.f32 %v3171_v10, %v3169_v31 }
 0x497   : > { %v3173_v48 = vpop.eup %3172 }
 0x498   : > { %v1881_v49 = vadd.f32 %v1880_v47, %v1879_v35  ;;  %v1876_v50 = vadd.f32 1.0, %v3173_v48 }
 0x49a   : > { %3174 = vtanh.f32 %v1881_v49  ;;  %1885 = vst [vmem:[#allocation4] sm:$0xff] %v1881_v49 }
 0x49b   : > { %3176 = vrcp.f32 %v1876_v50 }
 0x4a7   : > { %v3175_v51 = vpop.eup %3174  ;;  %1889 = sbr.rel (%p2121_p12) target bundleno = 1425 (0x591), region = 68 }
 0x4a8   : > { %v3177_v52 = vpop.eup %3176 }
 0x4a9   : > { %v1883_v44 = vmul.f32 %v3177_v52, %v3175_v51 }
 0x4ab   : > { %1884 = vst [vmem:[#allocation3] sm:$0xff] %v1883_v44 }
 0x4ac   : > { %v1906_v53 = vld [vmem:[#allocation11 + $0x78] sm:$0xff]  ;;  %v3447_v54 = vmov 0.0   ;;  %v1905_v55 = vld [vmem:[#allocation11 + $0x70] sm:$0xff]  ;;  %vm3448_vm2 = vmmov 0   ;;  %v1904_v41 = vld [vmem:[#allocation11 + $0x68] sm:$0xff] }
 0x4ad   : > { %2977 = vmatprep.subr.mxu0 %v3447_v54  ;;  %3009 = vmatprep.mubr.msk.f32.mxu0 %vm3448_vm2, %v3447_v54  ;;  %v1903_v56 = vld [vmem:[#allocation11 + $0x60] sm:$0xff]  ;;  %v1902_v57 = vld [vmem:[#allocation11 + $0x58] sm:$0xff]  ;;  %v1901_v58 = vld [vmem:[#allocation11 + $0x50] sm:$0xff] }
 0x4ae   : > { %2978 = vmatpush3.msra.mxu0 %v1906_v53  ;;  %v1900_v59 = vld [vmem:[#allocation11 + $0x48] sm:$0xff]  ;;  %v1899_v60 = vld [vmem:[#allocation11 + $0x40] sm:$0xff]  ;;  %v1898_v61 = vld [vmem:[#allocation11 + $0x38] sm:$0xff] }
 0x4af   : > { %2979 = vmatprep.subr.mxu0 %v3447_v54  ;;  %v1897_v62 = vld [vmem:[#allocation11 + $0x30] sm:$0xff]  ;;  %v1896_v63 = vld [vmem:[#allocation11 + $0x28] sm:$0xff]  ;;  %v1895_v0 = vld [vmem:[#allocation11 + $0x20] sm:$0xff] }
 0x4b0   : > { %2980 = vmatpush3.msra.mxu0 %v1905_v55  ;;  %v1894_v1 = vld [vmem:[#allocation11 + $0x18] sm:$0xff]  ;;  %v1893_v2 = vld [vmem:[#allocation11 + $0x10] sm:$0xff]  ;;  %v1892_v3 = vld [vmem:[#allocation11 + $0x8] sm:$0xff] }
 0x4b1   : > { %2981 = vmatprep.subr.mxu0 %v3447_v54  ;;  %v1891_v4 = vld [vmem:[#allocation11] sm:$0xff]  ;;  %v2122_v6 = vld [vmem:[%s4364_s5] ss:$0 sm:$0xff] }
 0x4b2   : > { %2982 = vmatpush3.msra.mxu0 %v1904_v41  ;;  %v1890_v5 = vld [vmem:[#allocation3] sm:$0xff] }
 0x4b3   : > { %2983 = vmatprep.subr.mxu0 %v3447_v54 }
 0x4b4   : > { %2984 = vmatpush3.msra.mxu0 %v1903_v56 }
 0x4b5   : > { %2985 = vmatprep.subr.mxu0 %v3447_v54 }
 0x4b6   : > { %2986 = vmatpush3.msra.mxu0 %v1902_v57 }
 0x4b7   : > { %2987 = vmatprep.subr.mxu0 %v3447_v54 }
 0x4b8   : > { %2988 = vmatpush3.msra.mxu0 %v1901_v58 }
 0x4b9   : > { %2989 = vmatprep.subr.mxu0 %v3447_v54 }
 0x4ba   : > { %2990 = vmatpush3.msra.mxu0 %v1900_v59 }
 0x4bb   : > { %2991 = vmatprep.subr.mxu0 %v3447_v54 }
 0x4bc   : > { %2992 = vmatpush3.msra.mxu0 %v1899_v60 }
 0x4bd   : > { %2993 = vmatprep.subr.mxu0 %v3447_v54 }
 0x4be   : > { %2994 = vmatpush3.msra.mxu0 %v1898_v61 }
 0x4bf   : > { %2995 = vmatprep.subr.mxu0 %v3447_v54 }
 0x4c0   : > { %2996 = vmatpush3.msra.mxu0 %v1897_v62 }
 0x4c1   : > { %2997 = vmatprep.subr.mxu0 %v3447_v54 }
 0x4c2   : > { %2998 = vmatpush3.msra.mxu0 %v1896_v63 }
 0x4c3   : > { %2999 = vmatprep.subr.mxu0 %v3447_v54 }
 0x4c4   : > { %3000 = vmatpush3.msra.mxu0 %v1895_v0 }
 0x4c5   : > { %3001 = vmatprep.subr.mxu0 %v3447_v54 }
 0x4c6   : > { %3002 = vmatpush3.msra.mxu0 %v1894_v1 }
 0x4c7   : > { %3003 = vmatprep.subr.mxu0 %v3447_v54 }
 0x4c8   : > { %3004 = vmatpush3.msra.mxu0 %v1893_v2 }
 0x4c9   : > { %3005 = vmatprep.subr.mxu0 %v3447_v54 }
 0x4ca   : > { %3006 = vmatpush3.msra.mxu0 %v1892_v3 }
 0x4cb   : > { %3007 = vmatprep.subr.mxu0 %v3447_v54 }
 0x4cc   : > { %3008 = vmatpush3.msra.mxu0 %v1891_v4 }
 0x4cd   : > { %3010 = vmatmul.mubr.f32.vlgmr.msra.gmra.mxu0 %v1890_v5 }
 0x58d   : > { %v1980_v7 = vpop.f32.mrf.mxu0 }
 0x58e   : > { %v1981_v8 = vadd.f32 %v2122_v6, %v1980_v7 }
 0x58f   : > { %v3011_v9 = vpop.f32.mrf.mxu0 }
 0x590   : > { %1984 = vst [vmem:[#allocation13] sm:$0xff] %v1981_v8 }
 0x591 PF: > { %s4489_s30 = sadd.s32 4294967295, %s3434_s26   ;;  %s3449_s10 = smov [#allocation13]  }
 0x592   : > { %p4326_p11 = scmp.eq.s32.totalorder %s4489_s30, 1  ;;  %s1994_s20 = sshll.u32 %s3449_s10, 4  ;;  %s1995_s20 = int_to_ptr.vmem [resolvable:$true] %s1994_s20 }
 0x593   : > { %s3348_s11 = scalar_lea.vmem %s1995_s20, 128  ;;  %p3355_p2 = scmp.lt.s32.totalorder %s1995_s20, %s1995_s20 }
 0x594   : > { %p3349_p7 = scmp.ne.s32.totalorder %s1995_s20, %s3348_s11  ;;  %p3356_p3 = scmp.lt.s32.totalorder %s3348_s11, %s3348_s11 }
 0x596   : > { %p3350_p13 = pnand %p3349_p7, %p4326_p11  ;;  %p3357_p6 = por %p3356_p3, %p3355_p2 }
 0x598   : > { %p3351_p0 = pneg %p3350_p13 }
 0x59a   : > { %p3358_p1 = pnand %p3357_p6, %p3351_p0 }
 0x59c   : > { %3361 = shalt.err (!%p3358_p1)
}
 0x59d   : > { %3027 = dma.vmem_to_hbm [thread:$0]  (%p4326_p11), %s1995_s20, 128, %s4365_s6, [#allocation7]  }
 0x59e   : > { %3409 = dma.done.wait (%p4326_p11), [#allocation7], 128  }
 0x59f   : > { %3411 = vsyncadd (%p4326_p11), [#allocation7], 4294967168 }
 0x5a0 PF: > { %s22_s26 = sadd.s32 1, %s3434_s26   ;;  %s4491_s15 = smov %s3583_s21 }
 0x5a1   : > { %p19_p4 = scmp.ge.s32.totalorder %s22_s26, 4   ;;  %s4492_s21 = smov %s3418_s22 }
 0x5a2   : > { %s4493_s22 = smov %s3422_s23  ;;  %s4494_s23 = smov %s4491_s15 }
 0x5a3   : > { %s4495_s24 = smov %s3430_s25  ;;  %s4496_s25 = smov %s4498_s14 }
 0x5a4   :  { %21 = sbr.rel (!%p19_p4) target bundleno = 7 (0x7), region = 102 }
 0x5a9   :  { %2007 = vsyncpa [#allocation6], 1 }
 0x5aa   :  { %2009 = vsyncpa [#allocation6 + $0x1], 1 }
 0x5ab   :  { %2010 = vsyncpa [#allocation9], 1 }
 0x5ac   :  { %2011 = vsyncpa [#allocation12], 1 }
 0x5ad   :  { %2012 = vsyncpa [#allocation7], 1 }
 0x5ae   :  { %2014 = vsyncpa [#allocation7 + $0x1], 1 }

// kernel: tpu_custom_call.1
= control target key start
LH: loop header
LB: loop body
LE: loop exit
PB: predicated region body
PF: predicated region fallthrough
CT: control target
= control target key end

     0   :  { %11 = vsyncpa [#allocation6], 0  ;;  %s4359_s0 = inlined_call_operand.hbm [shape: f32[8,8,16], index: 0, kind: input, shape index: {}]   ;;  %s4360_s1 = inlined_call_operand.hbm [shape: f32[16,512], index: 1, kind: input, shape index: {}]   ;;  %s4361_s2 = inlined_call_operand.hbm [shape: f32[128,512], index: 2, kind: input, shape index: {}]   ;;  %s4362_s3 = inlined_call_operand.vmem [shape: f32[1,512], index: 3, kind: input, shape index: {}]   ;;  %s4363_s4 = inlined_call_operand.hbm [shape: f32[128,128], index: 4, kind: input, shape index: {}]   ;;  %s4364_s5 = inlined_call_operand.vmem [shape: f32[1,128], index: 5, kind: input, shape index: {}]   ;;  %s4365_s6 = inlined_call_operand.hbm [shape: f32[8,128], index: 6, kind: output, shape index: {}]  }
   0x1   :  { %13 = vsyncpa [#allocation6 + $0x1], 0 }
   0x2   :  { %14 = vsyncpa [#allocation9], 0 }
   0x3   :  { %15 = vsyncpa [#allocation12], 0 }
   0x4   :  { %16 = vsyncpa [#allocation7], 0  ;;  %s3485_s21 = smov 0   ;;  %s3487_s22 = smov 0  }
   0x5   :  { %s3489_s23 = smov 0   ;;  %s3491_s24 = smov 0  }
   0x6   :  { %s3493_s25 = smov 0   ;;  %s3495_s26 = smov 0  }
   0x7 LB: > { %s4369_s27 = sadd.s32 4294967295, %s3434_s26   ;;  %p56_p0 = scmp.ne.s32.totalorder %s3418_s22, %s3414_s21  ;;  %s3434_s26 = sphi %s3495_s26, %s22_s26   ;;  %s3430_s25 = sphi %s3493_s25, %s4496_s25   ;;  %s3426_s24 = sphi %s3491_s24, %s4495_s24   ;;  %s3422_s23 = sphi %s3489_s23, %s4494_s23   ;;  %s3418_s22 = sphi %s3487_s22, %s4493_s22   ;;  %s3414_s21 = sphi %s3485_s21, %s4492_s21  }
   0x8   : > { %p3517_p1 = scmp.eq.s32.totalorder %s4369_s27, 0  ;;  %p2087_p2 = scmp.ge.s32.totalorder %s3434_s26, 1 }
   0x9   : > { %p198_p3 = scmp.lt.s32.totalorder %s3434_s26, 3  ;;  %s3436_s7 = smov [#allocation8]  }
   0xa   : > { %s4402_s28 = scalar_select %p3517_p1, 1, 0 }
   0xb   : > { %p3525_p4 = por %p3517_p1, %p56_p0  ;;  %p3529_p5 = pnand %p2087_p2, %p198_p3 }
   0xc   : > { %s210_s8 = sshll.u32 %s3436_s7, 4  ;;  %s3437_s10 = smov [#allocation10]   ;;  %s211_s8 = int_to_ptr.vmem [resolvable:$true] %s210_s8 }
   0xd   : > { %s4403_s29 = scalar_select %p3525_p4, 1, 0 }
   0xe   : > { %p3030_p6 = pneg %p3529_p5  ;;  %s223_s11 = sshll.u32 %s3437_s10, 4  ;;  %s224_s11 = int_to_ptr.vmem [resolvable:$true] %s223_s11 }
   0xf   : > { %s3438_s12 = smov [#allocation11]   ;;  %s3253_s14 = scalar_lea.vmem %s211_s8, 1024 }
  0x10   : > { %p3537_p7 = pnand %p3030_p6, %p3517_p1  ;;  %s239_s13 = sshll.u32 %s3438_s12, 4  ;;  %s240_s13 = int_to_ptr.vmem [resolvable:$true] %s239_s13 }
  0x11   : > { %p3254_p9 = scmp.ne.s32.totalorder %s211_s8, %s3253_s14  ;;  %p3261_p12 = scmp.lt.s32.totalorder %s211_s8, %s211_s8 }
  0x12   : > { %p3244_p8 = pneg %p3537_p7  ;;  %p3262_p13 = scmp.lt.s32.totalorder %s3253_s14, %s3253_s14 }
  0x14   : > { %p3256_p10 = pnand %p3254_p9, %p3244_p8  ;;  %p3263_p0 = por %p3262_p13, %p3261_p12 }
  0x16   : > { %p3257_p11 = pneg %p3256_p10 }
  0x18   : > { %p3264_p2 = pnand %p3263_p0, %p3257_p11 }
  0x1a   : > { %3267 = shalt.err (!%p3264_p2)
}
  0x1b   : > { %s3439_s15 = smov 512   ;;  %s3440_s16 = smov 32  }
  0x1c   : > { %3033 = dma.hbm_to_vmem [thread:$0]  (!%p3537_p7), %s4360_s1, 1024, %s211_s8, [#allocation9], %s3439_s15, %s3439_s15, %s3440_s16  }
  0x1d   : > { %s3279_s19 = scalar_lea.vmem %s224_s11, 8192  ;;  %p3287_p10 = scmp.lt.s32.totalorder %s224_s11, %s224_s11 }
  0x1e   : > { %p3280_p3 = scmp.ne.s32.totalorder %s224_s11, %s3279_s19  ;;  %p3288_p1 = scmp.lt.s32.totalorder %s3279_s19, %s3279_s19 }
  0x20   : > { %p3282_p6 = pnand %p3280_p3, %p3244_p8  ;;  %p3289_p12 = por %p3288_p1, %p3287_p10 }
  0x22   : > { %p3283_p9 = pneg %p3282_p6 }
  0x24   : > { %p3290_p11 = pnand %p3289_p12, %p3283_p9 }
  0x26   : > { %3293 = shalt.err (!%p3290_p11)
}
  0x27   : > { %3036 = dma.hbm_to_vmem [thread:$0]  (!%p3537_p7), %s4361_s2, 8192, %s224_s11, [#allocation9], %s3439_s15, %s3439_s15, %s3440_s16  }
  0x28   : > { %s3305_s7 = scalar_lea.vmem %s240_s13, 2048  ;;  %p3313_p3 = scmp.lt.s32.totalorder %s240_s13, %s240_s13 }
  0x29   : > { %p3306_p13 = scmp.ne.s32.totalorder %s240_s13, %s3305_s7  ;;  %p3314_p6 = scmp.lt.s32.totalorder %s3305_s7, %s3305_s7 }
  0x2b   : > { %p3308_p0 = pnand %p3306_p13, %p3244_p8  ;;  %p3315_p4 = por %p3314_p6, %p3313_p3 }
  0x2d   : > { %p3309_p2 = pneg %p3308_p0 }
  0x2f   : > { %p3316_p1 = pnand %p3315_p4, %p3309_p2 }
  0x31   : > { %3319 = shalt.err (!%p3316_p1)
}
  0x32   : > { %s4370_s8 = smov 128   ;;  %s3442_s10 = smov 8  }
  0x33   : > { %3039 = dma.hbm_to_vmem [thread:$0]  (!%p3537_p7), %s4363_s4, 2048, %s240_s13, [#allocation12], %s4370_s8, %s4370_s8, %s3442_s10  }
  0x34   : > { %s31_s14 = sadd.s32 1, %s3430_s25  ;;  %p50_p4 = scmp.ne.s32.totalorder %s3422_s23, %s3418_s22 }
  0x35   : > { %p32_p8 = scmp.ge.s32.totalorder %s31_s14, 2  ;;  %p51_p9 = scmp.eq.s32.totalorder %s3434_s26, 0 }
  0x36   : > { %s43_s15 = sadd.s32 1, %s3422_s23  ;;  %s256_s16 = sand.u32 1, %s3422_s23  }
  0x37   : > { %s4498_s14 = smov (%p32_p8, %s31_s14), 0  ;;  %p52_p10 = por %p51_p9, %p50_p4 }
  0x38   : > { %p3047_p12 = scmp.lt.s32.totalorder %s3434_s26, 2  ;;  %s38_s9 = ssub.s32 %s3430_s25, %s4498_s14 }
  0x39   : > { %s2092_s17 = sshll.u32 %s256_s16, 5  ;;  %p41_p11 = scmp.eq.s32.totalorder %s38_s9, 0 }
  0x3a   : > { %s2127_s18 = sshll.u32 %s3430_s25, 9  ;;  %s260_s19 = scalar_lea.vmem [#allocation5], %s2092_s17 }
  0x3b   : > { %s268_s20 = sshll.u32 %s260_s19, 4  ;;  %s267_s11 = scalar_lea.hbm %s4359_s0, %s2127_s18  ;;  %s269_s20 = int_to_ptr.vmem [resolvable:$true] %s268_s20 }
  0x3c   : > { %s3583_s21 = scalar_select %p41_p11, %s3422_s23, %s43_s15  }
  0x3d   : > { %p3588_p7 = pnand %p3047_p12, %p52_p10  ;;  %s257_s27 = scalar_lea.sflag [#allocation6], %s256_s16 }
  0x3e   : > { %s3333_s8 = scalar_lea.vmem %s269_s20, 512  ;;  %s3443_s9 = smov [#allocation5]  }
  0x3f   : > { %p3322_p13 = pneg %p3588_p7  ;;  %p3334_p0 = scmp.ne.s32.totalorder %s269_s20, %s3333_s8 }
  0x40   : > { %s3338_s15 = sshll.u32 %s3443_s9, 4  ;;  %s3339_s15 = int_to_ptr.vmem [resolvable:$false] %s3338_s15 }
  0x41   : > { %p3336_p2 = pnand %p3334_p0, %p3322_p13  ;;  %s3340_s17 = scalar_lea.vmem %s3339_s15, 1024 }
  0x42   : > { %p3341_p6 = scmp.lt.s32.totalorder %s269_s20, %s3339_s15  ;;  %p3342_p1 = scmp.lt.s32.totalorder %s3340_s17, %s3333_s8 }
  0x43   : > { %p3337_p3 = pneg %p3336_p2 }
  0x44   : > { %p3343_p4 = por %p3342_p1, %p3341_p6 }
  0x46   : > { %p3344_p8 = pnand %p3343_p4, %p3337_p3 }
  0x48   : > { %3347 = shalt.err (!%p3344_p8)
}
  0x49   : > { %s4407_s18 = smov 128   ;;  %280 = sbr.rel (%p3529_p5) target bundleno = 1440 (0x5a0), region = 44 }
  0x4a   : > { %3043 = dma.hbm_to_vmem [thread:$0]  (!%p3588_p7), %s267_s11, 512, %s269_s20, %s257_s27, %s4407_s18, %s4407_s18, %s3442_s10  }
  0x4e   : > { %s282_s16 = sand.u32 1, %s3418_s22   ;;  %p4408_p9 = scmp.ne.s32.totalorder %s4403_s29, 0 }
  0x4f   : > { %s2096_s19 = sshll.u32 %s282_s16, 5  ;;  %s283_s13 = scalar_lea.sflag [#allocation6], %s282_s16 }
  0x50   : > { %s3602_s7 = scalar_lea.vmem [#allocation5], %s2096_s19 }
  0x51   : > { %3397 = dma.done.wait (%p4408_p9), %s283_s13, 512  }
  0x52   : > { %3399 = vsyncadd (%p4408_p9), %s283_s13, 4294966784  ;;  %p4409_p10 = scmp.ne.s32.totalorder %s4402_s28, 0 }
  0x54   : > { %3401 = dma.done.wait (%p4409_p10), [#allocation9], 9216  }
  0x55   : > { %3403 = vsyncadd (%p4409_p10), [#allocation9], 4294958080 }
  0x56   : > { %3405 = dma.done.wait (%p4409_p10), [#allocation12], 2048  }
  0x57   : > { %3407 = vsyncadd (%p4409_p10), [#allocation12], 4294965248  ;;  %p2100_p5 = scmp.ne.s32.totalorder %s3426_s24, 0 }
  0x59   : > { %326 = sbr.rel (%p2100_p5) target bundleno = 96 (0x60), region = 64 }
  0x5e   : > { %v3444_v0 = vmov 0.0  }
  0x5f   : > { %327 = vst [vmem:[#allocation3] sm:$0xff] %v3444_v0  ;;  %328 = vst [vmem:[#allocation4] sm:$0xff] %v3444_v0 }
  0x60 PF: > { %v338_v1 = vld [vmem:[#allocation8 + $0x28] sm:$0xff]  ;;  %v340_v2 = vld [vmem:[#allocation8 + $0x38] sm:$0xff]  ;;  %v337_v3 = vld [vmem:[#allocation8 + $0x20] sm:$0xff]  ;;  %vm363_vm0 = vcmask 130048   ;;  %v4390_v10 = vmov 0.0   ;;  %vm3446_vm1 = vmmov 0  }
  0x61   : > { %404 = vmatprep.subr.mxu0 %v338_v1  ;;  %493 = vmatprep.subr.mxu1 %v340_v2  ;;  %v339_v4 = vld [vmem:[#allocation8 + $0x30] sm:$0xff]  ;;  %v334_v5 = vld [vmem:[#allocation8 + $0x8] sm:$0xff]  ;;  %v336_v6 = vld [vmem:[#allocation8 + $0x18] sm:$0xff]  ;;  %p2121_p12 = scmp.ne.s32.totalorder %s3426_s24, 1 }
  0x62   : > { %405 = vmatpush1.msra.mxu0 %v337_v3  ;;  %494 = vmatpush1.msra.mxu1 %v339_v4  ;;  %v333_v7 = vld [vmem:[#allocation8] sm:$0xff]  ;;  %v335_v8 = vld [vmem:[#allocation8 + $0x10] sm:$0xff]  ;;  %v3622_v12 = vld [vmem:[#allocation10 + $0x1e8] sm:$0xff] }
  0x63   : > { %406 = vmatprep.subr.mxu0 %v334_v5  ;;  %495 = vmatprep.subr.mxu1 %v336_v6  ;;  %v329_v9 = vld [vmem:[%s3602_s7] sm:$0xff]  ;;  %v3630_v14 = vld [vmem:[#allocation10 + $0x1c8] sm:$0xff]  ;;  %v331_v34 = vld [vmem:[%s3602_s7 + $0x10] sm:$0xff] }
  0x64   : > { %407 = vmatpush1.msra.mxu0 %v333_v7  ;;  %440 = vmatprep.mubr.f32.mxu0 %v4390_v10  ;;  %v3620_v11 = vld [vmem:[#allocation10 + $0x1e0] sm:$0xff]  ;;  %v3638_v16 = vld [vmem:[#allocation10 + $0x1a8] sm:$0xff]  ;;  %v332_v39 = vld [vmem:[%s3602_s7 + $0x18] sm:$0xff] }
  0x65   : > { %496 = vmatpush1.msra.mxu1 %v335_v8  ;;  %529 = vmatprep.mubr.f32.mxu1 %v4390_v10  ;;  %v3628_v13 = vld [vmem:[#allocation10 + $0x1c0] sm:$0xff]  ;;  %v3646_v18 = vld [vmem:[#allocation10 + $0x188] sm:$0xff]  ;;  %v3771_v47 = vld [vmem:[#allocation10 + $0x1f0] sm:$0xff] }
  0x66   : > { %2101 = vmatmul.mubr.msk.f32.vlgmr.msra.gmra.mxu0 %vm363_vm0, %v329_v9  ;;  %2105 = vmatmul.mubr.msk.f32.vlgmr.msra.gmra.mxu1 %vm363_vm0, %v329_v9  ;;  %v3636_v15 = vld [vmem:[#allocation10 + $0x1a0] sm:$0xff]  ;;  %4410 = vst [vmem:[#allocation18_spill] sm:$0xff] %v3646_v18  ;;  %v3654_v20 = vld [vmem:[#allocation10 + $0x168] sm:$0xff]  ;;  %v3763_v46 = vld [vmem:[#allocation3] sm:$0xff] }
  0x67   : > { %2417 = vmatprep.subr.mxu0 %v4390_v10  ;;  %2452 = vmatprep.subr.mxu1 %v4390_v10  ;;  %v3644_v17 = vld [vmem:[#allocation10 + $0x180] sm:$0xff]  ;;  %4412 = vst [vmem:[#allocation20_spill] sm:$0xff] %v3654_v20  ;;  %v3662_v22 = vld [vmem:[#allocation10 + $0x148] sm:$0xff]  ;;  %v3773_v48 = vld [vmem:[#allocation10 + $0x1f8] sm:$0xff] }
  0x68   : > { %2418 = vmatpush3.msra.mxu0 %v3620_v11  ;;  %2453 = vmatpush3.msra.mxu1 %v3622_v12  ;;  %v3652_v19 = vld [vmem:[#allocation10 + $0x160] sm:$0xff]  ;;  %4414 = vst [vmem:[#allocation22_spill] sm:$0xff] %v3662_v22  ;;  %v3670_v24 = vld [vmem:[#allocation10 + $0x128] sm:$0xff]  ;;  %v3779_v49 = vld [vmem:[#allocation10 + $0x1d0] sm:$0xff] }
  0x69   : > { %2419 = vmatprep.subr.mxu0 %v4390_v10  ;;  %2454 = vmatprep.subr.mxu1 %v4390_v10  ;;  %4411 = vst [vmem:[#allocation19_spill] sm:$0xff] %v3652_v19  ;;  %v3660_v21 = vld [vmem:[#allocation10 + $0x140] sm:$0xff]  ;;  %4416 = vst [vmem:[#allocation24_spill] sm:$0xff] %v3670_v24  ;;  %v3678_v26 = vld [vmem:[#allocation10 + $0x108] sm:$0xff] }
  0x6a   : > { %2420 = vmatpush3.msra.mxu0 %v3628_v13  ;;  %2455 = vmatpush3.msra.mxu1 %v3630_v14  ;;  %4413 = vst [vmem:[#allocation21_spill] sm:$0xff] %v3660_v21  ;;  %v3668_v23 = vld [vmem:[#allocation10 + $0x120] sm:$0xff]  ;;  %4418 = vst [vmem:[#allocation26_spill] sm:$0xff] %v3678_v26  ;;  %v3686_v28 = vld [vmem:[#allocation10 + $0xe8] sm:$0xff] }
  0x6b   : > { %2421 = vmatprep.subr.mxu0 %v4390_v10  ;;  %2456 = vmatprep.subr.mxu1 %v4390_v10  ;;  %4415 = vst [vmem:[#allocation23_spill] sm:$0xff] %v3668_v23  ;;  %v3676_v25 = vld [vmem:[#allocation10 + $0x100] sm:$0xff]  ;;  %4420 = vst [vmem:[#allocation28_spill] sm:$0xff] %v3686_v28  ;;  %v330_v29 = vld [vmem:[%s3602_s7 + $0x8] sm:$0xff] }
  0x6c   : > { %2422 = vmatpush3.msra.mxu0 %v3636_v15  ;;  %2457 = vmatpush3.msra.mxu1 %v3638_v16  ;;  %4417 = vst [vmem:[#allocation25_spill] sm:$0xff] %v3676_v25  ;;  %v3684_v27 = vld [vmem:[#allocation10 + $0xe0] sm:$0xff]  ;;  %v3699_v31 = vld [vmem:[#allocation10 + $0xc8] sm:$0xff]  ;;  %v3781_v50 = vld [vmem:[#allocation10 + $0x1d8] sm:$0xff] }
  0x6d   : > { %2423 = vmatprep.subr.mxu0 %v4390_v10  ;;  %2458 = vmatprep.subr.mxu1 %v4390_v10  ;;  %4419 = vst [vmem:[#allocation27_spill] sm:$0xff] %v3684_v27  ;;  %v3697_v30 = vld [vmem:[#allocation10 + $0xc0] sm:$0xff]  ;;  %4422 = vst [vmem:[#allocation30_spill] sm:$0xff] %v3699_v31  ;;  %v3707_v33 = vld [vmem:[#allocation10 + $0xa8] sm:$0xff] }
  0x6e   : > { %2424 = vmatpush3.msra.mxu0 %v3644_v17  ;;  %2459 = vmatpush3.msra.mxu1 %v3646_v18  ;;  %4421 = vst [vmem:[#allocation29_spill] sm:$0xff] %v3697_v30  ;;  %v3705_v32 = vld [vmem:[#allocation10 + $0xa0] sm:$0xff]  ;;  %4424 = vst [vmem:[#allocation32_spill] sm:$0xff] %v3707_v33  ;;  %v3720_v36 = vld [vmem:[#allocation10 + $0x88] sm:$0xff] }
  0x6f   : > { %2425 = vmatprep.subr.mxu0 %v4390_v10  ;;  %2460 = vmatprep.subr.mxu1 %v4390_v10  ;;  %4423 = vst [vmem:[#allocation31_spill] sm:$0xff] %v3705_v32  ;;  %v3718_v35 = vld [vmem:[#allocation10 + $0x80] sm:$0xff]  ;;  %4426 = vst [vmem:[#allocation34_spill] sm:$0xff] %v3720_v36  ;;  %v3728_v38 = vld [vmem:[#allocation10 + $0x68] sm:$0xff] }
  0x70   : > { %2426 = vmatpush3.msra.mxu0 %v3652_v19  ;;  %2461 = vmatpush3.msra.mxu1 %v3654_v20  ;;  %4425 = vst [vmem:[#allocation33_spill] sm:$0xff] %v3718_v35  ;;  %v3726_v37 = vld [vmem:[#allocation10 + $0x60] sm:$0xff]  ;;  %4428 = vst [vmem:[#allocation36_spill] sm:$0xff] %v3728_v38  ;;  %v3741_v41 = vld [vmem:[#allocation10 + $0x48] sm:$0xff] }
  0x71   : > { %2427 = vmatprep.subr.mxu0 %v4390_v10  ;;  %2462 = vmatprep.subr.mxu1 %v4390_v10  ;;  %4427 = vst [vmem:[#allocation35_spill] sm:$0xff] %v3726_v37  ;;  %v3739_v40 = vld [vmem:[#allocation10 + $0x40] sm:$0xff]  ;;  %4430 = vst [vmem:[#allocation38_spill] sm:$0xff] %v3741_v41  ;;  %v3749_v43 = vld [vmem:[#allocation10 + $0x28] sm:$0xff] }
  0x72   : > { %2428 = vmatpush3.msra.mxu0 %v3660_v21  ;;  %2463 = vmatpush3.msra.mxu1 %v3662_v22  ;;  %4429 = vst [vmem:[#allocation37_spill] sm:$0xff] %v3739_v40  ;;  %v3747_v42 = vld [vmem:[#allocation10 + $0x20] sm:$0xff]  ;;  %4432 = vst [vmem:[#allocation40_spill] sm:$0xff] %v3749_v43  ;;  %v3759_v45 = vld [vmem:[#allocation10 + $0x8] sm:$0xff] }
  0x73   : > { %2429 = vmatprep.subr.mxu0 %v4390_v10  ;;  %2464 = vmatprep.subr.mxu1 %v4390_v10  ;;  %4431 = vst [vmem:[#allocation39_spill] sm:$0xff] %v3747_v42  ;;  %v3755_v44 = vld [vmem:[#allocation10] sm:$0xff]  ;;  %4434 = vst [vmem:[#allocation42_spill] sm:$0xff] %v3759_v45  ;;  %v3787_v51 = vld [vmem:[#allocation10 + $0x1b0] sm:$0xff] }
  0x74   : > { %2430 = vmatpush3.msra.mxu0 %v3668_v23  ;;  %2465 = vmatpush3.msra.mxu1 %v3670_v24  ;;  %4433 = vst [vmem:[#allocation41_spill] sm:$0xff] %v3755_v44  ;;  %v3789_v52 = vld [vmem:[#allocation10 + $0x1b8] sm:$0xff]  ;;  %v3795_v53 = vld [vmem:[#allocation10 + $0x190] sm:$0xff] }
  0x75   : > { %2431 = vmatprep.subr.mxu0 %v4390_v10  ;;  %2466 = vmatprep.subr.mxu1 %v4390_v10  ;;  %v3797_v54 = vld [vmem:[#allocation10 + $0x198] sm:$0xff]  ;;  %v3803_v55 = vld [vmem:[#allocation10 + $0x170] sm:$0xff] }
  0x76   : > { %2432 = vmatpush3.msra.mxu0 %v3676_v25  ;;  %2467 = vmatpush3.msra.mxu1 %v3678_v26  ;;  %v3805_v56 = vld [vmem:[#allocation10 + $0x178] sm:$0xff]  ;;  %v3811_v57 = vld [vmem:[#allocation10 + $0x150] sm:$0xff] }
  0x77   : > { %2433 = vmatprep.subr.mxu0 %v4390_v10  ;;  %2468 = vmatprep.subr.mxu1 %v4390_v10  ;;  %v3813_v58 = vld [vmem:[#allocation10 + $0x158] sm:$0xff]  ;;  %v3819_v59 = vld [vmem:[#allocation10 + $0x130] sm:$0xff] }
  0x78   : > { %2434 = vmatpush3.msra.mxu0 %v3684_v27  ;;  %2469 = vmatpush3.msra.mxu1 %v3686_v28  ;;  %v3821_v60 = vld [vmem:[#allocation10 + $0x138] sm:$0xff]  ;;  %v3827_v61 = vld [vmem:[#allocation10 + $0x110] sm:$0xff] }
  0x79   : > { %446 = vmatprep.mubr.f32.mxu0 %v4390_v10  ;;  %535 = vmatprep.mubr.f32.mxu1 %v4390_v10  ;;  %v3829_v62 = vld [vmem:[#allocation10 + $0x118] sm:$0xff]  ;;  %v3835_v63 = vld [vmem:[#allocation10 + $0xf0] sm:$0xff] }
  0x7a   : > { %2435 = vmatprep.subr.mxu0 %v4390_v10  ;;  %2470 = vmatprep.subr.mxu1 %v4390_v10  ;;  %v3837_v0 = vld [vmem:[#allocation10 + $0xf8] sm:$0xff]  ;;  %v3843_v1 = vld [vmem:[#allocation10 + $0xd0] sm:$0xff] }
  0x7b   : > { %2102 = vmatmul.mubr.msk.f32.gmra.mxu0 %vm363_vm0, %v330_v29  ;;  %2106 = vmatmul.mubr.msk.f32.gmra.mxu1 %vm363_vm0, %v330_v29  ;;  %v3845_v2 = vld [vmem:[#allocation10 + $0xd8] sm:$0xff]  ;;  %v3851_v3 = vld [vmem:[#allocation10 + $0xb0] sm:$0xff] }
  0x7c   : > { %2436 = vmatpush3.msra.mxu0 %v3697_v30  ;;  %2471 = vmatpush3.msra.mxu1 %v3699_v31  ;;  %v3853_v4 = vld [vmem:[#allocation10 + $0xb8] sm:$0xff]  ;;  %v3859_v5 = vld [vmem:[#allocation10 + $0x90] sm:$0xff] }
  0x7d   : > { %2437 = vmatprep.subr.mxu0 %v4390_v10  ;;  %2472 = vmatprep.subr.mxu1 %v4390_v10  ;;  %v3861_v6 = vld [vmem:[#allocation10 + $0x98] sm:$0xff]  ;;  %v3867_v7 = vld [vmem:[#allocation10 + $0x70] sm:$0xff] }
  0x7e   : > { %2438 = vmatpush3.msra.mxu0 %v3705_v32  ;;  %2473 = vmatpush3.msra.mxu1 %v3707_v33  ;;  %4435 = vst [vmem:[#allocation43_spill] sm:$0xff] %v3861_v6  ;;  %v3869_v8 = vld [vmem:[#allocation10 + $0x78] sm:$0xff]  ;;  %v3875_v9 = vld [vmem:[#allocation10 + $0x50] sm:$0xff] }
  0x7f   : > { %452 = vmatprep.mubr.f32.mxu0 %v4390_v10  ;;  %541 = vmatprep.mubr.f32.mxu1 %v4390_v10  ;;  %4436 = vst [vmem:[#allocation44_spill] sm:$0xff] %v3869_v8  ;;  %v3877_v29 = vld [vmem:[#allocation10 + $0x58] sm:$0xff] }
  0x80   : > { %2439 = vmatprep.subr.mxu0 %v4390_v10  ;;  %2474 = vmatprep.subr.mxu1 %v4390_v10 }
  0x81   : > { %2103 = vmatmul.mubr.msk.f32.gmra.mxu0 %vm363_vm0, %v331_v34  ;;  %2107 = vmatmul.mubr.msk.f32.gmra.mxu1 %vm363_vm0, %v331_v34  ;;  %v3883_v34 = vld [vmem:[#allocation10 + $0x30] sm:$0xff] }
  0x82   : > { %2440 = vmatpush3.msra.mxu0 %v3718_v35  ;;  %2475 = vmatpush3.msra.mxu1 %v3720_v36 }
  0x83   : > { %2441 = vmatprep.subr.mxu0 %v4390_v10  ;;  %2476 = vmatprep.subr.mxu1 %v4390_v10 }
  0x84   : > { %2442 = vmatpush3.msra.mxu0 %v3726_v37  ;;  %2477 = vmatpush3.msra.mxu1 %v3728_v38 }
  0x85   : > { %458 = vmatprep.mubr.f32.mxu0 %v4390_v10  ;;  %547 = vmatprep.mubr.f32.mxu1 %v4390_v10 }
  0x86   : > { %2443 = vmatprep.subr.mxu0 %v4390_v10  ;;  %2478 = vmatprep.subr.mxu1 %v4390_v10 }
  0x87   : > { %2104 = vmatmul.mubr.msk.f32.gmra.mxu0 %vm363_vm0, %v332_v39  ;;  %2108 = vmatmul.mubr.msk.f32.gmra.mxu1 %vm363_vm0, %v332_v39  ;;  %v3885_v39 = vld [vmem:[#allocation10 + $0x38] sm:$0xff] }
  0x88   : > { %2444 = vmatpush3.msra.mxu0 %v3739_v40  ;;  %2479 = vmatpush3.msra.mxu1 %v3741_v41 }
  0x89   : > { %2445 = vmatprep.subr.mxu0 %v4390_v10  ;;  %2480 = vmatprep.subr.mxu1 %v4390_v10 }
  0x8a   : > { %2446 = vmatpush3.msra.mxu0 %v3747_v42  ;;  %2481 = vmatpush3.msra.mxu1 %v3749_v43 }
  0x8b   : > { %2447 = vmatprep.subr.mxu0 %v4390_v10  ;;  %2482 = vmatprep.subr.mxu1 %v4390_v10 }
  0x8c   : > { %2448 = vmatpush3.msra.mxu0 %v3755_v44  ;;  %2449 = vmatprep.mubr.msk.f32.mxu0 %vm3446_vm1, %v4390_v10 }
  0x8d   : > { %2483 = vmatpush3.msra.mxu1 %v3759_v45  ;;  %2484 = vmatprep.mubr.msk.f32.mxu1 %vm3446_vm1, %v4390_v10 }
  0x8e   : > { %2450 = vmatmul.mubr.f32.vlgmr.msra.gmra.mxu0 %v3763_v46  ;;  %2485 = vmatmul.mubr.f32.vlgmr.msra.gmra.mxu1 %v3763_v46 }
  0x8f   : > { %2487 = vmatprep.subr.mxu0 %v4390_v10  ;;  %2522 = vmatprep.subr.mxu1 %v4390_v10 }
  0x90   : > { %2488 = vmatpush3.msra.mxu0 %v3771_v47  ;;  %2523 = vmatpush3.msra.mxu1 %v3773_v48 }
  0x91   : > { %2489 = vmatprep.subr.mxu0 %v4390_v10  ;;  %2524 = vmatprep.subr.mxu1 %v4390_v10 }
  0x92   : > { %2490 = vmatpush3.msra.mxu0 %v3779_v49  ;;  %2525 = vmatpush3.msra.mxu1 %v3781_v50 }
  0x93   : > { %2491 = vmatprep.subr.mxu0 %v4390_v10  ;;  %2526 = vmatprep.subr.mxu1 %v4390_v10 }
  0x94   : > { %2492 = vmatpush3.msra.mxu0 %v3787_v51  ;;  %2527 = vmatpush3.msra.mxu1 %v3789_v52 }
  0x95   : > { %2493 = vmatprep.subr.mxu0 %v4390_v10  ;;  %2528 = vmatprep.subr.mxu1 %v4390_v10 }
  0x96   : > { %2494 = vmatpush3.msra.mxu0 %v3795_v53  ;;  %2529 = vmatpush3.msra.mxu1 %v3797_v54 }
  0x97   : > { %2495 = vmatprep.subr.mxu0 %v4390_v10  ;;  %2530 = vmatprep.subr.mxu1 %v4390_v10 }
  0x98   : > { %2496 = vmatpush3.msra.mxu0 %v3803_v55  ;;  %2531 = vmatpush3.msra.mxu1 %v3805_v56 }
  0x99   : > { %2497 = vmatprep.subr.mxu0 %v4390_v10  ;;  %2532 = vmatprep.subr.mxu1 %v4390_v10 }
  0x9a   : > { %2498 = vmatpush3.msra.mxu0 %v3811_v57  ;;  %2533 = vmatpush3.msra.mxu1 %v3813_v58 }
  0x9b   : > { %2499 = vmatprep.subr.mxu0 %v4390_v10  ;;  %2534 = vmatprep.subr.mxu1 %v4390_v10 }
  0x9c   : > { %2500 = vmatpush3.msra.mxu0 %v3819_v59  ;;  %2535 = vmatpush3.msra.mxu1 %v3821_v60 }
  0x9d   : > { %2501 = vmatprep.subr.mxu0 %v4390_v10  ;;  %2536 = vmatprep.subr.mxu1 %v4390_v10 }
  0x9e   : > { %2502 = vmatpush3.msra.mxu0 %v3827_v61  ;;  %2537 = vmatpush3.msra.mxu1 %v3829_v62 }
  0x9f   : > { %2503 = vmatprep.subr.mxu0 %v4390_v10  ;;  %2538 = vmatprep.subr.mxu1 %v4390_v10 }
  0xa0   : > { %2504 = vmatpush3.msra.mxu0 %v3835_v63  ;;  %2539 = vmatpush3.msra.mxu1 %v3837_v0 }
  0xa1   : > { %2505 = vmatprep.subr.mxu0 %v4390_v10  ;;  %2540 = vmatprep.subr.mxu1 %v4390_v10 }
  0xa2   : > { %2506 = vmatpush3.msra.mxu0 %v3843_v1  ;;  %2541 = vmatpush3.msra.mxu1 %v3845_v2 }
  0xa3   : > { %2507 = vmatprep.subr.mxu0 %v4390_v10  ;;  %2542 = vmatprep.subr.mxu1 %v4390_v10 }
  0xa4   : > { %2508 = vmatpush3.msra.mxu0 %v3851_v3  ;;  %2543 = vmatpush3.msra.mxu1 %v3853_v4 }
  0xa5   : > { %2509 = vmatprep.subr.mxu0 %v4390_v10  ;;  %2544 = vmatprep.subr.mxu1 %v4390_v10 }
  0xa6   : > { %2510 = vmatpush3.msra.mxu0 %v3859_v5  ;;  %2545 = vmatpush3.msra.mxu1 %v3861_v6  ;;  %v3891_v6 = vld [vmem:[#allocation10 + $0x10] sm:$0xff] }
  0xa7   : > { %2511 = vmatprep.subr.mxu0 %v4390_v10  ;;  %2546 = vmatprep.subr.mxu1 %v4390_v10 }
  0xa8   : > { %2512 = vmatpush3.msra.mxu0 %v3867_v7  ;;  %2547 = vmatpush3.msra.mxu1 %v3869_v8  ;;  %v3895_v8 = vld [vmem:[#allocation10 + $0x18] sm:$0xff] }
  0xa9   : > { %2513 = vmatprep.subr.mxu0 %v4390_v10  ;;  %2548 = vmatprep.subr.mxu1 %v4390_v10 }
  0xaa   : > { %2514 = vmatpush3.msra.mxu0 %v3875_v9  ;;  %2549 = vmatpush3.msra.mxu1 %v3877_v29 }
  0xab   : > { %2515 = vmatprep.subr.mxu0 %v4390_v10  ;;  %2550 = vmatprep.subr.mxu1 %v4390_v10 }
  0xac   : > { %2516 = vmatpush3.msra.mxu0 %v3883_v34  ;;  %2551 = vmatpush3.msra.mxu1 %v3885_v39 }
  0xad   : > { %2517 = vmatprep.subr.mxu0 %v4390_v10  ;;  %2552 = vmatprep.subr.mxu1 %v4390_v10 }
  0xae   : > { %2518 = vmatpush3.msra.mxu0 %v3891_v6  ;;  %2519 = vmatprep.mubr.msk.f32.mxu0 %vm3446_vm1, %v4390_v10 }
  0xaf   : > { %2553 = vmatpush3.msra.mxu1 %v3895_v8  ;;  %2554 = vmatprep.mubr.msk.f32.mxu1 %vm3446_vm1, %v4390_v10 }
  0xb0   : > { %2520 = vmatmul.mubr.f32.vlgmr.msra.gmra.mxu0 %v3763_v46  ;;  %2555 = vmatmul.mubr.f32.vlgmr.msra.gmra.mxu1 %v3763_v46  ;;  %v343_v46 = vlaneseq }
  0xb1   : > { %2557 = vmatprep.subr.mxu0 %v4390_v10  ;;  %2592 = vmatprep.subr.mxu1 %v4390_v10 }
  0xb2   : > { %2558 = vmatpush3.msra.mxu0 %v3620_v11  ;;  %2593 = vmatpush3.msra.mxu1 %v3622_v12 }
  0xb3   : > { %2559 = vmatprep.subr.mxu0 %v4390_v10  ;;  %2594 = vmatprep.subr.mxu1 %v4390_v10 }
  0xb4   : > { %2560 = vmatpush3.msra.mxu0 %v3628_v13  ;;  %2595 = vmatpush3.msra.mxu1 %v3630_v14 }
  0xb5   : > { %2561 = vmatprep.subr.mxu0 %v4390_v10  ;;  %2596 = vmatprep.subr.mxu1 %v4390_v10 }
  0xb6   : > { %2562 = vmatpush3.msra.mxu0 %v3636_v15  ;;  %2597 = vmatpush3.msra.mxu1 %v3638_v16 }
  0xb7   : > { %2563 = vmatprep.subr.mxu0 %v4390_v10  ;;  %2598 = vmatprep.subr.mxu1 %v4390_v10 }
  0xb8   : > { %2564 = vmatpush3.msra.mxu0 %v3644_v17  ;;  %2599 = vmatpush3.msra.mxu1 %v3646_v18 }
  0xb9   : > { %2565 = vmatprep.subr.mxu0 %v4390_v10  ;;  %2600 = vmatprep.subr.mxu1 %v4390_v10 }
  0xba   : > { %2566 = vmatpush3.msra.mxu0 %v3652_v19  ;;  %2601 = vmatpush3.msra.mxu1 %v3654_v20 }
  0xbb   : > { %2567 = vmatprep.subr.mxu0 %v4390_v10  ;;  %2602 = vmatprep.subr.mxu1 %v4390_v10 }
  0xbc   : > { %2568 = vmatpush3.msra.mxu0 %v3660_v21  ;;  %2603 = vmatpush3.msra.mxu1 %v3662_v22 }
  0xbd   : > { %2569 = vmatprep.subr.mxu0 %v4390_v10  ;;  %2604 = vmatprep.subr.mxu1 %v4390_v10 }
  0xbe   : > { %2570 = vmatpush3.msra.mxu0 %v3668_v23  ;;  %2605 = vmatpush3.msra.mxu1 %v3670_v24 }
  0xbf   : > { %2571 = vmatprep.subr.mxu0 %v4390_v10  ;;  %2606 = vmatprep.subr.mxu1 %v4390_v10 }
  0xc0   : > { %2572 = vmatpush3.msra.mxu0 %v3676_v25  ;;  %2607 = vmatpush3.msra.mxu1 %v3678_v26 }
  0xc1   : > { %2573 = vmatprep.subr.mxu0 %v4390_v10  ;;  %2608 = vmatprep.subr.mxu1 %v4390_v10 }
  0xc2   : > { %2574 = vmatpush3.msra.mxu0 %v3684_v27  ;;  %2609 = vmatpush3.msra.mxu1 %v3686_v28 }
  0xc3   : > { %2575 = vmatprep.subr.mxu0 %v4390_v10  ;;  %2610 = vmatprep.subr.mxu1 %v4390_v10 }
  0xc4   : > { %2576 = vmatpush3.msra.mxu0 %v3697_v30  ;;  %2611 = vmatpush3.msra.mxu1 %v3699_v31 }
  0xc5   : > { %2577 = vmatprep.subr.mxu0 %v4390_v10  ;;  %2612 = vmatprep.subr.mxu1 %v4390_v10 }
  0xc6   : > { %2578 = vmatpush3.msra.mxu0 %v3705_v32  ;;  %2613 = vmatpush3.msra.mxu1 %v3707_v33 }
  0xc7   : > { %2579 = vmatprep.subr.mxu0 %v4390_v10  ;;  %2614 = vmatprep.subr.mxu1 %v4390_v10 }
  0xc8   : > { %2580 = vmatpush3.msra.mxu0 %v3718_v35  ;;  %2615 = vmatpush3.msra.mxu1 %v3720_v36 }
  0xc9   : > { %2581 = vmatprep.subr.mxu0 %v4390_v10  ;;  %2616 = vmatprep.subr.mxu1 %v4390_v10 }
  0xca   : > { %2582 = vmatpush3.msra.mxu0 %v3726_v37  ;;  %2617 = vmatpush3.msra.mxu1 %v3728_v38 }
  0xcb   : > { %2583 = vmatprep.subr.mxu0 %v4390_v10  ;;  %2618 = vmatprep.subr.mxu1 %v4390_v10 }
  0xcc   : > { %2584 = vmatpush3.msra.mxu0 %v3739_v40  ;;  %2619 = vmatpush3.msra.mxu1 %v3741_v41 }
  0xcd   : > { %2585 = vmatprep.subr.mxu0 %v4390_v10  ;;  %2620 = vmatprep.subr.mxu1 %v4390_v10 }
  0xce   : > { %2586 = vmatpush3.msra.mxu0 %v3747_v42  ;;  %2621 = vmatpush3.msra.mxu1 %v3749_v43  ;;  %v344_v43 = vshrl.u32 %v343_v46, 7 }
  0xcf   : > { %2587 = vmatprep.subr.mxu0 %v4390_v10  ;;  %2622 = vmatprep.subr.mxu1 %v4390_v10 }
  0xd0   : > { %2588 = vmatpush3.msra.mxu0 %v3755_v44  ;;  %2623 = vmatpush3.msra.mxu1 %v3759_v45  ;;  %v345_v40 = vsub.s32 0, %v344_v43  ;;  %v353_v38 = vsub.s32 2, %v344_v43  ;;  %v341_v45 = vld [vmem:[%s4362_s3] sm:$0xf]  ;;  %v349_v44 = vsub.s32 1, %v344_v43  ;;  %v357_v37 = vsub.s32 3, %v344_v43 }
  0xd1   : > { %2589 = vmatprep.mubr.msk.f32.mxu0 %vm3446_vm1, %v4390_v10  ;;  %2624 = vmatprep.mubr.msk.f32.mxu1 %vm3446_vm1, %v4390_v10 }
  0xd2   : > { %2627 = vmatprep.subr.mxu0 %v4390_v10  ;;  %2662 = vmatprep.subr.mxu1 %v4390_v10  ;;  %v346_v33 = vrot.slane %v341_v45, %v345_v40  ;;  %v354_v32 = vrot.slane %v341_v45, %v353_v38  ;;  %v350_v28 = vrot.slane %v341_v45, %v349_v44 }
  0xd3   : > { %v358_v10 = vrot.slane %v341_v45, %v357_v37 }
 0x126   : > { %v442_v42 = vpop.f32.mrf.mxu0  ;;  %v531_v41 = vpop.f32.mrf.mxu1 }
 0x128   : > { %v444_v36 = vpop.f32.mrf.mxu0  ;;  %v533_v35 = vpop.f32.mrf.mxu1 }
 0x13b   : > { %v448_v31 = vpop.f32.mrf.mxu0  ;;  %v537_v30 = vpop.f32.mrf.mxu1 }
 0x13c   : > { %v3980_v27 = vadd.f32 %v448_v31, %v346_v33  ;;  %v3982_v46 = vadd.f32 %v537_v30, %v354_v32 }
 0x13d   : > { %v450_v26 = vpop.f32.mrf.mxu0  ;;  %v539_v25 = vpop.f32.mrf.mxu1 }
 0x13e   : > { %4437 = vst [vmem:[#allocation45_spill] sm:$0xff] %v3980_v27  ;;  %4438 = vst [vmem:[#allocation46_spill] sm:$0xff] %v3982_v46  ;;  %v3984_v24 = vadd.f32 %v450_v26, %v350_v28  ;;  %v3986_v23 = vadd.f32 %v539_v25, %v358_v10 }
 0x140   : > { %4439 = vst [vmem:[#allocation47_spill] sm:$0xff] %v3984_v24  ;;  %4440 = vst [vmem:[#allocation48_spill] sm:$0xff] %v3986_v23 }
 0x141   : > { %v454_v22 = vpop.f32.mrf.mxu0  ;;  %v543_v43 = vpop.f32.mrf.mxu1 }
 0x142   : > { %v3988_v21 = vadd.f32 %v454_v22, %v346_v33  ;;  %v3990_v40 = vadd.f32 %v543_v43, %v354_v32 }
 0x143   : > { %v456_v38 = vpop.f32.mrf.mxu0  ;;  %v545_v20 = vpop.f32.mrf.mxu1 }
 0x144   : > { %4441 = vst [vmem:[#allocation49_spill] sm:$0xff] %v3988_v21  ;;  %4442 = vst [vmem:[#allocation50_spill] sm:$0xff] %v3990_v40  ;;  %v3992_v44 = vadd.f32 %v456_v38, %v350_v28  ;;  %v3994_v31 = vadd.f32 %v545_v20, %v358_v10  ;;  %v445_v38 = vadd.f32 %v444_v36, %v350_v28 }
 0x146   : > { %4443 = vst [vmem:[#allocation51_spill] sm:$0xff] %v3992_v44  ;;  %4444 = vst [vmem:[#allocation52_spill] sm:$0xff] %v3994_v31  ;;  %v443_v44 = vadd.f32 %v442_v42, %v346_v33 }
 0x147   : > { %v460_v30 = vpop.f32.mrf.mxu0  ;;  %v549_v37 = vpop.f32.mrf.mxu1 }
 0x148   : > { %v3996_v45 = vadd.f32 %v460_v30, %v346_v33  ;;  %v3998_v26 = vadd.f32 %v549_v37, %v354_v32 }
 0x149   : > { %v462_v25 = vpop.f32.mrf.mxu0  ;;  %v551_v23 = vpop.f32.mrf.mxu1 }
 0x14a   : > { %4445 = vst [vmem:[#allocation53_spill] sm:$0xff] %v3996_v45  ;;  %4446 = vst [vmem:[#allocation54_spill] sm:$0xff] %v3998_v26  ;;  %v4000_v46 = vadd.f32 %v462_v25, %v350_v28  ;;  %v4002_v22 = vadd.f32 %v551_v23, %v358_v10  ;;  %v532_v25 = vadd.f32 %v531_v41, %v354_v32 }
 0x14c   : > { %4447 = vst [vmem:[#allocation55_spill] sm:$0xff] %v4000_v46  ;;  %4448 = vst [vmem:[#allocation56_spill] sm:$0xff] %v4002_v22  ;;  %v534_v46 = vadd.f32 %v533_v35, %v358_v10 }
 0x14e   : > { %v655_v43 = vpop.f32.mrf.mxu0  ;;  %v749_v40 = vpop.f32.mrf.mxu1 }
 0x14f   : > { %v753_v20 = vadd.f32 %v749_v40, %v445_v38  ;;  %v659_v31 = vadd.f32 %v655_v43, %v443_v44  ;;  %v4460_v43 = vld [vmem:[#allocation26_spill] sm:$0xff]  ;;  %v4461_v38 = vld [vmem:[#allocation27_spill] sm:$0xff] }
 0x150   : > { %v2451_v21 = vpop.f32.mrf.mxu0  ;;  %v2486_v27 = vpop.f32.mrf.mxu1 }
 0x151   : > { %v2110_v24 = vmul.f32 -1.442695, %v753_v20  ;;  %v2109_v19 = vmul.f32 -1.442695, %v659_v31  ;;  %v4462_v20 = vld [vmem:[#allocation28_spill] sm:$0xff] }
 0x153   : > { %3114 = vpow2.f32 %v2110_v24  ;;  %v571_v24 = vld [vmem:[#allocation4] sm:$0xff] }
 0x154   : > { %3116 = vpow2.f32 %v2109_v19 }
 0x160   : > { %v3115_v30 = vpop.eup %3114 }
 0x161   : > { %v3117_v37 = vpop.eup %3116  ;;  %v757_v26 = vadd.f32 1.0, %v3115_v30  ;;  %v4463_v30 = vld [vmem:[#allocation29_spill] sm:$0xff] }
 0x162   : > { %v663_v45 = vadd.f32 1.0, %v3117_v37  ;;  %v4464_v37 = vld [vmem:[#allocation30_spill] sm:$0xff] }
 0x163   : > { %3118 = vrcp.f32 %v757_v26  ;;  %v4451_v26 = vld [vmem:[#allocation44_spill] sm:$0xff] }
 0x164   : > { %3120 = vrcp.f32 %v663_v45  ;;  %v4450_v45 = vld [vmem:[#allocation43_spill] sm:$0xff] }
 0x170   : > { %v843_v23 = vpop.f32.mrf.mxu0  ;;  %v932_v22 = vpop.f32.mrf.mxu1 }
 0x171   : > { %v847_v18 = vadd.f32 %v843_v23, %v532_v25  ;;  %v936_v21 = vadd.f32 %v932_v22, %v534_v46  ;;  %v3119_v36 = vpop.eup %3118  ;;  %v4459_v22 = vld [vmem:[#allocation25_spill] sm:$0xff]  ;;  %v4465_v25 = vld [vmem:[#allocation31_spill] sm:$0xff]  ;;  %v4466_v23 = vld [vmem:[#allocation32_spill] sm:$0xff] }
 0x172   : > { %v2521_v27 = vpop.f32.mrf.mxu0  ;;  %v2556_v28 = vpop.f32.mrf.mxu1  ;;  %v943_v40 = vmul.f32 %v3119_v36, %v571_v24  ;;  %v4471_v36 = vld [vmem:[#allocation37_spill] sm:$0xff]  ;;  %v4472_v24 = vld [vmem:[#allocation38_spill] sm:$0xff] }
 0x173   : > { %3122 = vtanh.f32 %v847_v18  ;;  %v2111_v33 = vmul.f32 -1.442695, %v936_v21  ;;  %v3121_v19 = vpop.eup %3120  ;;  %v4449_v18 = vmov 0.0   ;;  %v4467_v21 = vld [vmem:[#allocation33_spill] sm:$0xff]  ;;  %v4468_v27 = vld [vmem:[#allocation34_spill] sm:$0xff]  ;;  %v4469_v28 = vld [vmem:[#allocation35_spill] sm:$0xff] }
 0x175   : > { %3124 = vpow2.f32 %v2111_v33  ;;  %v4470_v33 = vld [vmem:[#allocation36_spill] sm:$0xff] }
 0x180   : > { %v3123_v42 = vpop.eup %3122 }
 0x181   : > { %v944_v44 = vmul.f32 %v3123_v42, %v3121_v19  ;;  %v4473_v19 = vld [vmem:[#allocation39_spill] sm:$0xff]  ;;  %v4474_v42 = vld [vmem:[#allocation40_spill] sm:$0xff] }
 0x182   : > { %v3125_v31 = vpop.eup %3124 }
 0x183   : > { %v4004_v32 = vadd.f32 %v944_v44, %v943_v40  ;;  %v940_v10 = vadd.f32 1.0, %v3125_v31  ;;  %v4475_v40 = vld [vmem:[#allocation41_spill] sm:$0xff]  ;;  %v4476_v44 = vld [vmem:[#allocation42_spill] sm:$0xff] }
 0x185   : > { %3126 = vtanh.f32 %v4004_v32 }
 0x186   : > { %3128 = vrcp.f32 %v940_v10 }
 0x192   : > { %v3127_v35 = vpop.eup %3126 }
 0x193   : > { %v3129_v41 = vpop.eup %3128 }
 0x194   : > { %v4007_v46 = vmul.f32 %v3129_v41, %v3127_v35 }
 0x196   : > { %2590 = vmatmul.mubr.f32.vlgmr.msra.gmra.mxu0 %v4007_v46  ;;  %2625 = vmatmul.mubr.f32.vlgmr.msra.gmra.mxu1 %v4007_v46 }
 0x197   : > { %2628 = vmatpush3.msra.mxu0 %v3771_v47  ;;  %2663 = vmatpush3.msra.mxu1 %v3773_v48 }
 0x198   : > { %2629 = vmatprep.subr.mxu0 %v4449_v18  ;;  %2664 = vmatprep.subr.mxu1 %v4449_v18 }
 0x199   : > { %2630 = vmatpush3.msra.mxu0 %v3779_v49  ;;  %2665 = vmatpush3.msra.mxu1 %v3781_v50 }
 0x19a   : > { %2631 = vmatprep.subr.mxu0 %v4449_v18  ;;  %2666 = vmatprep.subr.mxu1 %v4449_v18 }
 0x19b   : > { %2632 = vmatpush3.msra.mxu0 %v3787_v51  ;;  %2667 = vmatpush3.msra.mxu1 %v3789_v52 }
 0x19c   : > { %2633 = vmatprep.subr.mxu0 %v4449_v18  ;;  %2668 = vmatprep.subr.mxu1 %v4449_v18 }
 0x19d   : > { %2634 = vmatpush3.msra.mxu0 %v3795_v53  ;;  %2669 = vmatpush3.msra.mxu1 %v3797_v54 }
 0x19e   : > { %2635 = vmatprep.subr.mxu0 %v4449_v18  ;;  %2670 = vmatprep.subr.mxu1 %v4449_v18 }
 0x19f   : > { %2636 = vmatpush3.msra.mxu0 %v3803_v55  ;;  %2671 = vmatpush3.msra.mxu1 %v3805_v56 }
 0x1a0   : > { %2637 = vmatprep.subr.mxu0 %v4449_v18  ;;  %2672 = vmatprep.subr.mxu1 %v4449_v18 }
 0x1a1   : > { %2638 = vmatpush3.msra.mxu0 %v3811_v57  ;;  %2673 = vmatpush3.msra.mxu1 %v3813_v58 }
 0x1a2   : > { %2639 = vmatprep.subr.mxu0 %v4449_v18  ;;  %2674 = vmatprep.subr.mxu1 %v4449_v18 }
 0x1a3   : > { %2640 = vmatpush3.msra.mxu0 %v3819_v59  ;;  %2675 = vmatpush3.msra.mxu1 %v3821_v60 }
 0x1a4   : > { %2641 = vmatprep.subr.mxu0 %v4449_v18  ;;  %2676 = vmatprep.subr.mxu1 %v4449_v18 }
 0x1a5   : > { %2642 = vmatpush3.msra.mxu0 %v3827_v61  ;;  %2677 = vmatpush3.msra.mxu1 %v3829_v62 }
 0x1a6   : > { %2643 = vmatprep.subr.mxu0 %v4449_v18  ;;  %2678 = vmatprep.subr.mxu1 %v4449_v18 }
 0x1a7   : > { %2644 = vmatpush3.msra.mxu0 %v3835_v63  ;;  %2679 = vmatpush3.msra.mxu1 %v3837_v0 }
 0x1a8   : > { %2645 = vmatprep.subr.mxu0 %v4449_v18  ;;  %2680 = vmatprep.subr.mxu1 %v4449_v18 }
 0x1a9   : > { %2646 = vmatpush3.msra.mxu0 %v3843_v1  ;;  %2681 = vmatpush3.msra.mxu1 %v3845_v2 }
 0x1aa   : > { %2647 = vmatprep.subr.mxu0 %v4449_v18  ;;  %2682 = vmatprep.subr.mxu1 %v4449_v18 }
 0x1ab   : > { %2648 = vmatpush3.msra.mxu0 %v3851_v3  ;;  %2683 = vmatpush3.msra.mxu1 %v3853_v4 }
 0x1ac   : > { %2649 = vmatprep.subr.mxu0 %v4449_v18  ;;  %2684 = vmatprep.subr.mxu1 %v4449_v18 }
 0x1ad   : > { %2650 = vmatpush3.msra.mxu0 %v3859_v5  ;;  %2685 = vmatpush3.msra.mxu1 %v4450_v45 }
 0x1ae   : > { %2651 = vmatprep.subr.mxu0 %v4449_v18  ;;  %2686 = vmatprep.subr.mxu1 %v4449_v18 }
 0x1af   : > { %2652 = vmatpush3.msra.mxu0 %v3867_v7  ;;  %2687 = vmatpush3.msra.mxu1 %v4451_v26 }
 0x1b0   : > { %2653 = vmatprep.subr.mxu0 %v4449_v18  ;;  %2688 = vmatprep.subr.mxu1 %v4449_v18 }
 0x1b1   : > { %2654 = vmatpush3.msra.mxu0 %v3875_v9  ;;  %2689 = vmatpush3.msra.mxu1 %v3877_v29 }
 0x1b2   : > { %2655 = vmatprep.subr.mxu0 %v4449_v18  ;;  %2690 = vmatprep.subr.mxu1 %v4449_v18 }
 0x1b3   : > { %2656 = vmatpush3.msra.mxu0 %v3883_v34  ;;  %2691 = vmatpush3.msra.mxu1 %v3885_v39 }
 0x1b4   : > { %2657 = vmatprep.subr.mxu0 %v4449_v18  ;;  %2692 = vmatprep.subr.mxu1 %v4449_v18 }
 0x1b5   : > { %2658 = vmatpush3.msra.mxu0 %v3891_v6  ;;  %2659 = vmatprep.mubr.msk.f32.mxu0 %vm3446_vm1, %v4449_v18 }
 0x1b6   : > { %2693 = vmatpush3.msra.mxu1 %v3895_v8  ;;  %2694 = vmatprep.mubr.msk.f32.mxu1 %vm3446_vm1, %v4449_v18 }
 0x1b7   : > { %2660 = vmatmul.mubr.f32.vlgmr.msra.gmra.mxu0 %v4007_v46  ;;  %2695 = vmatmul.mubr.f32.vlgmr.msra.gmra.mxu1 %v4007_v46  ;;  %v4477_v46 = vld [vmem:[#allocation47_spill] sm:$0xff] }
 0x1b8   : > { %2697 = vmatprep.subr.mxu0 %v4449_v18  ;;  %2732 = vmatprep.subr.mxu1 %v4449_v18 }
 0x1b9   : > { %2698 = vmatpush3.msra.mxu0 %v3620_v11  ;;  %2733 = vmatpush3.msra.mxu1 %v3622_v12  ;;  %v4452_v11 = vld [vmem:[#allocation18_spill] sm:$0xff]  ;;  %v4453_v12 = vld [vmem:[#allocation19_spill] sm:$0xff] }
 0x1ba   : > { %2699 = vmatprep.subr.mxu0 %v4449_v18  ;;  %2734 = vmatprep.subr.mxu1 %v4449_v18 }
 0x1bb   : > { %2700 = vmatpush3.msra.mxu0 %v3628_v13  ;;  %2735 = vmatpush3.msra.mxu1 %v3630_v14  ;;  %v4454_v13 = vld [vmem:[#allocation20_spill] sm:$0xff]  ;;  %v4455_v14 = vld [vmem:[#allocation21_spill] sm:$0xff] }
 0x1bc   : > { %2701 = vmatprep.subr.mxu0 %v4449_v18  ;;  %2736 = vmatprep.subr.mxu1 %v4449_v18 }
 0x1bd   : > { %2702 = vmatpush3.msra.mxu0 %v3636_v15  ;;  %2737 = vmatpush3.msra.mxu1 %v3638_v16  ;;  %v4456_v15 = vld [vmem:[#allocation22_spill] sm:$0xff]  ;;  %v4457_v16 = vld [vmem:[#allocation23_spill] sm:$0xff] }
 0x1be   : > { %2703 = vmatprep.subr.mxu0 %v4449_v18  ;;  %2738 = vmatprep.subr.mxu1 %v4449_v18 }
 0x1bf   : > { %2704 = vmatpush3.msra.mxu0 %v3644_v17  ;;  %2739 = vmatpush3.msra.mxu1 %v4452_v11  ;;  %v4458_v17 = vld [vmem:[#allocation24_spill] sm:$0xff] }
 0x1c0   : > { %2705 = vmatprep.subr.mxu0 %v4449_v18  ;;  %2740 = vmatprep.subr.mxu1 %v4449_v18 }
 0x1c1   : > { %2706 = vmatpush3.msra.mxu0 %v4453_v12  ;;  %2741 = vmatpush3.msra.mxu1 %v4454_v13  ;;  %v4478_v12 = vld [vmem:[#allocation45_spill] sm:$0xff] }
 0x1c2   : > { %2707 = vmatprep.subr.mxu0 %v4449_v18  ;;  %2742 = vmatprep.subr.mxu1 %v4449_v18 }
 0x1c3   : > { %2708 = vmatpush3.msra.mxu0 %v4455_v14  ;;  %2743 = vmatpush3.msra.mxu1 %v4456_v15 }
 0x1c4   : > { %2709 = vmatprep.subr.mxu0 %v4449_v18  ;;  %2744 = vmatprep.subr.mxu1 %v4449_v18 }
 0x1c5   : > { %2710 = vmatpush3.msra.mxu0 %v4457_v16  ;;  %2745 = vmatpush3.msra.mxu1 %v4458_v17 }
 0x1c6   : > { %2711 = vmatprep.subr.mxu0 %v4449_v18  ;;  %2746 = vmatprep.subr.mxu1 %v4449_v18 }
 0x1c7   : > { %2712 = vmatpush3.msra.mxu0 %v4459_v22  ;;  %2747 = vmatpush3.msra.mxu1 %v4460_v43 }
 0x1c8   : > { %2713 = vmatprep.subr.mxu0 %v4449_v18  ;;  %2748 = vmatprep.subr.mxu1 %v4449_v18 }
 0x1c9   : > { %2714 = vmatpush3.msra.mxu0 %v4461_v38  ;;  %2749 = vmatpush3.msra.mxu1 %v4462_v20 }
 0x1ca   : > { %2715 = vmatprep.subr.mxu0 %v4449_v18  ;;  %2750 = vmatprep.subr.mxu1 %v4449_v18 }
 0x1cb   : > { %2716 = vmatpush3.msra.mxu0 %v4463_v30  ;;  %2751 = vmatpush3.msra.mxu1 %v4464_v37  ;;  %v4479_v30 = vld [vmem:[#allocation46_spill] sm:$0xff] }
 0x1cc   : > { %2717 = vmatprep.subr.mxu0 %v4449_v18  ;;  %2752 = vmatprep.subr.mxu1 %v4449_v18 }
 0x1cd   : > { %2718 = vmatpush3.msra.mxu0 %v4465_v25  ;;  %2753 = vmatpush3.msra.mxu1 %v4466_v23  ;;  %v4480_v25 = vld [vmem:[#allocation48_spill] sm:$0xff] }
 0x1ce   : > { %2719 = vmatprep.subr.mxu0 %v4449_v18  ;;  %2754 = vmatprep.subr.mxu1 %v4449_v18 }
 0x1cf   : > { %2720 = vmatpush3.msra.mxu0 %v4467_v21  ;;  %2755 = vmatpush3.msra.mxu1 %v4468_v27 }
 0x1d0   : > { %2721 = vmatprep.subr.mxu0 %v4449_v18  ;;  %2756 = vmatprep.subr.mxu1 %v4449_v18 }
 0x1d1   : > { %2722 = vmatpush3.msra.mxu0 %v4469_v28  ;;  %2757 = vmatpush3.msra.mxu1 %v4470_v33 }
 0x1d2   : > { %2723 = vmatprep.subr.mxu0 %v4449_v18  ;;  %2758 = vmatprep.subr.mxu1 %v4449_v18 }
 0x1d3   : > { %2724 = vmatpush3.msra.mxu0 %v4471_v36  ;;  %2759 = vmatpush3.msra.mxu1 %v4472_v24 }
 0x1d4   : > { %2725 = vmatprep.subr.mxu0 %v4449_v18  ;;  %2760 = vmatprep.subr.mxu1 %v4449_v18 }
 0x1d5   : > { %2726 = vmatpush3.msra.mxu0 %v4473_v19  ;;  %2761 = vmatpush3.msra.mxu1 %v4474_v42 }
 0x1d6   : > { %2727 = vmatprep.subr.mxu0 %v4449_v18  ;;  %2762 = vmatprep.subr.mxu1 %v4449_v18 }
 0x1d7   : > { %2728 = vmatpush3.msra.mxu0 %v4475_v40  ;;  %2763 = vmatpush3.msra.mxu1 %v4476_v44 }
 0x1d8   : > { %2729 = vmatprep.mubr.msk.f32.mxu0 %vm3446_vm1, %v4449_v18  ;;  %2764 = vmatprep.mubr.msk.f32.mxu1 %vm3446_vm1, %v4449_v18 }
 0x1d9   : > { %2767 = vmatprep.subr.mxu0 %v4449_v18  ;;  %2802 = vmatprep.subr.mxu1 %v4449_v18 }
 0x256   : > { %v1015_v31 = vpop.f32.mrf.mxu0  ;;  %v1093_v10 = vpop.f32.mrf.mxu1 }
 0x257   : > { %v1097_v11 = vadd.f32 %v1093_v10, %v4477_v46  ;;  %v1019_v13 = vadd.f32 %v1015_v31, %v4478_v12 }
 0x258   : > { %v2591_v35 = vpop.f32.mrf.mxu0  ;;  %v2626_v41 = vpop.f32.mrf.mxu1 }
 0x259   : > { %v2113_v14 = vmul.f32 -1.442695, %v1097_v11  ;;  %v2112_v15 = vmul.f32 -1.442695, %v1019_v13  ;;  %v4481_v13 = vld [vmem:[#allocation51_spill] sm:$0xff] }
 0x25b   : > { %3130 = vpow2.f32 %v2113_v14 }
 0x25c   : > { %3132 = vpow2.f32 %v2112_v15  ;;  %v4482_v15 = vld [vmem:[#allocation49_spill] sm:$0xff] }
 0x268   : > { %v3131_v16 = vpop.eup %3130 }
 0x269   : > { %v3133_v17 = vpop.eup %3132  ;;  %v1101_v22 = vadd.f32 1.0, %v3131_v16 }
 0x26a   : > { %v1023_v43 = vadd.f32 1.0, %v3133_v17 }
 0x26b   : > { %3134 = vrcp.f32 %v1101_v22 }
 0x26c   : > { %3136 = vrcp.f32 %v1023_v43 }
 0x277   : > { %v1171_v38 = vpop.f32.mrf.mxu0  ;;  %v1244_v20 = vpop.f32.mrf.mxu1 }
 0x278   : > { %v1175_v37 = vadd.f32 %v1171_v38, %v4479_v30  ;;  %v1248_v23 = vadd.f32 %v1244_v20, %v4480_v25  ;;  %v3135_v33 = vpop.eup %3134 }
 0x279   : > { %v2661_v21 = vpop.f32.mrf.mxu0  ;;  %v2696_v27 = vpop.f32.mrf.mxu1  ;;  %v1255_v19 = vmul.f32 %v3135_v33, %v4004_v32  ;;  %v3208_v32 = vld [vmem:[#allocation10] sm:$0xff] }
 0x27a   : > { %3138 = vtanh.f32 %v1175_v37  ;;  %v2114_v28 = vmul.f32 -1.442695, %v1248_v23  ;;  %v3137_v36 = vpop.eup %3136  ;;  %v4483_v23 = vld [vmem:[#allocation50_spill] sm:$0xff]  ;;  %v4484_v27 = vld [vmem:[#allocation52_spill] sm:$0xff] }
 0x27c   : > { %3140 = vpow2.f32 %v2114_v28 }
 0x287   : > { %v3139_v24 = vpop.eup %3138 }
 0x288   : > { %v1256_v42 = vmul.f32 %v3139_v24, %v3137_v36 }
 0x289   : > { %v3141_v40 = vpop.eup %3140 }
 0x28a   : > { %v4154_v44 = vadd.f32 %v1256_v42, %v1255_v19  ;;  %v1252_v31 = vadd.f32 1.0, %v3141_v40 }
 0x28c   : > { %3142 = vtanh.f32 %v4154_v44 }
 0x28d   : > { %3144 = vrcp.f32 %v1252_v31 }
 0x299   : > { %v3143_v10 = vpop.eup %3142 }
 0x29a   : > { %v3145_v35 = vpop.eup %3144 }
 0x29b   : > { %v4157_v41 = vmul.f32 %v3145_v35, %v3143_v10 }
 0x29d   : > { %2730 = vmatmul.mubr.f32.vlgmr.msra.gmra.mxu0 %v4157_v41  ;;  %2765 = vmatmul.mubr.f32.vlgmr.msra.gmra.mxu1 %v4157_v41 }
 0x29e   : > { %2768 = vmatpush3.msra.mxu0 %v3771_v47  ;;  %2803 = vmatpush3.msra.mxu1 %v3773_v48  ;;  %v3178_v47 = vld [vmem:[#allocation10 + $0x1e0] sm:$0xff]  ;;  %v3179_v48 = vld [vmem:[#allocation10 + $0x1e8] sm:$0xff] }
 0x29f   : > { %2769 = vmatprep.subr.mxu0 %v4449_v18  ;;  %2804 = vmatprep.subr.mxu1 %v4449_v18 }
 0x2a0   : > { %2770 = vmatpush3.msra.mxu0 %v3779_v49  ;;  %2805 = vmatpush3.msra.mxu1 %v3781_v50  ;;  %v3180_v49 = vld [vmem:[#allocation10 + $0x1c0] sm:$0xff]  ;;  %v3181_v50 = vld [vmem:[#allocation10 + $0x1c8] sm:$0xff] }
 0x2a1   : > { %2771 = vmatprep.subr.mxu0 %v4449_v18  ;;  %2806 = vmatprep.subr.mxu1 %v4449_v18 }
 0x2a2   : > { %2772 = vmatpush3.msra.mxu0 %v3787_v51  ;;  %2807 = vmatpush3.msra.mxu1 %v3789_v52  ;;  %v3182_v51 = vld [vmem:[#allocation10 + $0x1a0] sm:$0xff]  ;;  %v3183_v52 = vld [vmem:[#allocation10 + $0x1a8] sm:$0xff] }
 0x2a3   : > { %2773 = vmatprep.subr.mxu0 %v4449_v18  ;;  %2808 = vmatprep.subr.mxu1 %v4449_v18 }
 0x2a4   : > { %2774 = vmatpush3.msra.mxu0 %v3795_v53  ;;  %2809 = vmatpush3.msra.mxu1 %v3797_v54  ;;  %v3184_v53 = vld [vmem:[#allocation10 + $0x180] sm:$0xff]  ;;  %v3185_v54 = vld [vmem:[#allocation10 + $0x188] sm:$0xff] }
 0x2a5   : > { %2775 = vmatprep.subr.mxu0 %v4449_v18  ;;  %2810 = vmatprep.subr.mxu1 %v4449_v18 }
 0x2a6   : > { %2776 = vmatpush3.msra.mxu0 %v3803_v55  ;;  %2811 = vmatpush3.msra.mxu1 %v3805_v56  ;;  %v3186_v55 = vld [vmem:[#allocation10 + $0x160] sm:$0xff]  ;;  %v3187_v56 = vld [vmem:[#allocation10 + $0x168] sm:$0xff] }
 0x2a7   : > { %2777 = vmatprep.subr.mxu0 %v4449_v18  ;;  %2812 = vmatprep.subr.mxu1 %v4449_v18 }
 0x2a8   : > { %2778 = vmatpush3.msra.mxu0 %v3811_v57  ;;  %2813 = vmatpush3.msra.mxu1 %v3813_v58  ;;  %v3188_v57 = vld [vmem:[#allocation10 + $0x140] sm:$0xff]  ;;  %v3189_v58 = vld [vmem:[#allocation10 + $0x148] sm:$0xff] }
 0x2a9   : > { %2779 = vmatprep.subr.mxu0 %v4449_v18  ;;  %2814 = vmatprep.subr.mxu1 %v4449_v18 }
 0x2aa   : > { %2780 = vmatpush3.msra.mxu0 %v3819_v59  ;;  %2815 = vmatpush3.msra.mxu1 %v3821_v60  ;;  %v3190_v59 = vld [vmem:[#allocation10 + $0x120] sm:$0xff]  ;;  %v3191_v60 = vld [vmem:[#allocation10 + $0x128] sm:$0xff] }
 0x2ab   : > { %2781 = vmatprep.subr.mxu0 %v4449_v18  ;;  %2816 = vmatprep.subr.mxu1 %v4449_v18 }
 0x2ac   : > { %2782 = vmatpush3.msra.mxu0 %v3827_v61  ;;  %2817 = vmatpush3.msra.mxu1 %v3829_v62  ;;  %v3192_v61 = vld [vmem:[#allocation10 + $0x100] sm:$0xff]  ;;  %v3193_v62 = vld [vmem:[#allocation10 + $0x108] sm:$0xff] }
 0x2ad   : > { %2783 = vmatprep.subr.mxu0 %v4449_v18  ;;  %2818 = vmatprep.subr.mxu1 %v4449_v18 }
 0x2ae   : > { %2784 = vmatpush3.msra.mxu0 %v3835_v63  ;;  %2819 = vmatpush3.msra.mxu1 %v3837_v0  ;;  %v3194_v63 = vld [vmem:[#allocation10 + $0xe0] sm:$0xff]  ;;  %v3195_v0 = vld [vmem:[#allocation10 + $0xe8] sm:$0xff] }
 0x2af   : > { %2785 = vmatprep.subr.mxu0 %v4449_v18  ;;  %2820 = vmatprep.subr.mxu1 %v4449_v18 }
 0x2b0   : > { %2786 = vmatpush3.msra.mxu0 %v3843_v1  ;;  %2821 = vmatpush3.msra.mxu1 %v3845_v2  ;;  %v3196_v1 = vld [vmem:[#allocation10 + $0xc0] sm:$0xff]  ;;  %v3197_v2 = vld [vmem:[#allocation10 + $0xc8] sm:$0xff] }
 0x2b1   : > { %2787 = vmatprep.subr.mxu0 %v4449_v18  ;;  %2822 = vmatprep.subr.mxu1 %v4449_v18 }
 0x2b2   : > { %2788 = vmatpush3.msra.mxu0 %v3851_v3  ;;  %2823 = vmatpush3.msra.mxu1 %v3853_v4  ;;  %v3198_v3 = vld [vmem:[#allocation10 + $0xa0] sm:$0xff]  ;;  %v3199_v4 = vld [vmem:[#allocation10 + $0xa8] sm:$0xff] }
 0x2b3   : > { %2789 = vmatprep.subr.mxu0 %v4449_v18  ;;  %2824 = vmatprep.subr.mxu1 %v4449_v18 }
 0x2b4   : > { %2790 = vmatpush3.msra.mxu0 %v3859_v5  ;;  %2825 = vmatpush3.msra.mxu1 %v4450_v45  ;;  %v3200_v5 = vld [vmem:[#allocation10 + $0x80] sm:$0xff]  ;;  %v3209_v45 = vld [vmem:[#allocation10 + $0x8] sm:$0xff] }
 0x2b5   : > { %2791 = vmatprep.subr.mxu0 %v4449_v18  ;;  %2826 = vmatprep.subr.mxu1 %v4449_v18 }
 0x2b6   : > { %2792 = vmatpush3.msra.mxu0 %v3867_v7  ;;  %2827 = vmatpush3.msra.mxu1 %v4451_v26  ;;  %v3202_v7 = vld [vmem:[#allocation10 + $0x60] sm:$0xff] }
 0x2b7   : > { %2793 = vmatprep.subr.mxu0 %v4449_v18  ;;  %2828 = vmatprep.subr.mxu1 %v4449_v18 }
 0x2b8   : > { %2794 = vmatpush3.msra.mxu0 %v3875_v9  ;;  %2829 = vmatpush3.msra.mxu1 %v3877_v29  ;;  %v3204_v9 = vld [vmem:[#allocation10 + $0x40] sm:$0xff]  ;;  %v3205_v29 = vld [vmem:[#allocation10 + $0x48] sm:$0xff] }
 0x2b9   : > { %2795 = vmatprep.subr.mxu0 %v4449_v18  ;;  %2830 = vmatprep.subr.mxu1 %v4449_v18 }
 0x2ba   : > { %2796 = vmatpush3.msra.mxu0 %v3883_v34  ;;  %2831 = vmatpush3.msra.mxu1 %v3885_v39  ;;  %v3206_v34 = vld [vmem:[#allocation10 + $0x20] sm:$0xff]  ;;  %v3207_v39 = vld [vmem:[#allocation10 + $0x28] sm:$0xff] }
 0x2bb   : > { %2797 = vmatprep.subr.mxu0 %v4449_v18  ;;  %2832 = vmatprep.subr.mxu1 %v4449_v18 }
 0x2bc   : > { %2798 = vmatpush3.msra.mxu0 %v3891_v6  ;;  %2799 = vmatprep.mubr.msk.f32.mxu0 %vm3446_vm1, %v4449_v18  ;;  %v3201_v6 = vld [vmem:[#allocation10 + $0x88] sm:$0xff] }
 0x2bd   : > { %2833 = vmatpush3.msra.mxu1 %v3895_v8  ;;  %2834 = vmatprep.mubr.msk.f32.mxu1 %vm3446_vm1, %v4449_v18  ;;  %v3203_v8 = vld [vmem:[#allocation10 + $0x68] sm:$0xff] }
 0x2be   : > { %2800 = vmatmul.mubr.f32.vlgmr.msra.gmra.mxu0 %v4157_v41  ;;  %2835 = vmatmul.mubr.f32.vlgmr.msra.gmra.mxu1 %v4157_v41 }
 0x2bf   : > { %2837 = vmatprep.subr.mxu0 %v4449_v18  ;;  %2872 = vmatprep.subr.mxu1 %v4449_v18 }
 0x2c0   : > { %2838 = vmatpush3.msra.mxu0 %v3178_v47  ;;  %2873 = vmatpush3.msra.mxu1 %v3179_v48 }
 0x2c1   : > { %2839 = vmatprep.subr.mxu0 %v4449_v18  ;;  %2874 = vmatprep.subr.mxu1 %v4449_v18 }
 0x2c2   : > { %2840 = vmatpush3.msra.mxu0 %v3180_v49  ;;  %2875 = vmatpush3.msra.mxu1 %v3181_v50 }
 0x2c3   : > { %2841 = vmatprep.subr.mxu0 %v4449_v18  ;;  %2876 = vmatprep.subr.mxu1 %v4449_v18 }
 0x2c4   : > { %2842 = vmatpush3.msra.mxu0 %v3182_v51  ;;  %2877 = vmatpush3.msra.mxu1 %v3183_v52  ;;  %v3210_v51 = vld [vmem:[#allocation10 + $0x1f0] sm:$0xff]  ;;  %v3211_v52 = vld [vmem:[#allocation10 + $0x1f8] sm:$0xff] }
 0x2c5   : > { %2843 = vmatprep.subr.mxu0 %v4449_v18  ;;  %2878 = vmatprep.subr.mxu1 %v4449_v18 }
 0x2c6   : > { %2844 = vmatpush3.msra.mxu0 %v3184_v53  ;;  %2879 = vmatpush3.msra.mxu1 %v3185_v54  ;;  %v3213_v53 = vld [vmem:[#allocation10 + $0x1d8] sm:$0xff]  ;;  %v3214_v54 = vld [vmem:[#allocation10 + $0x1b0] sm:$0xff] }
 0x2c7   : > { %2845 = vmatprep.subr.mxu0 %v4449_v18  ;;  %2880 = vmatprep.subr.mxu1 %v4449_v18 }
 0x2c8   : > { %2846 = vmatpush3.msra.mxu0 %v3186_v55  ;;  %2881 = vmatpush3.msra.mxu1 %v3187_v56  ;;  %v3215_v55 = vld [vmem:[#allocation10 + $0x1b8] sm:$0xff]  ;;  %v3216_v56 = vld [vmem:[#allocation10 + $0x190] sm:$0xff] }
 0x2c9   : > { %2847 = vmatprep.subr.mxu0 %v4449_v18  ;;  %2882 = vmatprep.subr.mxu1 %v4449_v18 }
 0x2ca   : > { %2848 = vmatpush3.msra.mxu0 %v3188_v57  ;;  %2883 = vmatpush3.msra.mxu1 %v3189_v58  ;;  %v3217_v57 = vld [vmem:[#allocation10 + $0x198] sm:$0xff]  ;;  %v3218_v58 = vld [vmem:[#allocation10 + $0x170] sm:$0xff] }
 0x2cb   : > { %2849 = vmatprep.subr.mxu0 %v4449_v18  ;;  %2884 = vmatprep.subr.mxu1 %v4449_v18 }
 0x2cc   : > { %2850 = vmatpush3.msra.mxu0 %v3190_v59  ;;  %2885 = vmatpush3.msra.mxu1 %v3191_v60  ;;  %v3219_v59 = vld [vmem:[#allocation10 + $0x178] sm:$0xff]  ;;  %v3220_v60 = vld [vmem:[#allocation10 + $0x150] sm:$0xff] }
 0x2cd   : > { %2851 = vmatprep.subr.mxu0 %v4449_v18  ;;  %2886 = vmatprep.subr.mxu1 %v4449_v18 }
 0x2ce   : > { %2852 = vmatpush3.msra.mxu0 %v3192_v61  ;;  %2887 = vmatpush3.msra.mxu1 %v3193_v62  ;;  %v3221_v61 = vld [vmem:[#allocation10 + $0x158] sm:$0xff]  ;;  %v3222_v62 = vld [vmem:[#allocation10 + $0x130] sm:$0xff] }
 0x2cf   : > { %2853 = vmatprep.subr.mxu0 %v4449_v18  ;;  %2888 = vmatprep.subr.mxu1 %v4449_v18 }
 0x2d0   : > { %2854 = vmatpush3.msra.mxu0 %v3194_v63  ;;  %2889 = vmatpush3.msra.mxu1 %v3195_v0  ;;  %v3223_v63 = vld [vmem:[#allocation10 + $0x138] sm:$0xff]  ;;  %v3224_v0 = vld [vmem:[#allocation10 + $0x110] sm:$0xff] }
 0x2d1   : > { %2855 = vmatprep.subr.mxu0 %v4449_v18  ;;  %2890 = vmatprep.subr.mxu1 %v4449_v18 }
 0x2d2   : > { %2856 = vmatpush3.msra.mxu0 %v3196_v1  ;;  %2891 = vmatpush3.msra.mxu1 %v3197_v2  ;;  %v3225_v1 = vld [vmem:[#allocation10 + $0x118] sm:$0xff]  ;;  %v3226_v2 = vld [vmem:[#allocation10 + $0xf0] sm:$0xff] }
 0x2d3   : > { %2857 = vmatprep.subr.mxu0 %v4449_v18  ;;  %2892 = vmatprep.subr.mxu1 %v4449_v18 }
 0x2d4   : > { %2858 = vmatpush3.msra.mxu0 %v3198_v3  ;;  %2893 = vmatpush3.msra.mxu1 %v3199_v4  ;;  %v3227_v3 = vld [vmem:[#allocation10 + $0xf8] sm:$0xff]  ;;  %v3228_v4 = vld [vmem:[#allocation10 + $0xd0] sm:$0xff] }
 0x2d5   : > { %2859 = vmatprep.subr.mxu0 %v4449_v18  ;;  %2894 = vmatprep.subr.mxu1 %v4449_v18 }
 0x2d6   : > { %2860 = vmatpush3.msra.mxu0 %v3200_v5  ;;  %2895 = vmatpush3.msra.mxu1 %v3201_v6  ;;  %v3229_v5 = vld [vmem:[#allocation10 + $0xd8] sm:$0xff]  ;;  %v3230_v6 = vld [vmem:[#allocation10 + $0xb0] sm:$0xff] }
 0x2d7   : > { %2861 = vmatprep.subr.mxu0 %v4449_v18  ;;  %2896 = vmatprep.subr.mxu1 %v4449_v18 }
 0x2d8   : > { %2862 = vmatpush3.msra.mxu0 %v3202_v7  ;;  %2897 = vmatpush3.msra.mxu1 %v3203_v8  ;;  %v3231_v7 = vld [vmem:[#allocation10 + $0xb8] sm:$0xff]  ;;  %v3232_v8 = vld [vmem:[#allocation10 + $0x90] sm:$0xff] }
 0x2d9   : > { %2863 = vmatprep.subr.mxu0 %v4449_v18  ;;  %2898 = vmatprep.subr.mxu1 %v4449_v18 }
 0x2da   : > { %2864 = vmatpush3.msra.mxu0 %v3204_v9  ;;  %2899 = vmatpush3.msra.mxu1 %v3205_v29  ;;  %v3233_v9 = vld [vmem:[#allocation10 + $0x98] sm:$0xff]  ;;  %v3234_v29 = vld [vmem:[#allocation10 + $0x70] sm:$0xff] }
 0x2db   : > { %2865 = vmatprep.subr.mxu0 %v4449_v18  ;;  %2900 = vmatprep.subr.mxu1 %v4449_v18 }
 0x2dc   : > { %2866 = vmatpush3.msra.mxu0 %v3206_v34  ;;  %2901 = vmatpush3.msra.mxu1 %v3207_v39  ;;  %v3235_v34 = vld [vmem:[#allocation10 + $0x78] sm:$0xff]  ;;  %v3236_v39 = vld [vmem:[#allocation10 + $0x50] sm:$0xff] }
 0x2dd   : > { %2867 = vmatprep.subr.mxu0 %v4449_v18  ;;  %2902 = vmatprep.subr.mxu1 %v4449_v18 }
 0x2de   : > { %2868 = vmatpush3.msra.mxu0 %v3208_v32  ;;  %2903 = vmatpush3.msra.mxu1 %v3209_v45  ;;  %v3237_v32 = vld [vmem:[#allocation10 + $0x58] sm:$0xff]  ;;  %v3238_v45 = vld [vmem:[#allocation10 + $0x30] sm:$0xff] }
 0x2df   : > { %2869 = vmatprep.mubr.msk.f32.mxu0 %vm3446_vm1, %v4449_v18  ;;  %2904 = vmatprep.mubr.msk.f32.mxu1 %vm3446_vm1, %v4449_v18 }
 0x2e0   : > { %2907 = vmatprep.subr.mxu0 %v4449_v18  ;;  %2942 = vmatprep.subr.mxu1 %v4449_v18 }
 0x35d   : > { %v1327_v26 = vpop.f32.mrf.mxu0  ;;  %v1405_v46 = vpop.f32.mrf.mxu1 }
 0x35e   : > { %v1409_v14 = vadd.f32 %v1405_v46, %v4481_v13  ;;  %v1331_v16 = vadd.f32 %v1327_v26, %v4482_v15  ;;  %v3239_v26 = vld [vmem:[#allocation10 + $0x38] sm:$0xff]  ;;  %v3240_v46 = vld [vmem:[#allocation10 + $0x10] sm:$0xff] }
 0x35f   : > { %v2731_v11 = vpop.f32.mrf.mxu0  ;;  %v2766_v12 = vpop.f32.mrf.mxu1 }
 0x360   : > { %v2116_v17 = vmul.f32 -1.442695, %v1409_v14  ;;  %v2115_v22 = vmul.f32 -1.442695, %v1331_v16  ;;  %v3241_v11 = vld [vmem:[#allocation10 + $0x18] sm:$0xff]  ;;  %v4485_v16 = vld [vmem:[#allocation55_spill] sm:$0xff] }
 0x362   : > { %3146 = vpow2.f32 %v2116_v17 }
 0x363   : > { %3148 = vpow2.f32 %v2115_v22  ;;  %v4486_v22 = vld [vmem:[#allocation53_spill] sm:$0xff] }
 0x36f   : > { %v3147_v43 = vpop.eup %3146 }
 0x370   : > { %v3149_v38 = vpop.eup %3148  ;;  %v1413_v20 = vadd.f32 1.0, %v3147_v43 }
 0x371   : > { %v1335_v30 = vadd.f32 1.0, %v3149_v38 }
 0x372   : > { %3150 = vrcp.f32 %v1413_v20 }
 0x373   : > { %3152 = vrcp.f32 %v1335_v30 }
 0x37e   : > { %v1483_v37 = vpop.f32.mrf.mxu0  ;;  %v1556_v25 = vpop.f32.mrf.mxu1 }
 0x37f   : > { %v1487_v21 = vadd.f32 %v1483_v37, %v4483_v23  ;;  %v1560_v28 = vadd.f32 %v1556_v25, %v4484_v27  ;;  %v3151_v19 = vpop.eup %3150  ;;  %v4487_v27 = vld [vmem:[#allocation54_spill] sm:$0xff] }
 0x380   : > { %v2801_v33 = vpop.f32.mrf.mxu0  ;;  %v2836_v36 = vpop.f32.mrf.mxu1  ;;  %v1567_v31 = vmul.f32 %v3151_v19, %v4154_v44  ;;  %v3212_v44 = vld [vmem:[#allocation10 + $0x1d0] sm:$0xff] }
 0x381   : > { %3154 = vtanh.f32 %v1487_v21  ;;  %v2117_v24 = vmul.f32 -1.442695, %v1560_v28  ;;  %v3153_v42 = vpop.eup %3152  ;;  %v4488_v33 = vld [vmem:[#allocation56_spill] sm:$0xff] }
 0x383   : > { %3156 = vpow2.f32 %v2117_v24 }
 0x38e   : > { %v3155_v40 = vpop.eup %3154 }
 0x38f   : > { %v1568_v10 = vmul.f32 %v3155_v40, %v3153_v42 }
 0x390   : > { %v3157_v35 = vpop.eup %3156 }
 0x391   : > { %v4272_v41 = vadd.f32 %v1568_v10, %v1567_v31  ;;  %v1564_v47 = vadd.f32 1.0, %v3157_v35 }
 0x393   : > { %3158 = vtanh.f32 %v4272_v41 }
 0x394   : > { %3160 = vrcp.f32 %v1564_v47 }
 0x3a0   : > { %v3159_v48 = vpop.eup %3158 }
 0x3a1   : > { %v3161_v49 = vpop.eup %3160 }
 0x3a2   : > { %v4275_v50 = vmul.f32 %v3161_v49, %v3159_v48 }
 0x3a4   : > { %2870 = vmatmul.mubr.f32.vlgmr.msra.gmra.mxu0 %v4275_v50  ;;  %2905 = vmatmul.mubr.f32.vlgmr.msra.gmra.mxu1 %v4275_v50 }
 0x3a5   : > { %2908 = vmatpush3.msra.mxu0 %v3210_v51  ;;  %2943 = vmatpush3.msra.mxu1 %v3211_v52 }
 0x3a6   : > { %2909 = vmatprep.subr.mxu0 %v4449_v18  ;;  %2944 = vmatprep.subr.mxu1 %v4449_v18 }
 0x3a7   : > { %2910 = vmatpush3.msra.mxu0 %v3212_v44  ;;  %2945 = vmatpush3.msra.mxu1 %v3213_v53 }
 0x3a8   : > { %2911 = vmatprep.subr.mxu0 %v4449_v18  ;;  %2946 = vmatprep.subr.mxu1 %v4449_v18 }
 0x3a9   : > { %2912 = vmatpush3.msra.mxu0 %v3214_v54  ;;  %2947 = vmatpush3.msra.mxu1 %v3215_v55 }
 0x3aa   : > { %2913 = vmatprep.subr.mxu0 %v4449_v18  ;;  %2948 = vmatprep.subr.mxu1 %v4449_v18 }
 0x3ab   : > { %2914 = vmatpush3.msra.mxu0 %v3216_v56  ;;  %2949 = vmatpush3.msra.mxu1 %v3217_v57 }
 0x3ac   : > { %2915 = vmatprep.subr.mxu0 %v4449_v18  ;;  %2950 = vmatprep.subr.mxu1 %v4449_v18 }
 0x3ad   : > { %2916 = vmatpush3.msra.mxu0 %v3218_v58  ;;  %2951 = vmatpush3.msra.mxu1 %v3219_v59 }
 0x3ae   : > { %2917 = vmatprep.subr.mxu0 %v4449_v18  ;;  %2952 = vmatprep.subr.mxu1 %v4449_v18 }
 0x3af   : > { %2918 = vmatpush3.msra.mxu0 %v3220_v60  ;;  %2953 = vmatpush3.msra.mxu1 %v3221_v61 }
 0x3b0   : > { %2919 = vmatprep.subr.mxu0 %v4449_v18  ;;  %2954 = vmatprep.subr.mxu1 %v4449_v18 }
 0x3b1   : > { %2920 = vmatpush3.msra.mxu0 %v3222_v62  ;;  %2955 = vmatpush3.msra.mxu1 %v3223_v63 }
 0x3b2   : > { %2921 = vmatprep.subr.mxu0 %v4449_v18  ;;  %2956 = vmatprep.subr.mxu1 %v4449_v18 }
 0x3b3   : > { %2922 = vmatpush3.msra.mxu0 %v3224_v0  ;;  %2957 = vmatpush3.msra.mxu1 %v3225_v1 }
 0x3b4   : > { %2923 = vmatprep.subr.mxu0 %v4449_v18  ;;  %2958 = vmatprep.subr.mxu1 %v4449_v18 }
 0x3b5   : > { %2924 = vmatpush3.msra.mxu0 %v3226_v2  ;;  %2959 = vmatpush3.msra.mxu1 %v3227_v3 }
 0x3b6   : > { %2925 = vmatprep.subr.mxu0 %v4449_v18  ;;  %2960 = vmatprep.subr.mxu1 %v4449_v18 }
 0x3b7   : > { %2926 = vmatpush3.msra.mxu0 %v3228_v4  ;;  %2961 = vmatpush3.msra.mxu1 %v3229_v5 }
 0x3b8   : > { %2927 = vmatprep.subr.mxu0 %v4449_v18  ;;  %2962 = vmatprep.subr.mxu1 %v4449_v18 }
 0x3b9   : > { %2928 = vmatpush3.msra.mxu0 %v3230_v6  ;;  %2963 = vmatpush3.msra.mxu1 %v3231_v7 }
 0x3ba   : > { %2929 = vmatprep.subr.mxu0 %v4449_v18  ;;  %2964 = vmatprep.subr.mxu1 %v4449_v18 }
 0x3bb   : > { %2930 = vmatpush3.msra.mxu0 %v3232_v8  ;;  %2965 = vmatpush3.msra.mxu1 %v3233_v9 }
 0x3bc   : > { %2931 = vmatprep.subr.mxu0 %v4449_v18  ;;  %2966 = vmatprep.subr.mxu1 %v4449_v18 }
 0x3bd   : > { %2932 = vmatpush3.msra.mxu0 %v3234_v29  ;;  %2967 = vmatpush3.msra.mxu1 %v3235_v34 }
 0x3be   : > { %2933 = vmatprep.subr.mxu0 %v4449_v18  ;;  %2968 = vmatprep.subr.mxu1 %v4449_v18 }
 0x3bf   : > { %2934 = vmatpush3.msra.mxu0 %v3236_v39  ;;  %2969 = vmatpush3.msra.mxu1 %v3237_v32 }
 0x3c0   : > { %2935 = vmatprep.subr.mxu0 %v4449_v18  ;;  %2970 = vmatprep.subr.mxu1 %v4449_v18 }
 0x3c1   : > { %2936 = vmatpush3.msra.mxu0 %v3238_v45  ;;  %2971 = vmatpush3.msra.mxu1 %v3239_v26 }
 0x3c2   : > { %2937 = vmatprep.subr.mxu0 %v4449_v18  ;;  %2972 = vmatprep.subr.mxu1 %v4449_v18 }
 0x3c3   : > { %2938 = vmatpush3.msra.mxu0 %v3240_v46  ;;  %2939 = vmatprep.mubr.msk.f32.mxu0 %vm3446_vm1, %v4449_v18 }
 0x3c4   : > { %2973 = vmatpush3.msra.mxu1 %v3241_v11  ;;  %2974 = vmatprep.mubr.msk.f32.mxu1 %vm3446_vm1, %v4449_v18 }
 0x3c5   : > { %2940 = vmatmul.mubr.f32.vlgmr.msra.gmra.mxu0 %v4275_v50  ;;  %2975 = vmatmul.mubr.f32.vlgmr.msra.gmra.mxu1 %v4275_v50 }
 0x464   : > { %v1639_v12 = vpop.f32.mrf.mxu0  ;;  %v1717_v13 = vpop.f32.mrf.mxu1 }
 0x465   : > { %v1721_v17 = vadd.f32 %v1717_v13, %v4485_v16  ;;  %v1643_v43 = vadd.f32 %v1639_v12, %v4486_v22 }
 0x466   : > { %v2871_v14 = vpop.f32.mrf.mxu0  ;;  %v2906_v15 = vpop.f32.mrf.mxu1 }
 0x467   : > { %v2119_v38 = vmul.f32 -1.442695, %v1721_v17  ;;  %v2118_v20 = vmul.f32 -1.442695, %v1643_v43 }
 0x469   : > { %3162 = vpow2.f32 %v2119_v38 }
 0x46a   : > { %3164 = vpow2.f32 %v2118_v20 }
 0x476   : > { %v3163_v30 = vpop.eup %3162 }
 0x477   : > { %v3165_v37 = vpop.eup %3164  ;;  %v1725_v25 = vadd.f32 1.0, %v3163_v30 }
 0x478   : > { %v1647_v18 = vadd.f32 1.0, %v3165_v37 }
 0x479   : > { %3166 = vrcp.f32 %v1725_v25 }
 0x47a   : > { %3168 = vrcp.f32 %v1647_v18 }
 0x485   : > { %v1795_v23 = vpop.f32.mrf.mxu0  ;;  %v1868_v21 = vpop.f32.mrf.mxu1 }
 0x486   : > { %v1799_v28 = vadd.f32 %v1795_v23, %v4487_v27  ;;  %v1872_v36 = vadd.f32 %v1868_v21, %v4488_v33  ;;  %v3167_v40 = vpop.eup %3166 }
 0x487   : > { %v2941_v24 = vpop.f32.mrf.mxu0  ;;  %v2976_v19 = vpop.f32.mrf.mxu1  ;;  %v1879_v35 = vmul.f32 %v3167_v40, %v4272_v41 }
 0x488   : > { %3170 = vtanh.f32 %v1799_v28  ;;  %v2120_v42 = vmul.f32 -1.442695, %v1872_v36  ;;  %v3169_v31 = vpop.eup %3168 }
 0x48a   : > { %3172 = vpow2.f32 %v2120_v42 }
 0x495   : > { %v3171_v10 = vpop.eup %3170 }
 0x496   : > { %v1880_v47 = vmul.f32 %v3171_v10, %v3169_v31 }
 0x497   : > { %v3173_v48 = vpop.eup %3172 }
 0x498   : > { %v1881_v49 = vadd.f32 %v1880_v47, %v1879_v35  ;;  %v1876_v50 = vadd.f32 1.0, %v3173_v48 }
 0x49a   : > { %3174 = vtanh.f32 %v1881_v49  ;;  %1885 = vst [vmem:[#allocation4] sm:$0xff] %v1881_v49 }
 0x49b   : > { %3176 = vrcp.f32 %v1876_v50 }
 0x4a7   : > { %v3175_v51 = vpop.eup %3174  ;;  %1889 = sbr.rel (%p2121_p12) target bundleno = 1425 (0x591), region = 68 }
 0x4a8   : > { %v3177_v52 = vpop.eup %3176 }
 0x4a9   : > { %v1883_v44 = vmul.f32 %v3177_v52, %v3175_v51 }
 0x4ab   : > { %1884 = vst [vmem:[#allocation3] sm:$0xff] %v1883_v44 }
 0x4ac   : > { %v1906_v53 = vld [vmem:[#allocation11 + $0x78] sm:$0xff]  ;;  %v3447_v54 = vmov 0.0   ;;  %v1905_v55 = vld [vmem:[#allocation11 + $0x70] sm:$0xff]  ;;  %vm3448_vm2 = vmmov 0   ;;  %v1904_v41 = vld [vmem:[#allocation11 + $0x68] sm:$0xff] }
 0x4ad   : > { %2977 = vmatprep.subr.mxu0 %v3447_v54  ;;  %3009 = vmatprep.mubr.msk.f32.mxu0 %vm3448_vm2, %v3447_v54  ;;  %v1903_v56 = vld [vmem:[#allocation11 + $0x60] sm:$0xff]  ;;  %v1902_v57 = vld [vmem:[#allocation11 + $0x58] sm:$0xff]  ;;  %v1901_v58 = vld [vmem:[#allocation11 + $0x50] sm:$0xff] }
 0x4ae   : > { %2978 = vmatpush3.msra.mxu0 %v1906_v53  ;;  %v1900_v59 = vld [vmem:[#allocation11 + $0x48] sm:$0xff]  ;;  %v1899_v60 = vld [vmem:[#allocation11 + $0x40] sm:$0xff]  ;;  %v1898_v61 = vld [vmem:[#allocation11 + $0x38] sm:$0xff] }
 0x4af   : > { %2979 = vmatprep.subr.mxu0 %v3447_v54  ;;  %v1897_v62 = vld [vmem:[#allocation11 + $0x30] sm:$0xff]  ;;  %v1896_v63 = vld [vmem:[#allocation11 + $0x28] sm:$0xff]  ;;  %v1895_v0 = vld [vmem:[#allocation11 + $0x20] sm:$0xff] }
 0x4b0   : > { %2980 = vmatpush3.msra.mxu0 %v1905_v55  ;;  %v1894_v1 = vld [vmem:[#allocation11 + $0x18] sm:$0xff]  ;;  %v1893_v2 = vld [vmem:[#allocation11 + $0x10] sm:$0xff]  ;;  %v1892_v3 = vld [vmem:[#allocation11 + $0x8] sm:$0xff] }
 0x4b1   : > { %2981 = vmatprep.subr.mxu0 %v3447_v54  ;;  %v1891_v4 = vld [vmem:[#allocation11] sm:$0xff]  ;;  %v2122_v6 = vld [vmem:[%s4364_s5] ss:$0 sm:$0xff] }
 0x4b2   : > { %2982 = vmatpush3.msra.mxu0 %v1904_v41  ;;  %v1890_v5 = vld [vmem:[#allocation3] sm:$0xff] }
 0x4b3   : > { %2983 = vmatprep.subr.mxu0 %v3447_v54 }
 0x4b4   : > { %2984 = vmatpush3.msra.mxu0 %v1903_v56 }
 0x4b5   : > { %2985 = vmatprep.subr.mxu0 %v3447_v54 }
 0x4b6   : > { %2986 = vmatpush3.msra.mxu0 %v1902_v57 }
 0x4b7   : > { %2987 = vmatprep.subr.mxu0 %v3447_v54 }
 0x4b8   : > { %2988 = vmatpush3.msra.mxu0 %v1901_v58 }
 0x4b9   : > { %2989 = vmatprep.subr.mxu0 %v3447_v54 }
 0x4ba   : > { %2990 = vmatpush3.msra.mxu0 %v1900_v59 }
 0x4bb   : > { %2991 = vmatprep.subr.mxu0 %v3447_v54 }
 0x4bc   : > { %2992 = vmatpush3.msra.mxu0 %v1899_v60 }
 0x4bd   : > { %2993 = vmatprep.subr.mxu0 %v3447_v54 }
 0x4be   : > { %2994 = vmatpush3.msra.mxu0 %v1898_v61 }
 0x4bf   : > { %2995 = vmatprep.subr.mxu0 %v3447_v54 }
 0x4c0   : > { %2996 = vmatpush3.msra.mxu0 %v1897_v62 }
 0x4c1   : > { %2997 = vmatprep.subr.mxu0 %v3447_v54 }
 0x4c2   : > { %2998 = vmatpush3.msra.mxu0 %v1896_v63 }
 0x4c3   : > { %2999 = vmatprep.subr.mxu0 %v3447_v54 }
 0x4c4   : > { %3000 = vmatpush3.msra.mxu0 %v1895_v0 }
 0x4c5   : > { %3001 = vmatprep.subr.mxu0 %v3447_v54 }
 0x4c6   : > { %3002 = vmatpush3.msra.mxu0 %v1894_v1 }
 0x4c7   : > { %3003 = vmatprep.subr.mxu0 %v3447_v54 }
 0x4c8   : > { %3004 = vmatpush3.msra.mxu0 %v1893_v2 }
 0x4c9   : > { %3005 = vmatprep.subr.mxu0 %v3447_v54 }
 0x4ca   : > { %3006 = vmatpush3.msra.mxu0 %v1892_v3 }
 0x4cb   : > { %3007 = vmatprep.subr.mxu0 %v3447_v54 }
 0x4cc   : > { %3008 = vmatpush3.msra.mxu0 %v1891_v4 }
 0x4cd   : > { %3010 = vmatmul.mubr.f32.vlgmr.msra.gmra.mxu0 %v1890_v5 }
 0x58d   : > { %v1980_v7 = vpop.f32.mrf.mxu0 }
 0x58e   : > { %v1981_v8 = vadd.f32 %v2122_v6, %v1980_v7 }
 0x58f   : > { %v3011_v9 = vpop.f32.mrf.mxu0 }
 0x590   : > { %1984 = vst [vmem:[#allocation13] sm:$0xff] %v1981_v8 }
 0x591 PF: > { %s4489_s30 = sadd.s32 4294967295, %s3434_s26   ;;  %s3449_s10 = smov [#allocation13]  }
 0x592   : > { %p4326_p11 = scmp.eq.s32.totalorder %s4489_s30, 1  ;;  %s1994_s20 = sshll.u32 %s3449_s10, 4  ;;  %s1995_s20 = int_to_ptr.vmem [resolvable:$true] %s1994_s20 }
 0x593   : > { %s3348_s11 = scalar_lea.vmem %s1995_s20, 128  ;;  %p3355_p2 = scmp.lt.s32.totalorder %s1995_s20, %s1995_s20 }
 0x594   : > { %p3349_p7 = scmp.ne.s32.totalorder %s1995_s20, %s3348_s11  ;;  %p3356_p3 = scmp.lt.s32.totalorder %s3348_s11, %s3348_s11 }
 0x596   : > { %p3350_p13 = pnand %p3349_p7, %p4326_p11  ;;  %p3357_p6 = por %p3356_p3, %p3355_p2 }
 0x598   : > { %p3351_p0 = pneg %p3350_p13 }
 0x59a   : > { %p3358_p1 = pnand %p3357_p6, %p3351_p0 }
 0x59c   : > { %3361 = shalt.err (!%p3358_p1)
}
 0x59d   : > { %3027 = dma.vmem_to_hbm [thread:$0]  (%p4326_p11), %s1995_s20, 128, %s4365_s6, [#allocation7]  }
 0x59e   : > { %3409 = dma.done.wait (%p4326_p11), [#allocation7], 128  }
 0x59f   : > { %3411 = vsyncadd (%p4326_p11), [#allocation7], 4294967168 }
 0x5a0 PF: > { %s22_s26 = sadd.s32 1, %s3434_s26   ;;  %s4491_s15 = smov %s3583_s21 }
 0x5a1   : > { %p19_p4 = scmp.ge.s32.totalorder %s22_s26, 4   ;;  %s4492_s21 = smov %s3418_s22 }
 0x5a2   : > { %s4493_s22 = smov %s3422_s23  ;;  %s4494_s23 = smov %s4491_s15 }
 0x5a3   : > { %s4495_s24 = smov %s3430_s25  ;;  %s4496_s25 = smov %s4498_s14 }
 0x5a4   :  { %21 = sbr.rel (!%p19_p4) target bundleno = 7 (0x7), region = 102 }
 0x5a9   :  { %2007 = vsyncpa [#allocation6], 1 }
 0x5aa   :  { %2009 = vsyncpa [#allocation6 + $0x1], 1 }
 0x5ab   :  { %2010 = vsyncpa [#allocation9], 1 }
 0x5ac   :  { %2011 = vsyncpa [#allocation12], 1 }
 0x5ad   :  { %2012 = vsyncpa [#allocation7], 1 }
 0x5ae   :  { %2014 = vsyncpa [#allocation7 + $0x1], 1 }

</bundles_post_ra>
